<compile_context>
chip_gen: v6e
topology: v6e:2x2x1
jax: 0.10.0
libtpu: 0.0.40
codegen_flags: <defaults>
</compile_context>

<pallas_src>
import functools

import jax
import jax.numpy as jnp
from jax.experimental import pallas as pl
from jax.experimental.pallas import tpu as pltpu


def mbconv_kernel(x_ref, m_ref, w1_ref, b1_ref, wdw_ref, bdw_ref, w2_ref,
                  b2_ref, o_ref, *, img_w):
    rows = x_ref.shape[0]                      # images_per_block * H * W pixels
    x = x_ref[...]                             # (rows, C1p) bf16

    # --- expand: 1x1 conv + folded BN + ReLU (MXU, bf16 operands, f32 acc) ---
    h = jnp.dot(x, w1_ref[...], preferred_element_type=jnp.float32)
    h = jnp.maximum(h + b1_ref[...], 0.0)      # (rows, Cmp) f32

    # --- depthwise 3x3, stride 1, pad 1 + folded BN + ReLU ---
    # Neighbour (i+di, j+dj) is at pixel-row r + di*W + dj; taps are built from
    # non-negative sublane rolls gated by precomputed 0/1 validity masks.
    m = m_ref[...]                             # (rows, 4) f32
    m_top, m_bot = m[:, 0:1], m[:, 1:2]        # up / down neighbour exists
    m_left, m_right = m[:, 2:3], m[:, 3:4]     # left / right neighbour exists

    h_up = pltpu.roll(h, shift=img_w, axis=0) * m_top         # h[i-1, j]
    h_dn = pltpu.roll(h, shift=rows - img_w, axis=0) * m_bot  # h[i+1, j]

    wdw = wdw_ref[...]                         # (9, Cmp) f32
    acc = None
    for kh, hr in enumerate((h_up, h, h_dn)):
        hl = pltpu.roll(hr, shift=1, axis=0) * m_left          # h[., j-1]
        hg = pltpu.roll(hr, shift=rows - 1, axis=0) * m_right  # h[., j+1]
        t = (hl * wdw[3 * kh + 0:3 * kh + 1, :]
             + hr * wdw[3 * kh + 1:3 * kh + 2, :]
             + hg * wdw[3 * kh + 2:3 * kh + 3, :])
        acc = t if acc is None else acc + t
    h2 = jnp.maximum(acc + bdw_ref[...], 0.0)  # post-DW get_activation('relu')

    # --- project: 1x1 conv + folded BN, fused residual, lane-dense bf16 store ---
    y = jnp.dot(h2.astype(jnp.bfloat16), w2_ref[...],
                preferred_element_type=jnp.float32)
    o_ref[...] = (y + b2_ref[...] + x.astype(jnp.float32)).astype(o_ref.dtype)


def mbconv_forward(x_nchw, params, *, images_per_block=1):
    w1, b1, wdw, bdw, w2, b2 = params          # unpadded f32 (BN already folded)
    N, C1, H, W = x_nchw.shape
    Cm = w1.shape[1]
    C2 = w2.shape[1]
    assert C1 == C2, "residual `x + conv(x)` requires c1 == c2"

    nb = images_per_block
    assert N % nb == 0
    RB = nb * H * W                            # pixel rows per grid step

    pad128 = lambda c: ((c + 127) // 128) * 128
    C1p, Cmp, C2p = pad128(C1), pad128(Cm), pad128(C2)

    # NCHW -> (N*H*W pixels, channels); zero-pad lanes to 128; bf16 in HBM.
    x2d = jnp.transpose(x_nchw, (0, 2, 3, 1)).reshape(N * H * W, C1)
    x2d = jnp.pad(x2d, ((0, 0), (0, C1p - C1))).astype(jnp.bfloat16)

    # Small, W-independent weights (padded lanes are zero => padded outputs are 0).
    w1p = jnp.pad(w1, ((0, C1p - C1), (0, Cmp - Cm))).astype(jnp.bfloat16)
    w2p = jnp.pad(w2, ((0, Cmp - Cm), (0, C2p - C2))).astype(jnp.bfloat16)
    b1p = jnp.pad(b1, ((0, 0), (0, Cmp - Cm)))
    bdwp = jnp.pad(bdw, ((0, 0), (0, Cmp - Cm)))
    wdwp = jnp.pad(wdw, ((0, 0), (0, Cmp - Cm)))
    b2p = jnp.pad(b2, ((0, 0), (0, C2p - C2)))

    # Boundary-validity masks (1 = neighbour exists) for one grid block.
    i_grid, j_grid = jnp.meshgrid(jnp.arange(H), jnp.arange(W), indexing="ij")
    m = jnp.stack([i_grid > 0, i_grid < H - 1, j_grid > 0, j_grid < W - 1],
                  axis=-1).astype(jnp.float32).reshape(H * W, 4)
    masks = jnp.tile(m, (nb, 1))               # (RB, 4)

    kernel = functools.partial(mbconv_kernel, img_w=W)

    out2d = pl.pallas_call(
        kernel,
        out_shape=jax.ShapeDtypeStruct((N * H * W, C2p), jnp.bfloat16),
        grid_spec=pltpu.PrefetchScalarGridSpec(
            num_scalar_prefetch=0,
            grid=(N // nb,),
            in_specs=[
                pl.BlockSpec((RB, C1p), lambda i: (i, 0)),    # x (bf16)
                pl.BlockSpec((RB, 4), lambda i: (0, 0)),      # boundary masks
                pl.BlockSpec((C1p, Cmp), lambda i: (0, 0)),   # expand weight
                pl.BlockSpec((1, Cmp), lambda i: (0, 0)),     # expand bias
                pl.BlockSpec((9, Cmp), lambda i: (0, 0)),     # dw taps
                pl.BlockSpec((1, Cmp), lambda i: (0, 0)),     # dw bias
                pl.BlockSpec((Cmp, C2p), lambda i: (0, 0)),   # project weight
                pl.BlockSpec((1, C2p), lambda i: (0, 0)),     # project bias
            ],
            out_specs=pl.BlockSpec((RB, C2p), lambda i: (i, 0)),
        ),
        compiler_params=pltpu.CompilerParams(
            dimension_semantics=("parallel",)),
    )(x2d, masks, w1p, b1p, wdwp, bdwp, w2p, b2p)

    out = out2d[:, :C2].reshape(N, H, W, C2)
    return jnp.transpose(out, (0, 3, 1, 2)).astype(x_nchw.dtype)   # NHWC -> NCHW


def mbconv_ref(x_nchw, params):
    """Pure-JAX f32 reference with identical module math (correctness check)."""
    w1, b1, wdw, bdw, w2, b2 = params
    x = jnp.transpose(x_nchw, (0, 2, 3, 1)).astype(jnp.float32)
    N, H, W, _ = x.shape
    h = jnp.maximum(jnp.einsum('nhwc,cd->nhwd', x, w1) + b1[0], 0.0)
    hp = jnp.pad(h, ((0, 0), (1, 1), (1, 1), (0, 0)))
    acc = sum(hp[:, kh:kh + H, kw:kw + W, :] * wdw[kh * 3 + kw]
              for kh in range(3) for kw in range(3))
    h = jnp.maximum(acc + bdw[0], 0.0)
    y = jnp.einsum('nhwc,cd->nhwd', h, w2) + b2[0] + x
    return jnp.transpose(y, (0, 3, 1, 2))


def _fold_bn(gamma, beta, mean, var, eps=1e-5):
    s = gamma / jnp.sqrt(var + eps)
    return s, beta - mean * s


if __name__ == "__main__":
    key = jax.random.PRNGKey(0)
    N, C1, H, W = 2, 8, 16, 16
    e = 2.0
    C2 = C1
    Cm = int(round(C1 * e))            # round_channels(c1 * e, divisor=1)

    keys = jax.random.split(key, 8)
    x = jax.random.normal(keys[0], (N, C1, H, W), jnp.float32)

    # PyTorch-shaped conv weights (deterministic).
    w1_raw = jax.random.normal(keys[1], (Cm, C1, 1, 1), jnp.float32) * 0.3   # expand 1x1
    wdw_raw = jax.random.normal(keys[2], (Cm, 1, 3, 3), jnp.float32) * 0.3   # depthwise 3x3
    w2_raw = jax.random.normal(keys[3], (C2, Cm, 1, 1), jnp.float32) * 0.3   # project 1x1

    def make_bn(k, c):
        ks = jax.random.split(k, 4)
        gamma = 1.0 + 0.1 * jax.random.normal(ks[0], (c,), jnp.float32)
        beta = 0.1 * jax.random.normal(ks[1], (c,), jnp.float32)
        mean = 0.1 * jax.random.normal(ks[2], (c,), jnp.float32)
        var = jnp.abs(jax.random.normal(ks[3], (c,), jnp.float32)) + 0.5
        return gamma, beta, mean, var

    bn1 = make_bn(keys[4], Cm)
    bnd = make_bn(keys[5], Cm)
    bn2 = make_bn(keys[6], C2)

    # Fold BN into conv weights/biases (glue, plain JAX).
    s1, b1v = _fold_bn(*bn1)
    w1 = jnp.transpose(w1_raw.reshape(Cm, C1), (1, 0)) * s1[None, :]   # (C1, Cm)
    b1 = b1v[None, :]                                                  # (1, Cm)

    sd, bdv = _fold_bn(*bnd)
    wdw = jnp.transpose(wdw_raw[:, 0], (1, 2, 0)).reshape(9, Cm) * sd[None, :]  # (9, Cm)
    bdw = bdv[None, :]                                                          # (1, Cm)

    s2, b2v = _fold_bn(*bn2)
    w2 = jnp.transpose(w2_raw.reshape(C2, Cm), (1, 0)) * s2[None, :]   # (Cm, C2)
    b2 = b2v[None, :]                                                  # (1, C2)

    params = (w1, b1, wdw, bdw, w2, b2)

    out = mbconv_forward(x, params, images_per_block=1)
    jax.block_until_ready(out)

    # Reference sees the same bf16-rounded input the kernel sees; remaining
    # difference is bf16 weight/activation storage + bf16 MXU operands (~1% rel).
    xq = x.astype(jnp.bfloat16).astype(jnp.float32)
    ref = mbconv_ref(xq, params)
    assert out.shape == x.shape and out.dtype == x.dtype
    err = float(jnp.max(jnp.abs(out - ref)))
    assert jnp.allclose(out, ref, atol=5e-2, rtol=5e-2), err

    print("KERNEL_OK")
</pallas_src>

<mosaic_0001>
module attributes {stable_mosaic.version = 11 : i64} {
  func.func @mbconv_kernel(%arg0: i32, %arg1: memref<256x128xbf16, #tpu.memory_space<vmem>>, %arg2: memref<256x4xf32, #tpu.memory_space<vmem>>, %arg3: memref<128x128xbf16, #tpu.memory_space<vmem>>, %arg4: memref<1x128xf32, #tpu.memory_space<vmem>>, %arg5: memref<9x128xf32, #tpu.memory_space<vmem>>, %arg6: memref<1x128xf32, #tpu.memory_space<vmem>>, %arg7: memref<128x128xbf16, #tpu.memory_space<vmem>>, %arg8: memref<1x128xf32, #tpu.memory_space<vmem>>, %arg9: memref<256x128xbf16, #tpu.memory_space<vmem>>) attributes {dimension_semantics = [#tpu.dimension_semantics<parallel>], iteration_bounds = array<i64: 2>, scalar_prefetch = 0 : i64, scratch_operands = 0 : i64, tpu.core_type = #tpu.core_type<tc>, window_params = [{transform_indices = @transform_0, window_bounds = array<i64: 256, 128>}, {pipeline_mode = #tpu.pipeline_mode<synchronous>, transform_indices = @transform_1, window_bounds = array<i64: 256, 4>}, {pipeline_mode = #tpu.pipeline_mode<synchronous>, transform_indices = @transform_2, window_bounds = array<i64: 128, 128>}, {pipeline_mode = #tpu.pipeline_mode<synchronous>, transform_indices = @transform_3, window_bounds = array<i64: 1, 128>}, {pipeline_mode = #tpu.pipeline_mode<synchronous>, transform_indices = @transform_4, window_bounds = array<i64: 9, 128>}, {pipeline_mode = #tpu.pipeline_mode<synchronous>, transform_indices = @transform_5, window_bounds = array<i64: 1, 128>}, {pipeline_mode = #tpu.pipeline_mode<synchronous>, transform_indices = @transform_6, window_bounds = array<i64: 128, 128>}, {pipeline_mode = #tpu.pipeline_mode<synchronous>, transform_indices = @transform_7, window_bounds = array<i64: 1, 128>}, {transform_indices = @transform_8, window_bounds = array<i64: 256, 128>}]} {
    %c0 = arith.constant 0 : index
    %c0_0 = arith.constant 0 : index
    %0 = vector.load %arg1[%c0, %c0_0] : memref<256x128xbf16, #tpu.memory_space<vmem>>, vector<256x128xbf16>
    %c0_1 = arith.constant 0 : index
    %c0_2 = arith.constant 0 : index
    %1 = vector.load %arg3[%c0_1, %c0_2] : memref<128x128xbf16, #tpu.memory_space<vmem>>, vector<128x128xbf16>
    %cst = arith.constant dense<0.000000e+00> : vector<256x128xf32>
    %2 = tpu.matmul %0, %1, %cst {dimension_numbers = #tpu.dot_dimension_numbers<[1], [0], [0], [1], [0, 0, 1, 1], [], []>} : vector<256x128xbf16>, vector<128x128xbf16>, vector<256x128xf32> -> vector<256x128xf32>
    %c0_3 = arith.constant 0 : index
    %c0_4 = arith.constant 0 : index
    %3 = vector.load %arg4[%c0_3, %c0_4] : memref<1x128xf32, #tpu.memory_space<vmem>>, vector<1x128xf32>
    %4 = vector.broadcast %3 : vector<1x128xf32> to vector<256x128xf32>
    %5 = arith.addf %2, %4 : vector<256x128xf32>
    %cst_5 = arith.constant 0.000000e+00 : f32
    %6 = vector.broadcast %cst_5 : f32 to vector<256x128xf32>
    %7 = arith.maximumf %5, %6 : vector<256x128xf32>
    %c0_6 = arith.constant 0 : index
    %c0_7 = arith.constant 0 : index
    %8 = vector.load %arg2[%c0_6, %c0_7] : memref<256x4xf32, #tpu.memory_space<vmem>>, vector<256x4xf32>
    %9 = vector.extract_strided_slice %8 {offsets = [0, 0], sizes = [256, 1], strides = [1, 1]} : vector<256x4xf32> to vector<256x1xf32>
    %10 = vector.extract_strided_slice %8 {offsets = [0, 1], sizes = [256, 1], strides = [1, 1]} : vector<256x4xf32> to vector<256x1xf32>
    %11 = vector.extract_strided_slice %8 {offsets = [0, 2], sizes = [256, 1], strides = [1, 1]} : vector<256x4xf32> to vector<256x1xf32>
    %12 = vector.extract_strided_slice %8 {offsets = [0, 3], sizes = [256, 1], strides = [1, 1]} : vector<256x4xf32> to vector<256x1xf32>
    %c16_i32 = arith.constant 16 : i32
    %13 = tpu.dynamic_rotate %7 by %c16_i32 dim 0 : vector<256x128xf32>, i32 -> vector<256x128xf32>
    %14 = vector.broadcast %9 : vector<256x1xf32> to vector<256x128xf32>
    %15 = arith.mulf %13, %14 : vector<256x128xf32>
    %c240_i32 = arith.constant 240 : i32
    %16 = tpu.dynamic_rotate %7 by %c240_i32 dim 0 : vector<256x128xf32>, i32 -> vector<256x128xf32>
    %17 = vector.broadcast %10 : vector<256x1xf32> to vector<256x128xf32>
    %18 = arith.mulf %16, %17 : vector<256x128xf32>
    %c0_8 = arith.constant 0 : index
    %c0_9 = arith.constant 0 : index
    %19 = vector.load %arg5[%c0_8, %c0_9] : memref<9x128xf32, #tpu.memory_space<vmem>>, vector<9x128xf32>
    %c1_i32 = arith.constant 1 : i32
    %20 = tpu.dynamic_rotate %15 by %c1_i32 dim 0 : vector<256x128xf32>, i32 -> vector<256x128xf32>
    %21 = vector.broadcast %11 : vector<256x1xf32> to vector<256x128xf32>
    %22 = arith.mulf %20, %21 : vector<256x128xf32>
    %c255_i32 = arith.constant 255 : i32
    %23 = tpu.dynamic_rotate %15 by %c255_i32 dim 0 : vector<256x128xf32>, i32 -> vector<256x128xf32>
    %24 = vector.broadcast %12 : vector<256x1xf32> to vector<256x128xf32>
    %25 = arith.mulf %23, %24 : vector<256x128xf32>
    %26 = vector.extract_strided_slice %19 {offsets = [0, 0], sizes = [1, 128], strides = [1, 1]} : vector<9x128xf32> to vector<1x128xf32>
    %27 = vector.broadcast %26 : vector<1x128xf32> to vector<256x128xf32>
    %28 = arith.mulf %22, %27 : vector<256x128xf32>
    %29 = vector.extract_strided_slice %19 {offsets = [1, 0], sizes = [1, 128], strides = [1, 1]} : vector<9x128xf32> to vector<1x128xf32>
    %30 = vector.broadcast %29 : vector<1x128xf32> to vector<256x128xf32>
    %31 = arith.mulf %15, %30 : vector<256x128xf32>
    %32 = arith.addf %28, %31 : vector<256x128xf32>
    %33 = vector.extract_strided_slice %19 {offsets = [2, 0], sizes = [1, 128], strides = [1, 1]} : vector<9x128xf32> to vector<1x128xf32>
    %34 = vector.broadcast %33 : vector<1x128xf32> to vector<256x128xf32>
    %35 = arith.mulf %25, %34 : vector<256x128xf32>
    %36 = arith.addf %32, %35 : vector<256x128xf32>
    %c1_i32_10 = arith.constant 1 : i32
    %37 = tpu.dynamic_rotate %7 by %c1_i32_10 dim 0 : vector<256x128xf32>, i32 -> vector<256x128xf32>
    %38 = vector.broadcast %11 : vector<256x1xf32> to vector<256x128xf32>
    %39 = arith.mulf %37, %38 : vector<256x128xf32>
    %c255_i32_11 = arith.constant 255 : i32
    %40 = tpu.dynamic_rotate %7 by %c255_i32_11 dim 0 : vector<256x128xf32>, i32 -> vector<256x128xf32>
    %41 = vector.broadcast %12 : vector<256x1xf32> to vector<256x128xf32>
    %42 = arith.mulf %40, %41 : vector<256x128xf32>
    %43 = vector.extract_strided_slice %19 {offsets = [3, 0], sizes = [1, 128], strides = [1, 1]} : vector<9x128xf32> to vector<1x128xf32>
    %44 = vector.broadcast %43 : vector<1x128xf32> to vector<256x128xf32>
    %45 = arith.mulf %39, %44 : vector<256x128xf32>
    %46 = vector.extract_strided_slice %19 {offsets = [4, 0], sizes = [1, 128], strides = [1, 1]} : vector<9x128xf32> to vector<1x128xf32>
    %47 = vector.broadcast %46 : vector<1x128xf32> to vector<256x128xf32>
    %48 = arith.mulf %7, %47 : vector<256x128xf32>
    %49 = arith.addf %45, %48 : vector<256x128xf32>
    %50 = vector.extract_strided_slice %19 {offsets = [5, 0], sizes = [1, 128], strides = [1, 1]} : vector<9x128xf32> to vector<1x128xf32>
    %51 = vector.broadcast %50 : vector<1x128xf32> to vector<256x128xf32>
    %52 = arith.mulf %42, %51 : vector<256x128xf32>
    %53 = arith.addf %49, %52 : vector<256x128xf32>
    %54 = arith.addf %36, %53 : vector<256x128xf32>
    %c1_i32_12 = arith.constant 1 : i32
    %55 = tpu.dynamic_rotate %18 by %c1_i32_12 dim 0 : vector<256x128xf32>, i32 -> vector<256x128xf32>
    %56 = vector.broadcast %11 : vector<256x1xf32> to vector<256x128xf32>
    %57 = arith.mulf %55, %56 : vector<256x128xf32>
    %c255_i32_13 = arith.constant 255 : i32
    %58 = tpu.dynamic_rotate %18 by %c255_i32_13 dim 0 : vector<256x128xf32>, i32 -> vector<256x128xf32>
    %59 = vector.broadcast %12 : vector<256x1xf32> to vector<256x128xf32>
    %60 = arith.mulf %58, %59 : vector<256x128xf32>
    %61 = vector.extract_strided_slice %19 {offsets = [6, 0], sizes = [1, 128], strides = [1, 1]} : vector<9x128xf32> to vector<1x128xf32>
    %62 = vector.broadcast %61 : vector<1x128xf32> to vector<256x128xf32>
    %63 = arith.mulf %57, %62 : vector<256x128xf32>
    %64 = vector.extract_strided_slice %19 {offsets = [7, 0], sizes = [1, 128], strides = [1, 1]} : vector<9x128xf32> to vector<1x128xf32>
    %65 = vector.broadcast %64 : vector<1x128xf32> to vector<256x128xf32>
    %66 = arith.mulf %18, %65 : vector<256x128xf32>
    %67 = arith.addf %63, %66 : vector<256x128xf32>
    %68 = vector.extract_strided_slice %19 {offsets = [8, 0], sizes = [1, 128], strides = [1, 1]} : vector<9x128xf32> to vector<1x128xf32>
    %69 = vector.broadcast %68 : vector<1x128xf32> to vector<256x128xf32>
    %70 = arith.mulf %60, %69 : vector<256x128xf32>
    %71 = arith.addf %67, %70 : vector<256x128xf32>
    %72 = arith.addf %54, %71 : vector<256x128xf32>
    %c0_14 = arith.constant 0 : index
    %c0_15 = arith.constant 0 : index
    %73 = vector.load %arg6[%c0_14, %c0_15] : memref<1x128xf32, #tpu.memory_space<vmem>>, vector<1x128xf32>
    %74 = vector.broadcast %73 : vector<1x128xf32> to vector<256x128xf32>
    %75 = arith.addf %72, %74 : vector<256x128xf32>
    %cst_16 = arith.constant 0.000000e+00 : f32
    %76 = vector.broadcast %cst_16 : f32 to vector<256x128xf32>
    %77 = arith.maximumf %75, %76 : vector<256x128xf32>
    %78 = arith.truncf %77 : vector<256x128xf32> to vector<256x128xbf16>
    %c0_17 = arith.constant 0 : index
    %c0_18 = arith.constant 0 : index
    %79 = vector.load %arg7[%c0_17, %c0_18] : memref<128x128xbf16, #tpu.memory_space<vmem>>, vector<128x128xbf16>
    %cst_19 = arith.constant dense<0.000000e+00> : vector<256x128xf32>
    %80 = tpu.matmul %78, %79, %cst_19 {dimension_numbers = #tpu.dot_dimension_numbers<[1], [0], [0], [1], [0, 0, 1, 1], [], []>} : vector<256x128xbf16>, vector<128x128xbf16>, vector<256x128xf32> -> vector<256x128xf32>
    %c0_20 = arith.constant 0 : index
    %c0_21 = arith.constant 0 : index
    %81 = vector.load %arg8[%c0_20, %c0_21] : memref<1x128xf32, #tpu.memory_space<vmem>>, vector<1x128xf32>
    %82 = vector.broadcast %81 : vector<1x128xf32> to vector<256x128xf32>
    %83 = arith.addf %80, %82 : vector<256x128xf32>
    %84 = arith.extf %0 : vector<256x128xbf16> to vector<256x128xf32>
    %85 = arith.addf %83, %84 : vector<256x128xf32>
    %86 = arith.truncf %85 : vector<256x128xf32> to vector<256x128xbf16>
    %c0_22 = arith.constant 0 : index
    %c0_23 = arith.constant 0 : index
    %87 = vector.load %arg9[%c0_22, %c0_23] : memref<256x128xbf16, #tpu.memory_space<vmem>>, vector<256x128xbf16>
    tpu.vector_store %arg9[%c0_22, %c0_23], %86 {strides = array<i32>} : memref<256x128xbf16, #tpu.memory_space<vmem>>, vector<256x128xbf16>,
    return
  }
  func.func @transform_0(%arg0: i32) -> (i32, i32) {
    %c0_i32 = arith.constant 0 : i32
    %c0_i32_0 = arith.constant 0 : i32
    return %arg0, %c0_i32 : i32, i32
  }
  func.func @transform_1(%arg0: i32) -> (i32, i32) {
    %c0_i32 = arith.constant 0 : i32
    %c0_i32_0 = arith.constant 0 : i32
    %c0_i32_1 = arith.constant 0 : i32
    return %c0_i32, %c0_i32_0 : i32, i32
  }
  func.func @transform_2(%arg0: i32) -> (i32, i32) {
    %c0_i32 = arith.constant 0 : i32
    %c0_i32_0 = arith.constant 0 : i32
    %c0_i32_1 = arith.constant 0 : i32
    return %c0_i32, %c0_i32_0 : i32, i32
  }
  func.func @transform_3(%arg0: i32) -> (i32, i32) {
    %c0_i32 = arith.constant 0 : i32
    %c0_i32_0 = arith.constant 0 : i32
    %c0_i32_1 = arith.constant 0 : i32
    return %c0_i32, %c0_i32_0 : i32, i32
  }
  func.func @transform_4(%arg0: i32) -> (i32, i32) {
    %c0_i32 = arith.constant 0 : i32
    %c0_i32_0 = arith.constant 0 : i32
    %c0_i32_1 = arith.constant 0 : i32
    return %c0_i32, %c0_i32_0 : i32, i32
  }
  func.func @transform_5(%arg0: i32) -> (i32, i32) {
    %c0_i32 = arith.constant 0 : i32
    %c0_i32_0 = arith.constant 0 : i32
    %c0_i32_1 = arith.constant 0 : i32
    return %c0_i32, %c0_i32_0 : i32, i32
  }
  func.func @transform_6(%arg0: i32) -> (i32, i32) {
    %c0_i32 = arith.constant 0 : i32
    %c0_i32_0 = arith.constant 0 : i32
    %c0_i32_1 = arith.constant 0 : i32
    return %c0_i32, %c0_i32_0 : i32, i32
  }
  func.func @transform_7(%arg0: i32) -> (i32, i32) {
    %c0_i32 = arith.constant 0 : i32
    %c0_i32_0 = arith.constant 0 : i32
    %c0_i32_1 = arith.constant 0 : i32
    return %c0_i32, %c0_i32_0 : i32, i32
  }
  func.func @transform_8(%arg0: i32) -> (i32, i32) {
    %c0_i32 = arith.constant 0 : i32
    %c0_i32_0 = arith.constant 0 : i32
    return %arg0, %c0_i32 : i32, i32
  }
}

</mosaic_0001>

<bundles_post_ra>
// kernel: tpu_custom_call.1
= control target key start
LH: loop header
LB: loop body
LE: loop exit
PB: predicated region body
PF: predicated region fallthrough
CT: control target
= control target key end

     0   :  { %13 = vsyncpa [#allocation3], 0  ;;  %s7039_s0 = inlined_call_operand.vmem [shape: bf16[512,128], index: 0, kind: input, shape index: {}]   ;;  %s7040_s1 = inlined_call_operand.vmem [shape: f32[256,4], index: 1, kind: input, shape index: {}]   ;;  %s7041_s2 = inlined_call_operand.hbm [shape: bf16[128,128], index: 2, kind: input, shape index: {}]   ;;  %s7042_s3 = inlined_call_operand.vmem [shape: f32[1,128], index: 3, kind: input, shape index: {}]   ;;  %s7043_s4 = inlined_call_operand.hbm [shape: f32[9,128], index: 4, kind: input, shape index: {}]   ;;  %s7044_s5 = inlined_call_operand.vmem [shape: f32[1,128], index: 5, kind: input, shape index: {}]   ;;  %s7045_s6 = inlined_call_operand.hbm [shape: bf16[128,128], index: 6, kind: input, shape index: {}]   ;;  %s7046_s7 = inlined_call_operand.vmem [shape: f32[1,128], index: 7, kind: input, shape index: {}]   ;;  %s7047_s8 = inlined_call_operand.hbm [shape: bf16[512,128], index: 8, kind: output, shape index: {}]  }
   0x1   :  { %14 = vsyncpa [#allocation6], 0 }
   0x2   :  { %15 = vsyncpa [#allocation4], 0 }
   0x3   :  { %17 = vsyncpa [#allocation4 + $0x1], 0  ;;  %s3946_s27 = smov 0   ;;  %s3948_s28 = smov 0  }
   0x4   :  { %s3950_s29 = smov 0   ;;  %s3952_s30 = smov 0  }
   0x5 LB: > { %s3967_s9 = sadd.s32 4294967295, %s3885_s30   ;;  %s3196_s10 = sadd.s32 4294967294, %s3885_s30   ;;  %s3885_s30 = sphi %s3952_s30, %s7753_s30   ;;  %s3881_s29 = sphi %s3950_s29, %s7752_s29   ;;  %s3877_s28 = sphi %s3948_s28, %s7751_s28   ;;  %s3873_s27 = sphi %s3946_s27, %s7750_s27  }
   0x6   : > { %s3971_s11 = sadd.s32 1, %s3885_s30   ;;  %s203_s12 = sadd.s32 1, %s3881_s29 }
   0x7   : > { %s200_s13 = ssub.s32 %s3885_s30, %s3971_s11  ;;  %p213_p0 = scmp.ne.s32.totalorder %s3881_s29, %s3877_s28 }
   0x8   : > { %p201_p1 = scmp.eq.s32.totalorder %s200_s13, 0  ;;  %p214_p2 = scmp.eq.s32.totalorder %s3967_s9, 1 }
   0x9   : > { %p219_p3 = scmp.ne.s32.totalorder %s3877_s28, %s3873_s27  ;;  %p220_p4 = scmp.eq.s32.totalorder %s3196_s10, 1 }
   0xa   : > { %s3982_s14 = scalar_select %p201_p1, %s3881_s29, %s203_s12  }
   0xb   : > { %p3984_p5 = por %p214_p2, %p213_p0  ;;  %p3988_p6 = por %p220_p4, %p219_p3 }
   0xc   : > { %p3197_p7 = scmp.ge.s32.totalorder %s3885_s30, 1  ;;  %p227_p8 = scmp.lt.s32.totalorder %s3885_s30, 3 }
   0xd   : > { %s7228_s16 = scalar_select %p3988_p6, 1, 0 }
   0xe   : > { %p7048_p9 = scmp.eq.s32.totalorder %s3967_s9, 0  ;;  %p3995_p10 = pnand %p3197_p7, %p227_p8 }
   0xf   : > { %s3887_s18 = smov [#allocation5]   ;;  %s3888_s21 = smov [#allocation2]  }
  0x10   : > { %s258_s19 = sshll.u32 %s3887_s18, 4  ;;  %p3568_p11 = pneg %p3995_p10  ;;  %s259_s19 = int_to_ptr.vmem [resolvable:$true] %s258_s19 }
  0x11   : > { %s242_s22 = sshll.u32 %s3888_s21, 4  ;;  %s3750_s23 = scalar_lea.vmem %s259_s19, 256  ;;  %s243_s22 = int_to_ptr.vmem [resolvable:$true] %s242_s22 }
  0x12   : > { %p4003_p12 = pnand %p7048_p9, %p3568_p11  ;;  %p3751_p0 = scmp.ne.s32.totalorder %s259_s19, %s3750_s23 }
  0x13   : > { %p3758_p3 = scmp.lt.s32.totalorder %s259_s19, %s259_s19  ;;  %p3759_p4 = scmp.lt.s32.totalorder %s3750_s23, %s3750_s23 }
  0x14   : > { %p3741_p13 = pneg %p4003_p12 }
  0x15   : > { %p3760_p7 = por %p3759_p4, %p3758_p3 }
  0x16   : > { %p3753_p1 = pnand %p3751_p0, %p3741_p13 }
  0x18   : > { %p3754_p2 = pneg %p3753_p1 }
  0x1a   : > { %p3761_p8 = pnand %p3760_p7, %p3754_p2 }
  0x1c   : > { %3764 = shalt.err (!%p3761_p8)
}
  0x1d   : > { %s3889_s24 = smov 128   ;;  %s3890_s25 = smov 8  }
  0x1e   : > { %3574 = dma.hbm_to_vmem [thread:$0]  (!%p4003_p12), %s7043_s4, 256, %s259_s19, [#allocation6], %s3889_s24, %s3889_s24, %s3890_s25  }
  0x1f   : > { %s3776_s12 = scalar_lea.vmem %s243_s22, 1024  ;;  %p3784_p9 = scmp.lt.s32.totalorder %s243_s22, %s243_s22 }
  0x20   : > { %p3777_p11 = scmp.ne.s32.totalorder %s243_s22, %s3776_s12  ;;  %p3785_p6 = scmp.lt.s32.totalorder %s3776_s12, %s3776_s12 }
  0x22   : > { %p3779_p0 = pnand %p3777_p11, %p3741_p13  ;;  %p3786_p3 = por %p3785_p6, %p3784_p9 }
  0x24   : > { %p3780_p1 = pneg %p3779_p0 }
  0x26   : > { %p3787_p2 = pnand %p3786_p3, %p3780_p1 }
  0x28   : > { %3790 = shalt.err (!%p3787_p2)
}
  0x29   : > { %s3891_s13 = smov 64   ;;  %s3892_s18 = smov 4  }
  0x2a   : > { %3571 = dma.hbm_to_vmem [thread:$0]  (!%p4003_p12), %s7041_s2, 1024, %s243_s22, [#allocation3], %s3891_s13, %s3891_s13, %s3892_s18  }
  0x2b   : > { %s3893_s19 = smov [#allocation7]  }
  0x2c   : > { %s274_s24 = sshll.u32 %s3893_s19, 4  ;;  %s275_s24 = int_to_ptr.vmem [resolvable:$true] %s274_s24 }
  0x2d   : > { %s3802_s25 = scalar_lea.vmem %s275_s24, 1024  ;;  %p3810_p9 = scmp.lt.s32.totalorder %s275_s24, %s275_s24 }
  0x2e   : > { %p3803_p4 = scmp.ne.s32.totalorder %s275_s24, %s3802_s25  ;;  %p3811_p8 = scmp.lt.s32.totalorder %s3802_s25, %s3802_s25 }
  0x30   : > { %p3805_p7 = pnand %p3803_p4, %p3741_p13  ;;  %p3812_p11 = por %p3811_p8, %p3810_p9 }
  0x32   : > { %p3806_p6 = pneg %p3805_p7 }
  0x34   : > { %p3813_p0 = pnand %p3812_p11, %p3806_p6 }
  0x36   : > { %3816 = shalt.err (!%p3813_p0)
}
  0x37   : > { %3577 = dma.hbm_to_vmem [thread:$0]  (!%p4003_p12), %s7045_s6, 1024, %s275_s24, [#allocation6], %s3891_s13, %s3891_s13, %s3892_s18  }
  0x38   : > { %302 = sbr.rel (%p3995_p10) target bundleno = 890 (0x37a), region = 52 }
  0x3d   : > { %p7231_p1 = scmp.eq.s32.totalorder %s3967_s9, 0 }
  0x3f   : > { %3860 = dma.done.wait (%p7231_p1), [#allocation3], 1024   ;;  %p7232_p13 = pmov %p7231_p1 }
  0x40   : > { %p7233_p3 = pmov %p7231_p1 }
  0x41   : > { %3862 = vsyncadd (%p7232_p13), [#allocation3], 4294966272 }
  0x42   : > { %3864 = dma.done.wait (%p7233_p3), [#allocation6], 1280   ;;  %p7234_p2 = pmov %p7231_p1 }
  0x43   : > { %v3894_v0 = vmov 0   ;;  %s3207_s20 = sshll.u32 %s3967_s9, 5  ;;  %v4047_v1 = vld [vmem:[%s7040_s1 + $0x10] sm:$0xff]  ;;  %v4052_v2 = vld [vmem:[%s7040_s1] sm:$0xff]  ;;  %v3664_v3 = vld [vmem:[#allocation2 + $0x38] sm:$0xff]   ;;  %v7049_v52 = vmov 1  }
  0x44   : > { %3866 = vsyncadd (%p7234_p2), [#allocation6], 4294966016  ;;  %3635 = vset.pattern.permute.xlu1 %v3894_v0  ;;  %3634 = vset.pattern.permute.xlu0 %v3894_v0  ;;  %p345_p10 = scmp.lt.s32.totalorder %s3207_s20, 63  ;;  %v4059_v4 = vld [vmem:[%s7040_s1 + $0x18] sm:$0xff]  ;;  %v4064_v5 = vld [vmem:[%s7040_s1 + $0x8] sm:$0xff]  ;;  %v7051_v53 = vmov 2  }
  0x45   : > { %788 = vperm.xlu1 %3635, %v4047_v1   ;;  %778 = vperm.xlu0 %3634, %v4052_v2   ;;  %v3665_v6 = vld [vmem:[#allocation2 + $0x30] sm:$0xff]   ;;  %v4071_v7 = vld [vmem:[%s7040_s1 + $0x28] sm:$0xff]  ;;  %v4076_v8 = vld [vmem:[%s7040_s1 + $0x20] sm:$0xff]  ;;  %v7053_v59 = vmov 3   ;;  %s341_s19 = sand.u32 1, %s3877_s28   ;;  %s3314_s26 = sshll.u32 %s3967_s9, 11 }
  0x46   : > { %3458 = vmatprep.subr.bf16.mxu0 %v3664_v3  ;;  %s7755_s20 = smov (!%p345_p10, %s3207_s20), 63  ;;  %v3666_v9 = vld [vmem:[#allocation2 + $0x28] sm:$0xff]   ;;  %v4083_v10 = vld [vmem:[%s7040_s1 + $0x38] sm:$0xff]  ;;  %v4088_v11 = vld [vmem:[%s7040_s1 + $0x30] sm:$0xff]  ;;  %s3206_s24 = sshll.u32 %s341_s19, 7 }
  0x47   : > { %3459 = vmatpush3.bf16.msra.mxu0 %v3664_v3  ;;  %s3208_s22 = sshll.u32 %s7755_s20, 2  ;;  %v3667_v12 = vld [vmem:[#allocation2 + $0x20] sm:$0xff]   ;;  %v4100_v13 = vld [vmem:[%s7040_s1 + $0x48] sm:$0xff]  ;;  %v3668_v15 = vld [vmem:[#allocation2 + $0x18] sm:$0xff]   ;;  %s6928_s25 = scalar_lea.vmem [#allocation8], %s3206_s24 }
  0x48   : > { %3460 = vmatprep.subr.bf16.mxu0 %v3665_v6  ;;  %s4093_s20 = scalar_lea.vmem %s7039_s0, %s3208_s22  ;;  %v4105_v14 = vld [vmem:[%s7040_s1 + $0x40] sm:$0xff]  ;;  %v4113_v17 = vld [vmem:[%s7040_s1 + $0x58] sm:$0xff]  ;;  %v4118_v18 = vld [vmem:[%s7040_s1 + $0x50] sm:$0xff]  ;;  %s3103_s10 = sshll.u32 %s6928_s25, 4  ;;  %s6993_s10 = int_to_ptr.vmem [resolvable:$true] %s3103_s10 }
  0x49   : > { %793 = vperm.xlu1 %3635, %v4059_v4   ;;  %783 = vperm.xlu0 %3634, %v4064_v5   ;;  %v352_v16 = vld [vmem:[%s4093_s20] sm:$0xff]   ;;  %v3669_v19 = vld [vmem:[#allocation2 + $0x10] sm:$0xff]   ;;  %v4125_v20 = vld [vmem:[%s7040_s1 + $0x68] sm:$0xff]  ;;  %s6999_s12 = scalar_lea.sflag [#allocation4], %s341_s19  ;;  %s3817_s9 = scalar_lea.vmem %s6993_s10, 2048 }
  0x4a   : > { %3474 = vmatprep.mubr.bf16.mxu0 %v352_v16  ;;  %v4130_v21 = vld [vmem:[%s7040_s1 + $0x60] sm:$0xff]  ;;  %v3670_v22 = vld [vmem:[#allocation2 + $0x8] sm:$0xff]   ;;  %v4135_v23 = vld [vmem:[%s7040_s1 + $0x78] sm:$0xff]  ;;  %p3818_p12 = scmp.ne.s32.totalorder %s6993_s10, %s3817_s9  ;;  %s3898_s13 = smov [#allocation8]  }
  0x4b   : > { %3461 = vmatpush3.bf16.msra.mxu0 %v3665_v6  ;;  %v4140_v24 = vld [vmem:[%s7040_s1 + $0x70] sm:$0xff]  ;;  %v3671_v25 = vld [vmem:[#allocation2] sm:$0xff]   ;;  %v354_v26 = vld [vmem:[%s4093_s20 + $0x8] sm:$0xff]   ;;  %s3821_s18 = sshll.u32 %s3898_s13, 4  ;;  %s3822_s18 = int_to_ptr.vmem [resolvable:$false] %s3821_s18 }
  0x4c   : > { %3462 = vmatprep.subr.bf16.mxu0 %v3666_v9  ;;  %v356_v27 = vld [vmem:[%s4093_s20 + $0x10] sm:$0xff]   ;;  %v4151_v28 = vld [vmem:[%s7040_s1 + $0x88] sm:$0xff]  ;;  %v4156_v29 = vld [vmem:[%s7040_s1 + $0x80] sm:$0xff]  ;;  %p3819_p4 = pnand %p3818_p12, %p3984_p5  ;;  %s3823_s21 = scalar_lea.vmem %s3822_s18, 4096 }
  0x4d   : > { %803 = vperm.xlu1 %3635, %v4071_v7   ;;  %798 = vperm.xlu0 %3634, %v4076_v8   ;;  %v4163_v30 = vld [vmem:[%s7040_s1 + $0x98] sm:$0xff]  ;;  %v4168_v31 = vld [vmem:[%s7040_s1 + $0x90] sm:$0xff]  ;;  %v360_v33 = vld [vmem:[%s4093_s20 + $0x20] sm:$0xff]   ;;  %p3824_p6 = scmp.lt.s32.totalorder %s6993_s10, %s3822_s18  ;;  %p3825_p9 = scmp.lt.s32.totalorder %s3823_s21, %s3817_s9 }
  0x4e   : > { %v358_v32 = vld [vmem:[%s4093_s20 + $0x18] sm:$0xff]   ;;  %v4177_v34 = vld [vmem:[%s7040_s1 + $0xa8] sm:$0xff]  ;;  %v4182_v35 = vld [vmem:[%s7040_s1 + $0xa0] sm:$0xff]  ;;  %p3820_p7 = pneg %p3819_p4 }
  0x4f   : > { %3463 = vmatpush3.bf16.msra.mxu0 %v3666_v9  ;;  %v4189_v36 = vld [vmem:[%s7040_s1 + $0xb8] sm:$0xff]  ;;  %v4194_v37 = vld [vmem:[%s7040_s1 + $0xb0] sm:$0xff]  ;;  %v362_v38 = vld [vmem:[%s4093_s20 + $0x28] sm:$0xff]   ;;  %p3826_p8 = por %p3825_p9, %p3824_p6 }
  0x50   : > { %3464 = vmatprep.subr.bf16.mxu0 %v3667_v12  ;;  %v364_v39 = vld [vmem:[%s4093_s20 + $0x30] sm:$0xff]   ;;  %v4203_v40 = vld [vmem:[%s7040_s1 + $0xc8] sm:$0xff]  ;;  %v4208_v41 = vld [vmem:[%s7040_s1 + $0xc0] sm:$0xff] }
  0x51   : > { %813 = vperm.xlu1 %3635, %v4083_v10   ;;  %808 = vperm.xlu0 %3634, %v4088_v11   ;;  %v4215_v42 = vld [vmem:[%s7040_s1 + $0xd8] sm:$0xff]  ;;  %v4220_v43 = vld [vmem:[%s7040_s1 + $0xd0] sm:$0xff]  ;;  %v368_v45 = vld [vmem:[%s4093_s20 + $0x40] sm:$0xff]   ;;  %p3827_p11 = pnand %p3826_p8, %p3820_p7 }
  0x52   : > { %7235 = vst [vmem:[#allocation12_spill] sm:$0xff] %v4220_v43  ;;  %v366_v44 = vld [vmem:[%s4093_s20 + $0x38] sm:$0xff]   ;;  %v4229_v46 = vld [vmem:[%s7040_s1 + $0xe8] sm:$0xff]  ;;  %v4234_v47 = vld [vmem:[%s7040_s1 + $0xe0] sm:$0xff] }
  0x53   : > { %3465 = vmatpush3.bf16.msra.mxu0 %v3667_v12  ;;  %v4241_v48 = vld [vmem:[%s7040_s1 + $0xf8] sm:$0xff]  ;;  %v774_v49 = vld [vmem:[%s7040_s1 + $0xf0] sm:$0xff]  ;;  %v370_v50 = vld [vmem:[%s4093_s20 + $0x48] sm:$0xff]  }
  0x54   : > { %3466 = vmatprep.subr.bf16.mxu0 %v3668_v15  ;;  %v372_v51 = vld [vmem:[%s4093_s20 + $0x50] sm:$0xff]   ;;  %v374_v54 = vld [vmem:[%s4093_s20 + $0x58] sm:$0xff]   ;;  %v376_v55 = vld [vmem:[%s4093_s20 + $0x60] sm:$0xff]  }
  0x55   : > { %823 = vperm.xlu1 %3635, %v4100_v13   ;;  %818 = vperm.xlu0 %3634, %v4105_v14   ;;  %v378_v56 = vld [vmem:[%s4093_s20 + $0x68] sm:$0xff]   ;;  %v380_v57 = vld [vmem:[%s4093_s20 + $0x70] sm:$0xff]   ;;  %v382_v58 = vld [vmem:[%s4093_s20 + $0x78] sm:$0xff]  }
  0x57   : > { %3467 = vmatpush3.bf16.msra.mxu0 %v3668_v15 }
  0x58   : > { %3468 = vmatprep.subr.bf16.mxu0 %v3669_v19 }
  0x59   : > { %833 = vperm.xlu1 %3635, %v4113_v17   ;;  %828 = vperm.xlu0 %3634, %v4118_v18  }
  0x5b   : > { %3469 = vmatpush3.bf16.msra.mxu0 %v3669_v19 }
  0x5c   : > { %3470 = vmatprep.subr.bf16.mxu0 %v3670_v22 }
  0x5d   : > { %843 = vperm.xlu1 %3635, %v4125_v20   ;;  %838 = vperm.xlu0 %3634, %v4130_v21  }
  0x5f   : > { %3471 = vmatpush3.bf16.msra.mxu0 %v3670_v22 }
  0x60   : > { %3472 = vmatprep.subr.bf16.mxu0 %v3671_v25 }
  0x61   : > { %853 = vperm.xlu1 %3635, %v4135_v23   ;;  %848 = vperm.xlu0 %3634, %v4140_v24  }
  0x63   : > { %3473 = vmatpush3.bf16.msra.mxu0 %v3671_v25 }
  0x65   : > { %863 = vperm.xlu1 %3635, %v4151_v28   ;;  %858 = vperm.xlu0 %3634, %v4156_v29  }
  0x66   : > { %3475 = vmatmul.mubr.bf16.vlgmr.msra.gmra.mxu0 %v354_v26 }
  0x67   : > { %3478 = vmatprep.mubr.bf16.mxu0 %v356_v27 }
  0x69   : > { %873 = vperm.xlu1 %3635, %v4163_v30   ;;  %868 = vperm.xlu0 %3634, %v4168_v31  }
  0x6d   : > { %883 = vperm.xlu1 %3635, %v4177_v34   ;;  %878 = vperm.xlu0 %3634, %v4182_v35  }
  0x6e   : > { %3479 = vmatmul.mubr.bf16.gmra.mxu0 %v358_v32 }
  0x6f   : > { %3482 = vmatprep.mubr.bf16.mxu0 %v360_v33 }
  0x71   : > { %893 = vperm.xlu1 %3635, %v4189_v36   ;;  %888 = vperm.xlu0 %3634, %v4194_v37  }
  0x75   : > { %903 = vperm.xlu1 %3635, %v4203_v40   ;;  %898 = vperm.xlu0 %3634, %v4208_v41  }
  0x76   : > { %3483 = vmatmul.mubr.bf16.gmra.mxu0 %v362_v38 }
  0x77   : > { %3486 = vmatprep.mubr.bf16.mxu0 %v364_v39 }
  0x79   : > { %913 = vperm.xlu1 %3635, %v4215_v42   ;;  %908 = vperm.xlu0 %3634, %v4220_v43  }
  0x7d   : > { %923 = vperm.xlu1 %3635, %v4229_v46   ;;  %918 = vperm.xlu0 %3634, %v4234_v47  }
  0x7e   : > { %3487 = vmatmul.mubr.bf16.gmra.mxu0 %v366_v44 }
  0x7f   : > { %3490 = vmatprep.mubr.bf16.mxu0 %v368_v45 }
  0x81   : > { %933 = vperm.xlu1 %3635, %v4241_v48   ;;  %928 = vperm.xlu0 %3634, %v774_v49  }
  0x85   : > { %3636 = vset.pattern.permute.xlu1 %v7049_v52  ;;  %3637 = vset.pattern.permute.xlu0 %v7051_v53 }
  0x86   : > { %973 = vperm.xlu1 %3636, %v4064_v5   ;;  %1198 = vperm.xlu0 %3637, %v4052_v2  }
  0x87   : > { %3491 = vmatmul.mubr.bf16.gmra.mxu0 %v370_v50 }
  0x88   : > { %3494 = vmatprep.mubr.bf16.mxu0 %v372_v51 }
  0x8a   : > { %977 = vperm.xlu1 %3636, %v4047_v1   ;;  %1210 = vperm.xlu0 %3637, %v4059_v4  }
  0x8e   : > { %985 = vperm.xlu1 %3636, %v4076_v8   ;;  %1214 = vperm.xlu0 %3637, %v4076_v8  }
  0x8f   : > { %3495 = vmatmul.mubr.bf16.gmra.mxu0 %v374_v54 }
  0x90   : > { %3498 = vmatprep.mubr.bf16.mxu0 %v376_v55  ;;  %v3688_v55 = vld [vmem:[#allocation7 + $0x38] sm:$0xff]  }
  0x91   : > { %3506 = vmatprep.subr.bf16.mxu1 %v3688_v55 }
  0x92   : > { %993 = vperm.xlu1 %3636, %v4088_v11   ;;  %1226 = vperm.xlu0 %3637, %v4083_v10  }
  0x93   : > { %3507 = vmatpush3.bf16.msra.mxu1 %v3688_v55  ;;  %v1162_v55 = vlaneseq }
  0x96   : > { %1001 = vperm.xlu1 %3636, %v4105_v14   ;;  %1230 = vperm.xlu0 %3637, %v4105_v14  }
  0x97   : > { %3499 = vmatmul.mubr.bf16.gmra.mxu0 %v378_v56 }
  0x98   : > { %3502 = vmatprep.mubr.bf16.mxu0 %v380_v57  ;;  %v3689_v57 = vld [vmem:[#allocation7 + $0x30] sm:$0xff]  }
  0x99   : > { %3508 = vmatprep.subr.bf16.mxu1 %v3689_v57 }
  0x9a   : > { %1093 = vperm.xlu1 %3636, %v4241_v48   ;;  %1242 = vperm.xlu0 %3637, %v4113_v17  }
  0x9b   : > { %3509 = vmatpush3.bf16.msra.mxu1 %v3689_v57  ;;  %v4447_v57 = vshrl.u32 %v1162_v55, 7 }
  0x9d   : > { %v1620_v55 = vsub.s32 1, %v4447_v57  ;;  %vm1164_vm0 = vcmp.lt.s32.totalorder %v4447_v57, 1  ;;  %vm1389_vm1 = vcmp.lt.s32.totalorder %v4447_v57, 7 }
  0x9e   : > { %3638 = vset.pattern.permute.xlu1 %v7051_v53  ;;  %3644 = vset.pattern.permute.xlu0 %v7053_v59 }
  0x9f   : > { %1202 = vperm.xlu1 %3638, %v4064_v5   ;;  %1427 = vperm.xlu0 %3644, %v4064_v5  }
  0xa0   : > { %3503 = vmatmul.mubr.bf16.gmra.mxu0 %v382_v58  ;;  %v3690_v58 = vld [vmem:[#allocation7 + $0x28] sm:$0xff]  }
  0xa1   : > { %3510 = vmatprep.subr.bf16.mxu1 %v3690_v58 }
  0xa2   : > { %3511 = vmatpush3.bf16.msra.mxu1 %v3690_v58 }
  0xa3   : > { %1206 = vperm.xlu1 %3638, %v4047_v1   ;;  %1443 = vperm.xlu0 %3644, %v4071_v7  }
  0xa7   : > { %3639 = vset.pattern.permute.xlu1 %v7053_v59  ;;  %1459 = vperm.xlu0 %3644, %v4100_v13  }
  0xa8   : > { %1423 = vperm.xlu1 %3639, %v4052_v2  }
  0xab   : > { %1471 = vperm.xlu0 %3644, %v4130_v21  }
  0xac   : > { %1431 = vperm.xlu1 %3639, %v4047_v1  }
  0xaf   : > { %1483 = vperm.xlu0 %3644, %v4135_v23  }
  0xb0   : > { %1435 = vperm.xlu1 %3639, %v4059_v4  }
  0xb3   : > { %1491 = vperm.xlu0 %3644, %v4151_v28  }
  0xb4   : > { %3640 = vset.pattern.permute.xlu1 %v7051_v53 }
  0xb5   : > { %1218 = vperm.xlu1 %3640, %v4071_v7  }
  0xb7   : > { %1503 = vperm.xlu0 %3644, %v4182_v35  }
  0xb9   : > { %1222 = vperm.xlu1 %3640, %v4088_v11  }
  0xbb   : > { %1515 = vperm.xlu0 %3644, %v4189_v36  }
  0xbd   : > { %3641 = vset.pattern.permute.xlu1 %v7053_v59 }
  0xbe   : > { %1439 = vperm.xlu1 %3641, %v4076_v8  }
  0xbf   : > { %1523 = vperm.xlu0 %3644, %v4203_v40  }
  0xc0   : > { %v4290_v60 = vpop.permute.xlu1 %788  ;;  %v4292_v61 = vpop.permute.xlu0 %778 }
  0xc1   : > { %7236 = vst [vmem:[#allocation13_spill] sm:$0xff] %v4292_v61 }
  0xc2   : > { %1447 = vperm.xlu1 %3641, %v4088_v11  }
  0xc3   : > { %3658 = vset.pattern.permute.xlu0 %v7049_v52 }
  0xc4   : > { %v4296_v62 = vpop.permute.xlu1 %793  ;;  %969 = vperm.xlu0 %3658, %v4052_v2   ;;  %v4299_v63 = vpop.permute.xlu0 %783 }
  0xc5   : > { %7237 = vst [vmem:[#allocation14_spill] sm:$0xff] %v4299_v63 }
  0xc6   : > { %1451 = vperm.xlu1 %3641, %v4083_v10  }
  0xc8   : > { %v4302_v0 = vpop.permute.xlu1 %803  ;;  %981 = vperm.xlu0 %3658, %v4059_v4   ;;  %v4305_v1 = vpop.permute.xlu0 %798 }
  0xca   : > { %3642 = vset.pattern.permute.xlu1 %v7049_v52 }
  0xcb   : > { %1013 = vperm.xlu1 %3642, %v4113_v17  }
  0xcc   : > { %v4309_v3 = vpop.permute.xlu1 %813  ;;  %989 = vperm.xlu0 %3658, %v4071_v7   ;;  %v4312_v5 = vpop.permute.xlu0 %808 }
  0xcf   : > { %1017 = vperm.xlu1 %3642, %v4130_v21  }
  0xd0   : > { %v4315_v2 = vpop.permute.xlu1 %823  ;;  %997 = vperm.xlu0 %3658, %v4083_v10   ;;  %v4318_v6 = vpop.permute.xlu0 %818 }
  0xd1   : > { %7238 = vst [vmem:[#allocation15_spill] sm:$0xff] %v4315_v2 }
  0xd3   : > { %3643 = vset.pattern.permute.xlu1 %v7051_v53 }
  0xd4   : > { %v4321_v4 = vpop.permute.xlu1 %833  ;;  %1234 = vperm.xlu1 %3643, %v4100_v13   ;;  %1005 = vperm.xlu0 %3658, %v4100_v13   ;;  %v4325_v8 = vpop.permute.xlu0 %828 }
  0xd5   : > { %7239 = vst [vmem:[#allocation16_spill] sm:$0xff] %v4325_v8 }
  0xd8   : > { %v4327_v7 = vpop.permute.xlu1 %843  ;;  %1238 = vperm.xlu1 %3643, %v4118_v18   ;;  %1009 = vperm.xlu0 %3658, %v4118_v18   ;;  %v4331_v9 = vpop.permute.xlu0 %838 }
  0xd9   : > { %7240 = vst [vmem:[#allocation17_spill] sm:$0xff] %v4327_v7  ;;  %7241 = vst [vmem:[#allocation18_spill] sm:$0xff] %v4331_v9 }
  0xdc   : > { %v4333_v10 = vpop.permute.xlu1 %853  ;;  %3645 = vset.pattern.permute.xlu1 %v7053_v59  ;;  %1021 = vperm.xlu0 %3658, %v4125_v20   ;;  %v4337_v11 = vpop.permute.xlu0 %848 }
  0xdd   : > { %7242 = vst [vmem:[#allocation19_spill] sm:$0xff] %v4333_v10  ;;  %7243 = vst [vmem:[#allocation20_spill] sm:$0xff] %v4337_v11  ;;  %1455 = vperm.xlu1 %3645, %v4105_v14  }
  0xe0   : > { %v4340_v12 = vpop.permute.xlu1 %863  ;;  %1033 = vperm.xlu0 %3658, %v4156_v29   ;;  %v4343_v13 = vpop.permute.xlu0 %858 }
  0xe1   : > { %7244 = vst [vmem:[#allocation21_spill] sm:$0xff] %v4340_v12  ;;  %7245 = vst [vmem:[#allocation22_spill] sm:$0xff] %v4343_v13  ;;  %1463 = vperm.xlu1 %3645, %v4118_v18   ;;  %v4452_v12 = vld [vmem:[%s7042_s3] ss:$0 sm:$0xff] }
  0xe4   : > { %v4346_v15 = vpop.permute.xlu1 %873  ;;  %1041 = vperm.xlu0 %3658, %v4168_v31   ;;  %v4349_v16 = vpop.permute.xlu0 %868 }
  0xe5   : > { %7246 = vst [vmem:[#allocation23_spill] sm:$0xff] %v4346_v15  ;;  %7247 = vst [vmem:[#allocation24_spill] sm:$0xff] %v4349_v16  ;;  %1467 = vperm.xlu1 %3645, %v4113_v17   ;;  %v7274_v16 = vmov 1  }
  0xe8   : > { %v4352_v19 = vpop.permute.xlu1 %883  ;;  %1053 = vperm.xlu0 %3658, %v4177_v34   ;;  %v4355_v14 = vpop.permute.xlu0 %878 }
  0xe9   : > { %7248 = vst [vmem:[#allocation25_spill] sm:$0xff] %v4352_v19  ;;  %7249 = vst [vmem:[#allocation26_spill] sm:$0xff] %v4355_v14  ;;  %3646 = vset.pattern.permute.xlu1 %v7049_v52 }
  0xea   : > { %1025 = vperm.xlu1 %3646, %v4140_v24  }
  0xec   : > { %v4359_v22 = vpop.permute.xlu1 %893  ;;  %1065 = vperm.xlu0 %3658, %v4208_v41   ;;  %v4362_v18 = vpop.permute.xlu0 %888 }
  0xed   : > { %7250 = vst [vmem:[#allocation27_spill] sm:$0xff] %v4359_v22  ;;  %7251 = vst [vmem:[#allocation28_spill] sm:$0xff] %v4362_v18  ;;  %v2052_v22 = vsub.s32 5, %v4447_v57 }
  0xee   : > { %1029 = vperm.xlu1 %3646, %v4135_v23  }
  0xf0   : > { %v4365_v25 = vpop.permute.xlu1 %903  ;;  %1073 = vperm.xlu0 %3658, %v4220_v43   ;;  %v4368_v17 = vpop.permute.xlu0 %898 }
  0xf1   : > { %7252 = vst [vmem:[#allocation29_spill] sm:$0xff] %v4365_v25  ;;  %7253 = vst [vmem:[#allocation30_spill] sm:$0xff] %v4368_v17  ;;  %v3692_v25 = vld [vmem:[#allocation7 + $0x18] sm:$0xff]   ;;  %v1948_v17 = vsub.s32 3, %v4447_v57 }
  0xf2   : > { %3647 = vset.pattern.permute.xlu1 %v7051_v53 }
  0xf3   : > { %1246 = vperm.xlu1 %3647, %v4130_v21  }
  0xf4   : > { %v4372_v26 = vpop.permute.xlu1 %913  ;;  %1085 = vperm.xlu0 %3658, %v4229_v46   ;;  %v4375_v27 = vpop.permute.xlu0 %908 }
  0xf5   : > { %7254 = vst [vmem:[#allocation31_spill] sm:$0xff] %v4372_v26  ;;  %7255 = vst [vmem:[#allocation32_spill] sm:$0xff] %v4375_v27  ;;  %v1128_v26 = vld [vmem:[#allocation5] sm:$0xff]  ;;  %v1688_v27 = vsub.s32 2, %v4447_v57 }
  0xf6   : > { %v4481_v11 = vrot.slane %v1128_v26, %v1620_v55 }
  0xf7   : > { %1254 = vperm.xlu1 %3647, %v4140_v24  }
  0xf8   : > { %v4378_v32 = vpop.permute.xlu1 %923  ;;  %3659 = vset.pattern.permute.xlu0 %v7051_v53  ;;  %v4381_v33 = vpop.permute.xlu0 %918 }
  0xf9   : > { %7256 = vst [vmem:[#allocation33_spill] sm:$0xff] %v4378_v32  ;;  %7257 = vst [vmem:[#allocation34_spill] sm:$0xff] %v4381_v33  ;;  %1250 = vperm.xlu0 %3659, %v4125_v20   ;;  %v1584_v33 = vsub.s32 0, %v4447_v57 }
  0xfb   : > { %1258 = vperm.xlu1 %3647, %v4135_v23   ;;  %v4479_v10 = vrot.slane %v1128_v26, %v1584_v33 }
  0xfc   : > { %v4385_v38 = vpop.permute.xlu1 %933  ;;  %v4387_v21 = vpop.permute.xlu0 %928 }
  0xfd   : > { %7258 = vst [vmem:[#allocation35_spill] sm:$0xff] %v4385_v38  ;;  %7259 = vst [vmem:[#allocation36_spill] sm:$0xff] %v4387_v21  ;;  %1262 = vperm.xlu0 %3659, %v4156_v29  }
  0xff   : > { %3648 = vset.pattern.permute.xlu1 %v7053_v59 }
 0x100   : > { %1475 = vperm.xlu1 %3648, %v4125_v20  }
 0x101   : > { %v4392_v39 = vpop.permute.xlu1 %973  ;;  %1274 = vperm.xlu0 %3659, %v4163_v30   ;;  %v4395_v44 = vpop.permute.xlu0 %1198 }
 0x102   : > { %7260 = vst [vmem:[#allocation37_spill] sm:$0xff] %v4395_v44 }
 0x104   : > { %1479 = vperm.xlu1 %3648, %v4140_v24  }
 0x105   : > { %v4398_v45 = vpop.permute.xlu1 %977  ;;  %1282 = vperm.xlu0 %3659, %v4177_v34   ;;  %v4401_v23 = vpop.permute.xlu0 %1210 }
 0x106   : > { %7261 = vst [vmem:[#allocation38_spill] sm:$0xff] %v4401_v23 }
 0x108   : > { %3649 = vset.pattern.permute.xlu1 %v7049_v52 }
 0x109   : > { %v4404_v49 = vpop.permute.xlu1 %985  ;;  %1037 = vperm.xlu1 %3649, %v4151_v28   ;;  %1294 = vperm.xlu0 %3659, %v4208_v41   ;;  %v4408_v20 = vpop.permute.xlu0 %1214 }
 0x10d   : > { %v4410_v50 = vpop.permute.xlu1 %993  ;;  %1045 = vperm.xlu1 %3649, %v4163_v30   ;;  %1306 = vperm.xlu0 %3659, %v4215_v42   ;;  %v4414_v24 = vpop.permute.xlu0 %1226 }
 0x111   : > { %v4416_v51 = vpop.permute.xlu1 %1001  ;;  %1049 = vperm.xlu1 %3649, %v4182_v35   ;;  %1314 = vperm.xlu0 %3659, %v4229_v46   ;;  %v4420_v54 = vpop.permute.xlu0 %1230 }
 0x112   : > { %7262 = vst [vmem:[#allocation39_spill] sm:$0xff] %v4420_v54 }
 0x115   : > { %v4422_v41 = vpop.permute.xlu1 %1093  ;;  %3650 = vset.pattern.permute.xlu1 %v7051_v53  ;;  %3662 = vset.pattern.permute.xlu0 %v7053_v59  ;;  %v4426_v56 = vpop.permute.xlu0 %1242  ;;  %v3691_v53 = vld [vmem:[#allocation7 + $0x20] sm:$0xff]  }
 0x116   : > { %7263 = vst [vmem:[#allocation40_spill] sm:$0xff] %v4426_v56  ;;  %1266 = vperm.xlu1 %3650, %v4151_v28   ;;  %1535 = vperm.xlu0 %3662, %v4234_v47   ;;  %v7267_v28 = vmov 3   ;;  %v7288_v56 = vmov 2  }
 0x117   : > { %3512 = vmatprep.subr.bf16.mxu1 %v3691_v53 }
 0x118   : > { %3513 = vmatpush3.bf16.msra.mxu1 %v3691_v53 }
 0x119   : > { %3514 = vmatprep.subr.bf16.mxu1 %v3692_v25 }
 0x11a   : > { %v4430_v46 = vpop.permute.xlu1 %1202  ;;  %1270 = vperm.xlu1 %3650, %v4168_v31   ;;  %1547 = vperm.xlu0 %3662, %v4241_v48   ;;  %v4434_v52 = vpop.permute.xlu0 %1427 }
 0x11b   : > { %7264 = vst [vmem:[#allocation41_spill] sm:$0xff] %v4430_v46  ;;  %7265 = vst [vmem:[#allocation42_spill] sm:$0xff] %v4434_v52  ;;  %v2344_v52 = vsub.s32 6, %v4447_v57 }
 0x11c   : > { %3515 = vmatpush3.bf16.msra.mxu1 %v3692_v25 }
 0x11d   : > { %v4497_v55 = vrot.slane %v1128_v26, %v2344_v52 }
 0x11e   : > { %v4436_v59 = vpop.permute.xlu1 %1206  ;;  %3651 = vset.pattern.permute.xlu1 %v7267_v28  ;;  %v4439_v21 = vpop.permute.xlu0 %1443 }
 0x11f   : > { %7266 = vst [vmem:[#allocation43_spill] sm:$0xff] %v4436_v59  ;;  %1487 = vperm.xlu1 %3651, %v4156_v29  }
 0x122   : > { %v4442_v18 = vpop.permute.xlu0 %1459 }
 0x123   : > { %7268 = vst [vmem:[#allocation44_spill] sm:$0xff] %v4442_v18  ;;  %1495 = vperm.xlu1 %3651, %v4168_v31   ;;  %v4445_v48 = vpop.permute.xlu1 %1423  ;;  %v1984_v31 = vsub.s32 4, %v4447_v57 }
 0x124   : > { %7269 = vst [vmem:[#allocation45_spill] sm:$0xff] %v4445_v48  ;;  %v2380_v48 = vsub.s32 7, %v4447_v57 }
 0x126   : > { %v4454_v29 = vpop.permute.xlu0 %1471  ;;  %v3476_v32 = vpop.f32.mrf.mxu0 }
 0x127   : > { %7270 = vst [vmem:[#allocation46_spill] sm:$0xff] %v4454_v29  ;;  %1499 = vperm.xlu1 %3651, %v4163_v30   ;;  %v4457_v58 = vpop.permute.xlu1 %1431  ;;  %v594_v53 = vadd.f32 %v3476_v32, %v4452_v12  ;;  %v3693_v30 = vld [vmem:[#allocation7 + $0x10] sm:$0xff]   ;;  %v4473_v32 = vrot.slane %v1128_v26, %v1984_v31  ;;  %v4490_v31 = vrot.slane %v1128_v26, %v2052_v22  ;;  %v3694_v29 = vld [vmem:[#allocation7 + $0x8] sm:$0xff]  }
 0x128   : > { %7271 = vst [vmem:[#allocation47_spill] sm:$0xff] %v4457_v58  ;;  %v585_v59 = vpop.f32.mrf.mxu0  ;;  %3516 = vmatprep.subr.bf16.mxu1 %v3693_v30 }
 0x129   : > { %v4468_v19 = vmax.f32 %v594_v53, 0.0  ;;  %v586_v14 = vadd.f32 %v4452_v12, %v585_v59  ;;  %v4486_v59 = vrot.slane %v1128_v26, %v1688_v27  ;;  %3517 = vmatpush3.bf16.msra.mxu1 %v3693_v30 }
 0x12a   : > { %v4471_v15 = vpop.permute.xlu0 %1483  ;;  %v3477_v25 = vpop.f32.mrf.mxu0  ;;  %3518 = vmatprep.subr.bf16.mxu1 %v3694_v29 }
 0x12b   : > { %7272 = vst [vmem:[#allocation48_spill] sm:$0xff] %v4468_v19  ;;  %7273 = vst [vmem:[#allocation49_spill] sm:$0xff] %v4471_v15  ;;  %3652 = vset.pattern.permute.xlu1 %v7274_v16  ;;  %v4476_v13 = vpop.permute.xlu1 %1435  ;;  %v4483_v53 = vmax.f32 %v586_v14, 0.0  ;;  %v4488_v15 = vrot.slane %v1128_v26, %v1948_v17  ;;  %v597_v7 = vadd.f32 %v3477_v25, %v4452_v12  ;;  %v1756_v63 = vrot.slane %v4468_v19, 7 }
 0x12c   : > { %1057 = vperm.xlu1 %3652, %v4194_v37   ;;  %v588_v38 = vpop.f32.mrf.mxu0  ;;  %v4495_v33 = vmul.f32 %v4305_v1, %v4468_v19  ;;  %v4499_v14 = vrot.slane %v1128_v26, %v2380_v48  ;;  %v4512_v1 = vmul.f32 %v4473_v32, %v4468_v19 }
 0x12d   : > { %7275 = vst [vmem:[#allocation50_spill] sm:$0xff] %v4483_v53  ;;  %v4505_v22 = vmul.f32 %v4290_v60, %v4483_v53  ;;  %v589_v17 = vadd.f32 %v4452_v12, %v588_v38  ;;  %v4516_v48 = vmax.f32 %v597_v7, 0.0  ;;  %3519 = vmatpush3.bf16.msra.mxu1 %v3694_v29 }
 0x12e   : > { %7276 = vst [vmem:[#allocation51_spill] sm:$0xff] %v4499_v14  ;;  %v4508_v30 = vpop.permute.xlu0 %1491  ;;  %7279 = vst [vmem:[#allocation54_spill] sm:$0xff] %v4512_v1  ;;  %v3480_v25 = vpop.f32.mrf.mxu0  ;;  %v1361_v1 = vrot.slane %v4495_v33, 1  ;;  %v4531_v53 = vmul.f32 %v4481_v11, %v4495_v33 }
 0x12f   : > { %7277 = vst [vmem:[#allocation52_spill] sm:$0xff] %v4505_v22  ;;  %7278 = vst [vmem:[#allocation53_spill] sm:$0xff] %v4508_v30  ;;  %v4519_v27 = vmax.f32 %v589_v17, 0.0  ;;  %v610_v60 = vadd.f32 %v3480_v25, %v4452_v12  ;;  %v1134_v30 = vrot.slane %v4495_v33, 7  ;;  %v4536_v25 = vmul.f32 %v4392_v39, %v4516_v48 }
 0x130   : > { %7280 = vst [vmem:[#allocation55_spill] sm:$0xff] %v4516_v48  ;;  %1061 = vperm.xlu1 %3652, %v4189_v36   ;;  %v4523_v38 = vpop.permute.xlu1 %1218  ;;  %v601_v26 = vpop.f32.mrf.mxu0  ;;  %v4548_v33 = vmul.f32 %v4473_v32, %v4516_v48  ;;  %v4554_v39 = vmul.f32 %v4302_v0, %v4516_v48  ;;  %v7289_v0 = vrot.slane %v4516_v48, 7 }
 0x131   : > { %7281 = vst [vmem:[#allocation56_spill] sm:$0xff] %v4519_v27  ;;  %7282 = vst [vmem:[#allocation57_spill] sm:$0xff] %v4523_v38  ;;  %v4541_v9 = vmul.f32 %v4296_v62, %v4519_v27  ;;  %v4550_v17 = vmax.f32 %v610_v60, 0.0  ;;  %v602_v61 = vadd.f32 %v4452_v12, %v601_v26  ;;  %v4559_v62 = vmul.f32 %v4422_v41, %v4519_v27 }
 0x132   : > { %7283 = vst [vmem:[#allocation58_spill] sm:$0xff] %v4536_v25  ;;  %v4544_v7 = vpop.permute.xlu0 %1503  ;;  %7286 = vst [vmem:[#allocation61_spill] sm:$0xff] %v4548_v33  ;;  %v3481_v22 = vpop.f32.mrf.mxu0  ;;  %v4571_v26 = vsel %vm1164_vm0, %v1756_v63, %v7289_v0  ;;  %v7291_v41 = vrot.slane %v4519_v27, 7  ;;  %v1135_v18 = vrot.slane %v4554_v39, 7 }
 0x133   : > { %7284 = vst [vmem:[#allocation59_spill] sm:$0xff] %v4541_v9  ;;  %7285 = vst [vmem:[#allocation60_spill] sm:$0xff] %v4544_v7  ;;  %v613_v7 = vadd.f32 %v3481_v22, %v4452_v12  ;;  %v4584_v8 = vmul.f32 %v4404_v49, %v4550_v17  ;;  %v7294_v0 = vrot.slane %v4541_v9, 7  ;;  %v716_v54 = vmax.f32 %v602_v61, 0.0 }
 0x134   : > { %7287 = vst [vmem:[#allocation62_spill] sm:$0xff] %v4559_v62  ;;  %3653 = vset.pattern.permute.xlu1 %v7288_v56  ;;  %v4564_v33 = vpop.permute.xlu1 %1222  ;;  %7290 = vst [vmem:[#allocation63_spill] sm:$0xff] %v4571_v26  ;;  %v4577_v52 = vsel %vm1164_vm0, %v7291_v41, %v1756_v63  ;;  %v604_v60 = vpop.f32.mrf.mxu0  ;;  %v1191_v22 = vsel %vm1164_vm0, %v1134_v30, %v1135_v18  ;;  %v7296_v61 = vrot.slane %v4541_v9, 1  ;;  %v7302_v9 = vrot.slane %v4516_v48, 7 }
 0x135   : > { %7292 = vst [vmem:[#allocation64_spill] sm:$0xff] %v4577_v52  ;;  %1278 = vperm.xlu1 %3653, %v4182_v35   ;;  %7293 = vst [vmem:[#allocation65_spill] sm:$0xff] %v4584_v8  ;;  %v1192_v26 = vsel %vm1164_vm0, %v7294_v0, %v1134_v30  ;;  %v605_v63 = vadd.f32 %v4452_v12, %v604_v60  ;;  %v7078_v52 = vrot.slane %v4554_v39, 1  ;;  %v1758_v27 = vrot.slane %v716_v54, 7 }
 0x136   : > { %v3484_v35 = vpop.f32.mrf.mxu0  ;;  %v1329_v29 = vmul.f32 %v4408_v20, %v1192_v26  ;;  %v1330_v49 = vmul.f32 %v4523_v38, %v1191_v22  ;;  %v4597_v2 = vmax.f32 %v613_v7, 0.0  ;;  %v4599_v43 = vpop.permute.xlu0 %1515  ;;  %v1417_v60 = vsel %vm1389_vm1, %v7296_v61, %v1361_v1 }
 0x137   : > { %7295 = vst [vmem:[#allocation66_spill] sm:$0xff] %v4599_v43  ;;  %v4606_v0 = vmul.f32 %v4312_v5, %v716_v54  ;;  %v4608_v30 = vmax.f32 %v605_v63, 0.0  ;;  %v626_v26 = vadd.f32 %v3484_v35, %v4452_v12  ;;  %v1416_v7 = vsel %vm1389_vm1, %v1361_v1, %v7078_v52 }
 0x138   : > { %v617_v41 = vpop.f32.mrf.mxu0  ;;  %v1591_v43 = vmul.f32 %v4479_v10, %v1330_v49  ;;  %v1627_v5 = vmul.f32 %v4481_v11, %v4554_v39  ;;  %v1590_v61 = vmul.f32 %v4479_v10, %v1329_v29  ;;  %v4624_v35 = vmul.f32 %v4398_v45, %v716_v54  ;;  %v3695_v45 = vld [vmem:[#allocation7] sm:$0xff]  }
 0x139   : > { %1286 = vperm.xlu1 %3653, %v4194_v37   ;;  %v4612_v22 = vpop.permute.xlu1 %1439  ;;  %v7081_v38 = vrot.slane %v4606_v0, 7  ;;  %v4629_v58 = vmul.f32 %v4476_v13, %v1417_v60  ;;  %v1628_v49 = vmul.f32 %v4481_v11, %v4606_v0  ;;  %v1759_v52 = vrot.slane %v4608_v30, 7  ;;  %3520 = vmatprep.subr.bf16.mxu1 %v3695_v45 }
 0x13a   : > { %v1554_v63 = vmul.f32 %v4612_v22, %v1416_v7  ;;  %7297 = vst [vmem:[#allocation67_spill] sm:$0xff] %v4624_v35  ;;  %v3485_v1 = vpop.f32.mrf.mxu0  ;;  %v4636_v7 = vmul.f32 %v4473_v32, %v4608_v30  ;;  %v4638_v29 = vmax.f32 %v626_v26, 0.0  ;;  %v4640_v56 = vadd.f32 %v1627_v5, %v1591_v43  ;;  %3521 = vmatpush3.bf16.msra.mxu1 %v3695_v45 }
 0x13b   : > { %7298 = vst [vmem:[#allocation68_spill] sm:$0xff] %v4629_v58  ;;  %v1190_v60 = vsel %vm1164_vm0, %v1135_v18, %v7081_v38  ;;  %v1813_v58 = vsel %vm1164_vm0, %v7302_v9, %v1758_v27  ;;  %v1854_v23 = vrot.slane %v716_v54, 1  ;;  %v1855_v38 = vrot.slane %v4608_v30, 1 }
 0x13c   : > { %7299 = vst [vmem:[#allocation69_spill] sm:$0xff] %v4636_v7  ;;  %7300 = vst [vmem:[#allocation70_spill] sm:$0xff] %v4638_v29  ;;  %v620_v8 = vpop.f32.mrf.mxu0  ;;  %v1331_v26 = vmul.f32 %v4564_v33, %v1190_v60  ;;  %v1658_v7 = vadd.f32 %v4531_v53, %v1590_v61  ;;  %v1694_v43 = vmul.f32 %v4486_v59, %v1554_v63 }
 0x13d   : > { %7301 = vst [vmem:[#allocation71_spill] sm:$0xff] %v4640_v56  ;;  %1290 = vperm.xlu1 %3653, %v4189_v36   ;;  %v1822_v5 = vmul.f32 %v1813_v58, %v4408_v20  ;;  %v4657_v18 = vmul.f32 %v4416_v51, %v4638_v29  ;;  %v1990_v9 = vmul.f32 %v4473_v32, %v716_v54  ;;  %v4662_v56 = vpop.permute.xlu0 %1523  ;;  %v7305_v58 = vrot.slane %v4516_v48, 1 }
 0x13e   : > { %v618_v36 = vadd.f32 %v4452_v12, %v617_v41  ;;  %7303 = vst [vmem:[#allocation72_spill] sm:$0xff] %v4662_v56  ;;  %v1592_v53 = vmul.f32 %v4479_v10, %v1331_v26  ;;  %v4667_v63 = vsel %vm1164_vm0, %v1758_v27, %v1759_v52  ;;  %v1908_v54 = vsel %vm1389_vm1, %v1854_v23, %v1855_v38  ;;  %v3488_v27 = vpop.f32.mrf.mxu0 }
 0x13f   : > { %7304 = vst [vmem:[#allocation73_spill] sm:$0xff] %v4667_v63  ;;  %v1909_v51 = vsel %vm1389_vm1, %v7305_v58, %v1854_v23  ;;  %v1954_v61 = vmul.f32 %v4488_v15, %v1822_v5  ;;  %v629_v45 = vadd.f32 %v3485_v1, %v4452_v12  ;;  %v4681_v60 = vmul.f32 %v4309_v3, %v4608_v30  ;;  %v4691_v63 = vpop.permute.xlu1 %1447 }
 0x140   : > { %v4676_v41 = vmax.f32 %v618_v36, 0.0  ;;  %v1726_v26 = vadd.f32 %v1694_v43, %v1658_v7  ;;  %v1918_v56 = vmul.f32 %v1908_v54, %v4612_v22  ;;  %v1363_v5 = vrot.slane %v4606_v0, 1  ;;  %v633_v54 = vpop.f32.mrf.mxu0 }
 0x141   : > { %3654 = vset.pattern.permute.xlu1 %v7267_v28  ;;  %v2022_v58 = vadd.f32 %v1990_v9, %v1954_v61  ;;  %v1660_v23 = vadd.f32 %v1628_v49, %v1592_v53  ;;  %v4689_v1 = vmul.f32 %v1909_v51, %v4476_v13  ;;  %v1364_v3 = vrot.slane %v4681_v60, 1  ;;  %v970_v61 = vpop.permute.xlu0 %969 }
 0x142   : > { %1507 = vperm.xlu1 %3654, %v4177_v34   ;;  %v2058_v48 = vmul.f32 %v4490_v31, %v1918_v56  ;;  %v4697_v7 = vmul.f32 %v4410_v50, %v4676_v41  ;;  %v7308_v43 = vrot.slane %v4550_v17, 7  ;;  %v1856_v49 = vrot.slane %v4550_v17, 1  ;;  %v4736_v29 = vpop.f32.mrf.mxu0 }
 0x143   : > { %7306 = vst [vmem:[#allocation74_spill] sm:$0xff] %v4689_v1  ;;  %v4704_v9 = vmax.f32 %v629_v45, 0.0  ;;  %v1414_v51 = vsel %vm1389_vm1, %v1363_v5, %v1364_v3  ;;  %v7309_v36 = vrot.slane %v4554_v39, 1  ;;  %v1857_v45 = vrot.slane %v4597_v2, 1 }
 0x144   : > { %7307 = vst [vmem:[#allocation75_spill] sm:$0xff] %v4697_v7  ;;  %v1811_v34 = vsel %vm1164_vm0, %v1759_v52, %v7308_v43  ;;  %v2090_v50 = vadd.f32 %v2058_v48, %v2022_v58  ;;  %v1556_v52 = vmul.f32 %v4691_v63, %v1414_v51  ;;  %v1907_v43 = vsel %vm1389_vm1, %v1855_v38, %v1856_v49 }
 0x145   : > { %v1824_v56 = vmul.f32 %v1811_v34, %v4564_v33  ;;  %v1415_v1 = vsel %vm1389_vm1, %v7309_v36, %v1363_v5  ;;  %v1992_v34 = vmul.f32 %v4473_v32, %v4550_v17  ;;  %v621_v48 = vadd.f32 %v4452_v12, %v620_v8 }
 0x146   : > { %1511 = vperm.xlu1 %3654, %v4194_v37   ;;  %v1696_v58 = vmul.f32 %v4486_v59, %v1556_v52  ;;  %v1906_v5 = vsel %vm1389_vm1, %v1856_v49, %v1857_v45  ;;  %v4728_v36 = vmul.f32 %v970_v61, %v4468_v19  ;;  %v4731_v37 = vmul.f32 %v4439_v21, %v1415_v1 }
 0x147   : > { %v1956_v53 = vmul.f32 %v4488_v15, %v1824_v56  ;;  %v1920_v38 = vmul.f32 %v1906_v5, %v4691_v63  ;;  %v4734_v56 = vmax.f32 %v621_v48, 0.0  ;;  %v4739_v8 = vmul.f32 %v1907_v43, %v4439_v21 }
 0x148   : > { %7310 = vst [vmem:[#allocation76_spill] sm:$0xff] %v4728_v36  ;;  %7311 = vst [vmem:[#allocation77_spill] sm:$0xff] %v4731_v37  ;;  %v2150_v52 = vrot.slane %v4728_v36, 7  ;;  %v7086_v49 = vrot.slane %v4536_v25, 7  ;;  %v7089_v61 = vrot.slane %v4559_v62, 7  ;;  %v4745_v1 = vadd.f32 %v2090_v50, %v1726_v26 }
 0x149   : > { %v2024_v51 = vadd.f32 %v1992_v34, %v1956_v53  ;;  %7312 = vst [vmem:[#allocation78_spill] sm:$0xff] %v4739_v8  ;;  %v1728_v39 = vadd.f32 %v1696_v58, %v1660_v23  ;;  %v2060_v53 = vmul.f32 %v4490_v31, %v1920_v38  ;;  %v4750_v34 = vmul.f32 %v4321_v4, %v4734_v56  ;;  %v636_v38 = vpop.f32.mrf.mxu0  ;;  %v982_v58 = vpop.permute.xlu0 %981 }
 0x14a   : > { %3655 = vset.pattern.permute.xlu1 %v7274_v16  ;;  %7313 = vst [vmem:[#allocation79_spill] sm:$0xff] %v4745_v1  ;;  %v2212_v43 = vsel %vm1164_vm0, %v2150_v52, %v7086_v49  ;;  %v2213_v26 = vsel %vm1164_vm0, %v7089_v61, %v2150_v52  ;;  %v4764_v50 = vmul.f32 %v4318_v6, %v4550_v17  ;;  %v4772_v52 = vpop.permute.xlu1 %1451  ;;  %v7314_v61 = vrot.slane %v4681_v60, 7 }
 0x14b   : > { %1069 = vperm.xlu1 %3655, %v4203_v40   ;;  %v2092_v4 = vadd.f32 %v2060_v53, %v2024_v51  ;;  %v2214_v48 = vmul.f32 %v2213_v26, %v4395_v44  ;;  %v2382_v5 = vmul.f32 %v4499_v14, %v4728_v36  ;;  %v642_v62 = vadd.f32 %v3488_v27, %v4452_v12 }
 0x14c   : > { %v7315_v6 = vrot.slane %v4606_v0, 7  ;;  %v7090_v53 = vrot.slane %v4764_v50, 1  ;;  %v4782_v26 = vmul.f32 %v2212_v43, %v4430_v46  ;;  %v1629_v27 = vmul.f32 %v4481_v11, %v4681_v60 }
 0x14d   : > { %v2346_v23 = vmul.f32 %v4497_v55, %v2214_v48  ;;  %v7318_v43 = vrot.slane %v4550_v17, 7  ;;  %v7320_v37 = vrot.slane %v4536_v25, 1  ;;  %v7321_v17 = vrot.slane %v4728_v36, 1 }
 0x14e   : > { %v1189_v51 = vsel %vm1164_vm0, %v7315_v6, %v7314_v61  ;;  %7316 = vst [vmem:[#allocation80_spill] sm:$0xff] %v4782_v26  ;;  %v1413_v0 = vsel %vm1389_vm1, %v1364_v3, %v7090_v53  ;;  %v7317_v61 = vrot.slane %v4597_v2, 7  ;;  %v7092_v6 = vrot.slane %v4676_v41, 1  ;;  %v3492_v53 = vpop.f32.mrf.mxu0 }
 0x14f   : > { %v1332_v49 = vmul.f32 %v4414_v24, %v1189_v51  ;;  %1077 = vperm.xlu1 %3655, %v4215_v42   ;;  %v1993_v51 = vmul.f32 %v4473_v32, %v4597_v2  ;;  %v4802_v1 = vadd.f32 %v2382_v5, %v2346_v23  ;;  %v1557_v42 = vmul.f32 %v4772_v52, %v1413_v0 }
 0x150   : > { %v1810_v48 = vsel %vm1164_vm0, %v7318_v43, %v7317_v61  ;;  %v4813_v61 = vsel %vm1389_vm1, %v7321_v17, %v7320_v37  ;;  %v1905_v23 = vsel %vm1389_vm1, %v1857_v45, %v7092_v6  ;;  %v634_v5 = vadd.f32 %v4452_v12, %v633_v54 }
 0x151   : > { %7319 = vst [vmem:[#allocation81_spill] sm:$0xff] %v4802_v1  ;;  %v1593_v8 = vmul.f32 %v4479_v10, %v1332_v49  ;;  %v1825_v3 = vmul.f32 %v1810_v48, %v4414_v24  ;;  %7322 = vst [vmem:[#allocation82_spill] sm:$0xff] %v4813_v61  ;;  %v1099_v49 = vmul.f32 %v982_v58, %v4608_v30  ;;  %v7097_v37 = vrot.slane %v4624_v35, 7  ;;  %v7323_v1 = vld [vmem:[#allocation65_spill] sm:$0xff]  ;;  %v1014_v58 = vpop.permute.xlu1 %1013  ;;  %v990_v61 = vpop.permute.xlu0 %989 }
 0x152   : > { %v1697_v43 = vmul.f32 %v4486_v59, %v1557_v42  ;;  %v1921_v48 = vmul.f32 %v1905_v23, %v4772_v52  ;;  %v2154_v26 = vrot.slane %v7323_v1, 7  ;;  %v7326_v25 = vmov 2  }
 0x153   : > { %v1661_v0 = vadd.f32 %v1629_v27, %v1593_v8  ;;  %v1957_v36 = vmul.f32 %v4488_v15, %v1825_v3  ;;  %1081 = vperm.xlu1 %3655, %v4234_v47   ;;  %v2153_v17 = vrot.slane %v1099_v49, 7  ;;  %v2249_v8 = vrot.slane %v1099_v49, 1  ;;  %v649_v27 = vpop.f32.mrf.mxu0 }
 0x154   : > { %v2061_v30 = vmul.f32 %v4490_v31, %v1921_v48  ;;  %v2250_v3 = vrot.slane %v7323_v1, 1  ;;  %v2385_v23 = vmul.f32 %v4499_v14, %v1099_v49  ;;  %v4844_v19 = vadd.f32 %v2092_v4, %v1728_v39 }
 0x155   : > { %v1729_v6 = vadd.f32 %v1697_v43, %v1661_v0  ;;  %v2025_v54 = vadd.f32 %v1993_v51, %v1957_v36  ;;  %v2209_v42 = vsel %vm1164_vm0, %v2153_v17, %v2154_v26  ;;  %v2210_v47 = vsel %vm1164_vm0, %v7097_v37, %v2153_v17  ;;  %v7324_v0 = vld [vmem:[#allocation38_spill] sm:$0xff]  ;;  %v3493_v39 = vpop.f32.mrf.mxu0  ;;  %v7334_v37 = vld [vmem:[#allocation12_spill] sm:$0xff] }
 0x156   : > { %v2217_v36 = vmul.f32 %v2210_v47, %v7324_v0  ;;  %v2218_v51 = vmul.f32 %v2209_v42, %v4408_v20  ;;  %v7325_v43 = vrot.slane %v4624_v35, 1  ;;  %7327 = vst [vmem:[#allocation83_spill] sm:$0xff] %v4844_v19  ;;  %v4846_v17 = vmax.f32 %v642_v62, 0.0  ;;  %v7330_v62 = vld [vmem:[#allocation47_spill] sm:$0xff] }
 0x157   : > { %v2093_v45 = vadd.f32 %v2061_v30, %v2025_v54  ;;  %3656 = vset.pattern.permute.xlu1 %v7326_v25  ;;  %v2305_v49 = vsel %vm1389_vm1, %v2249_v8, %v2250_v3  ;;  %v637_v54 = vadd.f32 %v4452_v12, %v636_v38  ;;  %v645_v47 = vadd.f32 %v4736_v29, %v4452_v12  ;;  %v652_v19 = vpop.f32.mrf.mxu0 }
 0x158   : > { %v2306_v48 = vsel %vm1389_vm1, %v7325_v43, %v2249_v8  ;;  %7328 = vst [vmem:[#allocation84_spill] sm:$0xff] %v4846_v17  ;;  %1298 = vperm.xlu1 %3656, %v4203_v40   ;;  %v2313_v30 = vmul.f32 %v2305_v49, %v4476_v13  ;;  %v2349_v42 = vmul.f32 %v4497_v55, %v2217_v36  ;;  %v4858_v4 = vmax.f32 %v634_v5, 0.0  ;;  %v4866_v40 = vld [vmem:[#allocation5 + $0x8] ss:$0 sm:$0xff]  ;;  %v1018_v36 = vpop.permute.xlu1 %1017 }
 0x159   : > { %v4852_v20 = vadd.f32 %v2093_v45, %v1729_v6  ;;  %v4861_v43 = vmul.f32 %v2306_v48, %v7330_v62  ;;  %v4863_v8 = vmax.f32 %v637_v54, 0.0  ;;  %v1101_v38 = vmul.f32 %v990_v61, %v4597_v2 }
 0x15a   : > { %v4869_v6 = vmul.f32 %v4497_v55, %v2218_v51  ;;  %v2417_v13 = vadd.f32 %v2385_v23, %v2349_v42  ;;  %v2156_v45 = vrot.slane %v4697_v7, 7  ;;  %v658_v29 = vadd.f32 %v3492_v53, %v4452_v12 }
 0x15b   : > { %7329 = vst [vmem:[#allocation85_spill] sm:$0xff] %v4852_v20  ;;  %7331 = vst [vmem:[#allocation86_spill] sm:$0xff] %v4861_v43  ;;  %v2453_v5 = vmul.f32 %v4866_v40, %v2313_v30  ;;  %v4875_v48 = vmul.f32 %v1014_v58, %v4863_v8  ;;  %v2155_v49 = vrot.slane %v1101_v38, 7  ;;  %v2251_v54 = vrot.slane %v1101_v38, 1 }
 0x15c   : > { %7332 = vst [vmem:[#allocation87_spill] sm:$0xff] %v4863_v8  ;;  %7333 = vst [vmem:[#allocation88_spill] sm:$0xff] %v4869_v6  ;;  %1302 = vperm.xlu1 %3656, %v7334_v37   ;;  %v4878_v61 = vmax.f32 %v645_v47, 0.0  ;;  %v2252_v51 = vrot.slane %v4697_v7, 1  ;;  %v2387_v23 = vmul.f32 %v4499_v14, %v1101_v38  ;;  %v650_v42 = vadd.f32 %v4452_v12, %v649_v27  ;;  %v7337_v7 = vld [vmem:[#allocation57_spill] sm:$0xff] }
 0x15d   : > { %v4883_v53 = vadd.f32 %v2453_v5, %v2417_v13  ;;  %v2207_v30 = vsel %vm1164_vm0, %v2155_v49, %v2156_v45  ;;  %v4887_v58 = vmax.f32 %v658_v29, 0.0  ;;  %v4890_v20 = vmul.f32 %v1018_v36, %v4846_v17  ;;  %v998_v13 = vpop.permute.xlu0 %997  ;;  %v7340_v29 = vld [vmem:[#allocation15_spill] sm:$0xff] }
 0x15e   : > { %7335 = vst [vmem:[#allocation12_spill] sm:$0xff] %v4878_v61  ;;  %v2208_v37 = vsel %vm1164_vm0, %v2154_v26, %v2155_v49  ;;  %v2220_v47 = vmul.f32 %v2207_v30, %v4564_v33  ;;  %v2303_v38 = vsel %vm1389_vm1, %v2251_v54, %v2252_v51  ;;  %v2304_v27 = vsel %vm1389_vm1, %v2250_v3, %v2251_v54  ;;  %v3496_v54 = vpop.f32.mrf.mxu0  ;;  %v3712_v30 = vld [vmem:[%s7040_s1 + $0xc0] sm:$0xff] }
 0x15f   : > { %7336 = vst [vmem:[#allocation89_spill] sm:$0xff] %v4883_v53  ;;  %v2219_v53 = vmul.f32 %v2208_v37, %v7337_v7  ;;  %v2315_v36 = vmul.f32 %v2303_v38, %v4439_v21  ;;  %v4906_v33 = vmul.f32 %v4499_v14, %v4875_v48  ;;  %v4909_v26 = vmul.f32 %v2304_v27, %v4612_v22  ;;  %v1235_v38 = vpop.permute.xlu1 %1234 }
 0x160   : > { %3657 = vset.pattern.permute.xlu1 %v7267_v28  ;;  %v4912_v3 = vmul.f32 %v4497_v55, %v2220_v47  ;;  %v4914_v49 = vmax.f32 %v650_v42, 0.0  ;;  %v1103_v22 = vmul.f32 %v998_v13, %v4734_v56  ;;  %v2158_v47 = vrot.slane %v4657_v18, 7 }
 0x161   : > { %7338 = vst [vmem:[#allocation90_spill] sm:$0xff] %v4909_v26  ;;  %1519 = vperm.xlu1 %3657, %v3712_v30   ;;  %v2351_v21 = vmul.f32 %v4497_v55, %v2219_v53  ;;  %v2455_v27 = vmul.f32 %v4866_v40, %v2315_v36  ;;  %v661_v42 = vadd.f32 %v3493_v39, %v4452_v12  ;;  %v1138_v36 = vrot.slane %v4764_v50, 7  ;;  %v665_v39 = vpop.f32.mrf.mxu0  ;;  %v1006_v1 = vpop.permute.xlu0 %1005 }
 0x162   : > { %7339 = vst [vmem:[#allocation91_spill] sm:$0xff] %v4912_v3  ;;  %v4928_v5 = vmul.f32 %v7340_v29, %v4597_v2  ;;  %v2157_v30 = vrot.slane %v1103_v22, 7  ;;  %v2253_v6 = vrot.slane %v1103_v22, 1  ;;  %v653_v53 = vadd.f32 %v4452_v12, %v652_v19  ;;  %v3713_v29 = vld [vmem:[%s7040_s1 + $0xd0] sm:$0xff] }
 0x163   : > { %v2419_v3 = vadd.f32 %v2387_v23, %v2351_v21  ;;  %v4933_v37 = vmul.f32 %v4499_v14, %v4890_v20  ;;  %v2389_v13 = vmul.f32 %v4499_v14, %v1103_v22  ;;  %v7343_v22 = vrot.slane %v4657_v18, 1 }
 0x164   : > { %v2205_v19 = vsel %vm1164_vm0, %v2157_v30, %v2158_v47  ;;  %v2206_v21 = vsel %vm1164_vm0, %v2156_v45, %v2157_v30  ;;  %v7345_v45 = vrot.slane %v4928_v5, 7 }
 0x165   : > { %7341 = vst [vmem:[#allocation15_spill] sm:$0xff] %v4933_v37  ;;  %1527 = vperm.xlu1 %3657, %v3713_v29   ;;  %v4941_v23 = vadd.f32 %v2455_v27, %v2419_v3  ;;  %v2301_v26 = vsel %vm1389_vm1, %v2253_v6, %v7343_v22  ;;  %v2221_v7 = vmul.f32 %v2206_v21, %v4414_v24  ;;  %v4955_v27 = vmax.f32 %v661_v42, 0.0  ;;  %v3714_v21 = vld [vmem:[%s7040_s1 + $0xd8] sm:$0xff]  ;;  %v1010_v35 = vpop.permute.xlu0 %1009 }
 0x166   : > { %v2302_v29 = vsel %vm1389_vm1, %v2252_v51, %v2253_v6  ;;  %v2317_v3 = vmul.f32 %v2301_v26, %v4772_v52  ;;  %v1187_v30 = vsel %vm1164_vm0, %v1138_v36, %v7345_v45  ;;  %v7346_v22 = vrot.slane %v4681_v60, 7  ;;  %v7347_v6 = vld [vmem:[#allocation39_spill] sm:$0xff] }
 0x167   : > { %7342 = vst [vmem:[#allocation92_spill] sm:$0xff] %v4941_v23  ;;  %7344 = vst [vmem:[#allocation93_spill] sm:$0xff] %v4955_v27  ;;  %v4957_v23 = vmax.f32 %v653_v53, 0.0  ;;  %v1762_v24 = vrot.slane %v4676_v41, 7  ;;  %v4971_v51 = vmul.f32 %v2205_v19, %v7347_v6  ;;  %v2353_v52 = vmul.f32 %v4497_v55, %v2221_v7  ;;  %v3497_v53 = vpop.f32.mrf.mxu0 }
 0x168   : > { %v4967_v43 = vsel %vm1164_vm0, %v7346_v22, %v1138_v36  ;;  %v1334_v26 = vmul.f32 %v1235_v38, %v1187_v30  ;;  %v1763_v42 = vrot.slane %v4734_v56, 7  ;;  %v2457_v60 = vmul.f32 %v4866_v40, %v2317_v3 }
 0x169   : > { %1531 = vperm.xlu1 %3657, %v3714_v21   ;;  %v1631_v36 = vmul.f32 %v4481_v11, %v4928_v5  ;;  %v7348_v45 = vrot.slane %v4597_v2, 7  ;;  %v4988_v7 = vmul.f32 %v1006_v1, %v4704_v9  ;;  %v2421_v30 = vadd.f32 %v2389_v13, %v2353_v52  ;;  %v1022_v27 = vpop.permute.xlu0 %1021 }
 0x16a   : > { %v1595_v22 = vmul.f32 %v4479_v10, %v1334_v26  ;;  %v1808_v21 = vsel %vm1164_vm0, %v1762_v24, %v1763_v42  ;;  %v674_v3 = vadd.f32 %v3496_v54, %v4452_v12  ;;  %v4995_v62 = vmul.f32 %v2302_v29, %v4691_v63  ;;  %v668_v26 = vpop.f32.mrf.mxu0  ;;  %v7352_v29 = vld [vmem:[#allocation16_spill] sm:$0xff] }
 0x16b   : > { %v4985_v19 = vsel %vm1164_vm0, %v7348_v45, %v1762_v24  ;;  %v1827_v0 = vmul.f32 %v1808_v21, %v1235_v38  ;;  %v1995_v2 = vmul.f32 %v4473_v32, %v4734_v56  ;;  %v2159_v45 = vrot.slane %v4988_v7, 7 }
 0x16c   : > { %7349 = vst [vmem:[#allocation39_spill] sm:$0xff] %v4995_v62  ;;  %v5000_v1 = vadd.f32 %v2457_v60, %v2421_v30  ;;  %v5002_v13 = vadd.f32 %v1631_v36, %v1595_v22  ;;  %v666_v24 = vadd.f32 %v4452_v12, %v665_v39  ;;  %v5012_v21 = vmul.f32 %v7352_v29, %v4676_v41  ;;  %v7353_v60 = vld [vmem:[#allocation70_spill] sm:$0xff]  ;;  %v5018_v36 = vld [vmem:[%s7040_s1 + $0xf0] sm:$0xff] }
 0x16d   : > { %3660 = vset.pattern.permute.xlu1 %v7274_v16  ;;  %v1959_v63 = vmul.f32 %v4488_v15, %v1827_v0  ;;  %v2204_v54 = vsel %vm1164_vm0, %v2158_v47, %v2159_v45  ;;  %v1764_v30 = vrot.slane %v7353_v60, 7  ;;  %v2391_v16 = vmul.f32 %v4499_v14, %v4988_v7  ;;  %v1239_v47 = vpop.permute.xlu1 %1238 }
 0x16e   : > { %7350 = vst [vmem:[#allocation94_spill] sm:$0xff] %v5000_v1  ;;  %7351 = vst [vmem:[#allocation95_spill] sm:$0xff] %v5002_v13  ;;  %1089 = vperm.xlu1 %3660, %v5018_v36   ;;  %v2223_v39 = vmul.f32 %v2204_v54, %v1235_v38  ;;  %v5023_v0 = vmax.f32 %v674_v3, 0.0  ;;  %v5026_v22 = vmul.f32 %v1010_v35, %v4858_v4  ;;  %v1140_v52 = vrot.slane %v5012_v21, 7 }
 0x16f   : > { %v5028_v29 = vadd.f32 %v1995_v2, %v1959_v63  ;;  %v7356_v13 = vrot.slane %v4704_v9, 7  ;;  %v1996_v38 = vmul.f32 %v4473_v32, %v7353_v60  ;;  %v1807_v54 = vsel %vm1164_vm0, %v1763_v42, %v1764_v30  ;;  %v3500_v63 = vpop.f32.mrf.mxu0 }
 0x170   : > { %7354 = vst [vmem:[#allocation16_spill] sm:$0xff] %v5023_v0  ;;  %v2355_v3 = vmul.f32 %v4497_v55, %v2223_v39  ;;  %v2160_v35 = vrot.slane %v5026_v22, 7  ;;  %v1828_v39 = vmul.f32 %v1807_v54, %v1239_v47  ;;  %v677_v46 = vadd.f32 %v3497_v53, %v4452_v12 }
 0x171   : > { %7355 = vst [vmem:[#allocation70_spill] sm:$0xff] %v5028_v29  ;;  %v5035_v1 = vsel %vm1164_vm0, %v1764_v30, %v7356_v13  ;;  %v7357_v29 = vrot.slane %v4750_v34, 7  ;;  %v7358_v13 = vrot.slane %v4928_v5, 7  ;;  %v7360_v2 = vrot.slane %v4875_v48, 7  ;;  %v1456_v17 = vpop.permute.xlu1 %1455 }
 0x172   : > { %3661 = vset.pattern.permute.xlu1 %v7326_v25  ;;  %v5056_v42 = vadd.f32 %v2391_v16, %v2355_v3  ;;  %v1960_v53 = vmul.f32 %v4488_v15, %v1828_v39  ;;  %v7361_v16 = vrot.slane %v5026_v22, 1  ;;  %v2392_v54 = vmul.f32 %v4499_v14, %v5026_v22  ;;  %v681_v39 = vpop.f32.mrf.mxu0 }
 0x173   : > { %v5048_v62 = vsel %vm1164_vm0, %v1140_v52, %v7357_v29  ;;  %v1186_v0 = vsel %vm1164_vm0, %v7358_v13, %v1140_v52  ;;  %v2202_v44 = vsel %vm1164_vm0, %v2160_v35, %v7360_v2  ;;  %v2203_v29 = vsel %vm1164_vm0, %v2159_v45, %v2160_v35  ;;  %v3716_v52 = vld [vmem:[%s7040_s1 + $0xe0] sm:$0xff]  ;;  %v7363_v2 = vld [vmem:[#allocation44_spill] sm:$0xff] }
 0x174   : > { %7359 = vst [vmem:[#allocation96_spill] sm:$0xff] %v5056_v42  ;;  %v1335_v30 = vmul.f32 %v1239_v47, %v1186_v0  ;;  %1310 = vperm.xlu1 %3661, %v3716_v52   ;;  %v2224_v25 = vmul.f32 %v2203_v29, %v1239_v47  ;;  %v7362_v0 = vrot.slane %v4988_v7, 1  ;;  %v1632_v35 = vmul.f32 %v4481_v11, %v5012_v21 }
 0x175   : > { %v669_v47 = vadd.f32 %v4452_v12, %v668_v26  ;;  %v5083_v29 = vmax.f32 %v666_v24, 0.0  ;;  %v5085_v52 = vadd.f32 %v1996_v38, %v1960_v53  ;;  %v1366_v26 = vrot.slane %v4928_v5, 1 }
 0x176   : > { %v2299_v3 = vsel %vm1389_vm1, %v7362_v0, %v7361_v16  ;;  %v1596_v45 = vmul.f32 %v4479_v10, %v1335_v30  ;;  %v2356_v16 = vmul.f32 %v4497_v55, %v2224_v25  ;;  %v5089_v0 = vmul.f32 %v1022_v27, %v4878_v61  ;;  %v7366_v30 = vld [vmem:[#allocation40_spill] sm:$0xff] }
 0x177   : > { %v5080_v13 = vmul.f32 %v2299_v3, %v7363_v2  ;;  %7365 = vst [vmem:[#allocation97_spill] sm:$0xff] %v5083_v29  ;;  %v5094_v37 = vmul.f32 %v2202_v44, %v7366_v30  ;;  %v1333_v3 = vmul.f32 %v7347_v6, %v4967_v43  ;;  %v5102_v38 = vmax.f32 %v677_v46, 0.0 }
 0x178   : > { %v5091_v42 = vadd.f32 %v1632_v35, %v1596_v45  ;;  %1318 = vperm.xlu1 %3661, %v5018_v36   ;;  %v5100_v24 = vadd.f32 %v2392_v54, %v2356_v16  ;;  %v7113_v27 = vrot.slane %v5089_v0, 1  ;;  %v690_v53 = vadd.f32 %v3500_v63, %v4452_v12  ;;  %v3501_v54 = vpop.f32.mrf.mxu0 }
 0x179   : > { %7364 = vst [vmem:[#allocation44_spill] sm:$0xff] %v5080_v13  ;;  %7367 = vst [vmem:[#allocation40_spill] sm:$0xff] %v5102_v38  ;;  %v5106_v25 = vmax.f32 %v669_v47, 0.0  ;;  %v7369_v44 = vrot.slane %v4764_v50, 1  ;;  %v1594_v43 = vmul.f32 %v4479_v10, %v1333_v3  ;;  %v1630_v5 = vmul.f32 %v4481_v11, %v4764_v50 }
 0x17a   : > { %v7370_v46 = vrot.slane %v4890_v20, 1  ;;  %v1826_v47 = vmul.f32 %v4985_v19, %v7347_v6  ;;  %v1859_v16 = vrot.slane %v4734_v56, 1  ;;  %v1994_v50 = vmul.f32 %v4473_v32, %v4676_v41  ;;  %v3717_v6 = vld [vmem:[%s7040_s1 + $0xf8] sm:$0xff] }
 0x17b   : > { %7368 = vst [vmem:[#allocation98_spill] sm:$0xff] %v5106_v25  ;;  %v1412_v45 = vsel %vm1389_vm1, %v7369_v44, %v1366_v26  ;;  %v1034_v44 = vpop.permute.xlu0 %1033  ;;  %v1662_v13 = vadd.f32 %v1630_v5, %v1594_v43  ;;  %v7371_v25 = vrot.slane %v4988_v7, 1  ;;  %v7372_v61 = vrot.slane %v4657_v18, 1 }
 0x17c   : > { %v2296_v63 = vsel %vm1389_vm1, %v7370_v46, %v7113_v27  ;;  %v1558_v35 = vmul.f32 %v1456_v17, %v1412_v45  ;;  %1322 = vperm.xlu1 %3661, %v3717_v6   ;;  %v7373_v19 = vrot.slane %v4676_v41, 1  ;;  %v1958_v43 = vmul.f32 %v4488_v15, %v1826_v47  ;;  %v1464_v47 = vpop.permute.xlu1 %1463 }
 0x17d   : > { %v2300_v46 = vsel %vm1389_vm1, %v7372_v61, %v7371_v25  ;;  %v5144_v5 = vmul.f32 %v4499_v14, %v5089_v0  ;;  %v2354_v25 = vmul.f32 %v4497_v55, %v4971_v51  ;;  %v2390_v6 = vmul.f32 %v4499_v14, %v4657_v18 }
 0x17e   : > { %v1698_v56 = vmul.f32 %v4486_v59, %v1558_v35  ;;  %v1904_v45 = vsel %vm1389_vm1, %v7373_v19, %v1859_v16  ;;  %v2318_v7 = vmul.f32 %v2300_v46, %v1456_v17  ;;  %v684_v35 = vpop.f32.mrf.mxu0  ;;  %v5150_v27 = vmax.f32 %v690_v53, 0.0  ;;  %v7376_v46 = vld [vmem:[#allocation46_spill] sm:$0xff] }
 0x17f   : > { %7374 = vst [vmem:[#allocation99_spill] sm:$0xff] %v5144_v5  ;;  %v1922_v61 = vmul.f32 %v1904_v45, %v1456_v17  ;;  %v2026_v3 = vadd.f32 %v1994_v50, %v1958_v43  ;;  %v5154_v8 = vmul.f32 %v2296_v63, %v7376_v46  ;;  %v2422_v17 = vadd.f32 %v2390_v6, %v2354_v25  ;;  %v1042_v50 = vpop.permute.xlu0 %1041  ;;  %v3718_v63 = vld [vmem:[%s7040_s1 + $0xe8] sm:$0xff] }
 0x180   : > { %7375 = vst [vmem:[#allocation100_spill] sm:$0xff] %v5150_v27  ;;  %v1730_v41 = vadd.f32 %v1698_v56, %v1662_v13  ;;  %v2458_v19 = vmul.f32 %v4866_v40, %v2318_v7  ;;  %v1367_v45 = vrot.slane %v5012_v21, 1  ;;  %3663 = vset.pattern.permute.xlu1 %v7267_v28  ;;  %v682_v18 = vadd.f32 %v4452_v12, %v681_v39  ;;  %v3504_v39 = vpop.f32.mrf.mxu0 }
 0x181   : > { %v2062_v5 = vmul.f32 %v4490_v31, %v1922_v61  ;;  %v1368_v51 = vrot.slane %v4750_v34, 1  ;;  %v1860_v13 = vrot.slane %v7353_v60, 1  ;;  %v1861_v53 = vrot.slane %v4704_v9, 1  ;;  %1539 = vperm.xlu1 %3663, %v3718_v63  }
 0x182   : > { %v5166_v43 = vadd.f32 %v2458_v19, %v2422_v17  ;;  %v693_v21 = vadd.f32 %v3501_v54, %v4452_v12  ;;  %v1411_v28 = vsel %vm1389_vm1, %v1366_v26, %v1367_v45  ;;  %v5185_v19 = vmax.f32 %v682_v18, 0.0 }
 0x183   : > { %v2094_v56 = vadd.f32 %v2062_v5, %v2026_v3  ;;  %v1410_v7 = vsel %vm1389_vm1, %v1367_v45, %v1368_v51  ;;  %v5174_v61 = vmul.f32 %v7363_v2, %v1411_v28  ;;  %v1902_v25 = vsel %vm1389_vm1, %v1860_v13, %v1861_v53 }
 0x184   : > { %7377 = vst [vmem:[#allocation46_spill] sm:$0xff] %v5166_v43  ;;  %v1903_v3 = vsel %vm1389_vm1, %v1859_v16, %v1860_v13  ;;  %v1560_v6 = vmul.f32 %v1464_v47, %v1410_v7  ;;  %v1924_v26 = vmul.f32 %v1902_v25, %v1464_v47  ;;  %7381 = vst [vmem:[#allocation104_spill] sm:$0xff] %v5185_v19  ;;  %v7382_v17 = vrot.slane %v4875_v48, 1 }
 0x185   : > { %7378 = vst [vmem:[#allocation101_spill] sm:$0xff] %v5174_v61  ;;  %v5180_v5 = vadd.f32 %v2094_v56, %v1730_v41  ;;  %v5183_v54 = vmul.f32 %v1903_v3, %v7363_v2  ;;  %v7383_v45 = vrot.slane %v5026_v22, 1  ;;  %v5194_v28 = vmul.f32 %v1034_v44, %v4887_v58  ;;  %v1468_v41 = vpop.permute.xlu1 %1467  ;;  %1543 = vperm.xlu1 %3663, %v5018_v36   ;;  %v7385_v56 = vld [vmem:[#allocation18_spill] sm:$0xff]  ;;  %v1054_v3 = vpop.permute.xlu0 %1053 }
 0x186   : > { %v706_v16 = vadd.f32 %v3504_v39, %v4452_v12  ;;  %v1700_v2 = vmul.f32 %v4486_v59, %v1560_v6  ;;  %v2064_v18 = vmul.f32 %v4490_v31, %v1924_v26  ;;  %v5202_v7 = vmul.f32 %v7385_v56, %v7353_v60 }
 0x187   : > { %7379 = vst [vmem:[#allocation102_spill] sm:$0xff] %v5180_v5  ;;  %7380 = vst [vmem:[#allocation103_spill] sm:$0xff] %v5183_v54  ;;  %v2298_v63 = vsel %vm1389_vm1, %v7383_v45, %v7382_v17  ;;  %v5205_v25 = vmax.f32 %v693_v21, 0.0  ;;  %v685_v39 = vadd.f32 %v4452_v12, %v684_v35  ;;  %v697_v17 = vpop.f32.mrf.mxu0  ;;  %v1336_v21 = vmul.f32 %v7366_v30, %v5048_v62 }
 0x188   : > { %7384 = vst [vmem:[#allocation105_spill] sm:$0xff] %v5194_v28  ;;  %v2320_v13 = vmul.f32 %v2298_v63, %v1464_v47  ;;  %v1732_v36 = vadd.f32 %v1700_v2, %v5091_v42  ;;  %v2096_v6 = vadd.f32 %v2064_v18, %v5085_v52  ;;  %v5212_v47 = vmax.f32 %v706_v16, 0.0 }
 0x189   : > { %7386 = vst [vmem:[#allocation18_spill] sm:$0xff] %v5205_v25  ;;  %v7116_v45 = vrot.slane %v5202_v7, 1  ;;  %v1829_v12 = vmul.f32 %v5035_v1, %v7366_v30  ;;  %v1633_v52 = vmul.f32 %v4481_v11, %v4750_v34  ;;  %v7117_v63 = vrot.slane %v4858_v4, 1  ;;  %v1026_v30 = vpop.permute.xlu1 %1025 }
 0x18a   : > { %v2460_v26 = vmul.f32 %v4866_v40, %v2320_v13  ;;  %7387 = vst [vmem:[#allocation106_spill] sm:$0xff] %v5212_v47  ;;  %v5220_v35 = vadd.f32 %v2096_v6, %v1732_v36  ;;  %v1597_v16 = vmul.f32 %v4479_v10, %v1336_v21  ;;  %v1997_v1 = vmul.f32 %v4473_v32, %v4704_v9 }
 0x18b   : > { %v1409_v62 = vsel %vm1389_vm1, %v1368_v51, %v7116_v45  ;;  %v1961_v2 = vmul.f32 %v4488_v15, %v1829_v12  ;;  %v1901_v56 = vsel %vm1389_vm1, %v1861_v53, %v7117_v63  ;;  %v7392_v51 = vrot.slane %v4890_v20, 1  ;;  %v3719_v63 = vld [vmem:[%s7042_s3] ss:$0 sm:$0xff] }
 0x18c   : > { %7388 = vst [vmem:[#allocation107_spill] sm:$0xff] %v5220_v35  ;;  %v5223_v42 = vadd.f32 %v2460_v26, %v5100_v24  ;;  %v7390_v24 = vld [vmem:[#allocation13_spill] sm:$0xff]  ;;  %v1561_v13 = vmul.f32 %v1468_v41, %v1409_v62  ;;  %v7393_v36 = vrot.slane %v4875_v48, 1  ;;  %v3505_v26 = vpop.f32.mrf.mxu0  ;;  %v1665_v21 = vadd.f32 %v1633_v52, %v1597_v16 }
 0x18d   : > { %v5238_v18 = vmul.f32 %v7390_v24, %v5212_v47  ;;  %v1925_v12 = vmul.f32 %v1901_v56, %v1468_v41  ;;  %v2029_v22 = vadd.f32 %v1997_v1, %v1961_v2  ;;  %v1066_v24 = vpop.permute.xlu0 %1065  ;;  %v2357_v44 = vmul.f32 %v4497_v55, %v5094_v37 }
 0x18e   : > { %7389 = vst [vmem:[#allocation108_spill] sm:$0xff] %v5223_v42  ;;  %v2297_v6 = vsel %vm1389_vm1, %v7393_v36, %v7392_v51  ;;  %v1701_v62 = vmul.f32 %v4486_v59, %v1561_v13  ;;  %v5254_v53 = vmul.f32 %v1042_v50, %v5083_v29  ;;  %v698_v60 = vadd.f32 %v3719_v63, %v697_v17  ;;  %v7415_v42 = vld [vmem:[#allocation17_spill] sm:$0xff] }
 0x18f   : > { %7391 = vst [vmem:[#allocation13_spill] sm:$0xff] %v5238_v18  ;;  %v2321_v45 = vmul.f32 %v2297_v6, %v1468_v41  ;;  %v2065_v51 = vmul.f32 %v4490_v31, %v1925_v12  ;;  %v709_v16 = vadd.f32 %v3719_v63, %v3505_v26  ;;  %v5262_v41 = vmul.f32 %v1054_v3, %v5102_v38  ;;  %v1030_v6 = vpop.permute.xlu1 %1029  ;;  %v7407_v26 = vld [vmem:[#allocation35_spill] sm:$0xff] }
 0x190   : > { %v5266_v2 = vmul.f32 %v4499_v14, %v5194_v28  ;;  %v5268_v37 = vmax.f32 %v685_v39, 0.0  ;;  %v1733_v50 = vadd.f32 %v1701_v62, %v1665_v21  ;;  %v2425_v1 = vadd.f32 %v4906_v33, %v2357_v44 }
 0x191   : > { %v2461_v52 = vmul.f32 %v4866_v40, %v2321_v45  ;;  %7394 = vst [vmem:[#allocation109_spill] sm:$0xff] %v5262_v41  ;;  %v2097_v17 = vadd.f32 %v2065_v51, %v2029_v22  ;;  %v5273_v36 = vmax.f32 %v709_v16, 0.0  ;;  %v700_v45 = vpop.f32.mrf.mxu0  ;;  %v5280_v39 = vmul.f32 %v4499_v14, %v5254_v53  ;;  %v7401_v22 = vld [vmem:[#allocation14_spill] sm:$0xff]  ;;  %v1074_v51 = vpop.permute.xlu0 %1073 }
 0x192   : > { %7395 = vst [vmem:[#allocation110_spill] sm:$0xff] %v5268_v37  ;;  %v5282_v21 = vmax.f32 %v698_v60, 0.0  ;;  %v5292_v62 = vmul.f32 %v1026_v30, %v4914_v49  ;;  %v5295_v16 = vmul.f32 %v1066_v24, %v5150_v27  ;;  %v5308_v30 = vmul.f32 %v4499_v14, %v5262_v41 }
 0x193   : > { %7396 = vst [vmem:[#allocation111_spill] sm:$0xff] %v5273_v36  ;;  %v5275_v3 = vadd.f32 %v2461_v52, %v2425_v1  ;;  %7398 = vst [vmem:[#allocation113_spill] sm:$0xff] %v5280_v39  ;;  %v5284_v33 = vadd.f32 %v2097_v17, %v1733_v50  ;;  %v5288_v44 = vmul.f32 %v7401_v22, %v5273_v36  ;;  %v1247_v50 = vpop.permute.xlu1 %1246  ;;  %v7409_v12 = vrot.slane %v5194_v28, 1 }
 0x194   : > { %7399 = vst [vmem:[#allocation114_spill] sm:$0xff] %v5282_v21  ;;  %v701_v52 = vadd.f32 %v3719_v63, %v700_v45  ;;  %7402 = vst [vmem:[#allocation14_spill] sm:$0xff] %v5295_v16  ;;  %v5298_v1 = vmul.f32 %v1030_v6, %v4957_v23  ;;  %v5301_v60 = vmul.f32 %v1074_v51, %v5282_v21  ;;  %v1142_v51 = vrot.slane %v5202_v7, 7  ;;  %v7418_v21 = vld [vmem:[#allocation84_spill] sm:$0xff] }
 0x195   : > { %7397 = vst [vmem:[#allocation112_spill] sm:$0xff] %v5275_v3  ;;  %7400 = vst [vmem:[#allocation115_spill] sm:$0xff] %v5284_v33  ;;  %v5314_v45 = vmul.f32 %v4499_v14, %v5292_v62  ;;  %v5322_v22 = vmul.f32 %v4499_v14, %v5295_v16  ;;  %v1766_v13 = vrot.slane %v4858_v4, 7  ;;  %v7411_v47 = vrot.slane %v4750_v34, 7 }
 0x196   : > { %7403 = vst [vmem:[#allocation116_spill] sm:$0xff] %v5301_v60  ;;  %7404 = vst [vmem:[#allocation117_spill] sm:$0xff] %v5308_v30  ;;  %v5316_v6 = vmax.f32 %v701_v52, 0.0  ;;  %v7122_v56 = vrot.slane %v5298_v1, 1  ;;  %v5332_v52 = vmul.f32 %v4499_v14, %v5298_v1  ;;  %v1634_v16 = vmul.f32 %v4481_v11, %v5202_v7 }
 0x197   : > { %7406 = vst [vmem:[#allocation119_spill] sm:$0xff] %v5322_v22  ;;  %v5346_v22 = vmul.f32 %v4499_v14, %v5301_v60  ;;  %v1184_v30 = vsel %vm1164_vm0, %v7411_v47, %v1142_v51  ;;  %v7413_v63 = vrot.slane %v4875_v48, 7  ;;  %v7414_v60 = vrot.slane %v4704_v9, 7 }
 0x198   : > { %7405 = vst [vmem:[#allocation118_spill] sm:$0xff] %v5316_v6  ;;  %v5327_v17 = vmul.f32 %v7407_v26, %v5316_v6  ;;  %v2293_v24 = vsel %vm1389_vm1, %v7122_v56, %v7409_v12  ;;  %v7412_v12 = vrot.slane %v4890_v20, 7  ;;  %v1086_v56 = vpop.permute.xlu0 %1085  ;;  %v1337_v39 = vmul.f32 %v1247_v50, %v1184_v30 }
 0x199   : > { %7410 = vst [vmem:[#allocation120_spill] sm:$0xff] %v5346_v22  ;;  %v1805_v34 = vsel %vm1164_vm0, %v7414_v60, %v1766_v13  ;;  %v1998_v47 = vmul.f32 %v4473_v32, %v4858_v4  ;;  %v5369_v48 = vmul.f32 %v7415_v42, %v4704_v9  ;;  %v7417_v60 = vld [vmem:[#allocation87_spill] sm:$0xff]  ;;  %v1768_v41 = vrot.slane %v7418_v21, 7 }
 0x19a   : > { %7408 = vst [vmem:[#allocation35_spill] sm:$0xff] %v5327_v17  ;;  %v2201_v26 = vsel %vm1164_vm0, %v7413_v63, %v7412_v12  ;;  %v1830_v33 = vmul.f32 %v1805_v34, %v1247_v50  ;;  %v7416_v63 = vld [vmem:[#allocation20_spill] sm:$0xff]  ;;  %v1598_v30 = vmul.f32 %v4479_v10, %v1337_v39  ;;  %v1767_v6 = vrot.slane %v7417_v60, 7  ;;  %v1255_v34 = vpop.permute.xlu1 %1254  ;;  %v7422_v39 = vld [vmem:[#allocation15_spill] sm:$0xff] }
 0x19b   : > { %v2226_v22 = vmul.f32 %v2201_v26, %v1247_v50  ;;  %v5373_v12 = vmul.f32 %v7416_v63, %v4858_v4  ;;  %v7419_v26 = vld [vmem:[#allocation49_spill] sm:$0xff]  ;;  %v2462_v9 = vmul.f32 %v4866_v40, %v5154_v8  ;;  %v5384_v42 = vmul.f32 %v1086_v56, %v5273_v36 }
 0x19c   : > { %v2325_v43 = vmul.f32 %v2293_v24, %v7419_v26  ;;  %v1962_v50 = vmul.f32 %v4488_v15, %v1830_v33  ;;  %v5386_v63 = vadd.f32 %v1634_v16, %v1598_v30  ;;  %v1803_v8 = vsel %vm1164_vm0, %v1767_v6, %v1768_v41  ;;  %v1251_v24 = vpop.permute.xlu0 %1250 }
 0x19d   : > { %v2358_v35 = vmul.f32 %v4497_v55, %v2226_v22  ;;  %7420 = vst [vmem:[#allocation17_spill] sm:$0xff] %v5384_v42  ;;  %v1143_v22 = vrot.slane %v5369_v48, 7  ;;  %v1144_v5 = vrot.slane %v5373_v12, 7  ;;  %v1636_v33 = vmul.f32 %v4481_v11, %v5373_v12 }
 0x19e   : > { %7421 = vst [vmem:[#allocation20_spill] sm:$0xff] %v5386_v63  ;;  %v5391_v54 = vadd.f32 %v1998_v47, %v1962_v50  ;;  %v2000_v56 = vmul.f32 %v4473_v32, %v7418_v21  ;;  %v1832_v30 = vmul.f32 %v1803_v8, %v1255_v34  ;;  %v7426_v47 = vrot.slane %v5089_v0, 7 }
 0x19f   : > { %v2426_v3 = vadd.f32 %v7422_v39, %v2358_v35  ;;  %v1182_v35 = vsel %vm1164_vm0, %v1143_v22, %v1144_v5  ;;  %v7425_v39 = vrot.slane %v5292_v62, 7  ;;  %v1183_v63 = vsel %vm1164_vm0, %v1142_v51, %v1143_v22 }
 0x1a0   : > { %7423 = vst [vmem:[#allocation87_spill] sm:$0xff] %v5391_v54  ;;  %v1339_v26 = vmul.f32 %v1255_v34, %v1182_v35  ;;  %v1804_v8 = vsel %vm1164_vm0, %v1766_v13, %v1767_v6  ;;  %v1999_v61 = vmul.f32 %v4473_v32, %v7417_v60  ;;  %v7428_v51 = vrot.slane %v4890_v20, 7  ;;  %v7429_v6 = vld [vmem:[#allocation19_spill] sm:$0xff]  ;;  %v1259_v20 = vpop.permute.xlu1 %1258 }
 0x1a1   : > { %v5399_v16 = vadd.f32 %v2462_v9, %v2426_v3  ;;  %v2199_v50 = vsel %vm1164_vm0, %v7426_v47, %v7425_v39  ;;  %v1635_v3 = vmul.f32 %v4481_v11, %v5369_v48  ;;  %v1964_v9 = vmul.f32 %v4488_v15, %v1832_v30 }
 0x1a2   : > { %v2228_v54 = vmul.f32 %v2199_v50, %v1255_v34  ;;  %v1600_v25 = vmul.f32 %v4479_v10, %v1339_v26  ;;  %v1831_v34 = vmul.f32 %v1804_v8, %v1251_v24  ;;  %v7427_v39 = vmov %v7426_v47  ;;  %v7431_v8 = vld [vmem:[#allocation12_spill] sm:$0xff] }
 0x1a3   : > { %7424 = vst [vmem:[#allocation84_spill] sm:$0xff] %v5399_v16  ;;  %v1338_v16 = vmul.f32 %v1251_v24, %v1183_v63  ;;  %v2200_v22 = vsel %vm1164_vm0, %v7428_v51, %v7427_v39  ;;  %v5426_v30 = vadd.f32 %v2000_v56, %v1964_v9  ;;  %v5431_v47 = vmul.f32 %v7429_v6, %v7417_v60  ;;  %v1263_v6 = vpop.permute.xlu0 %1262 }
 0x1a4   : > { %v2360_v35 = vmul.f32 %v4497_v55, %v2228_v54  ;;  %v2227_v13 = vmul.f32 %v2200_v22, %v1251_v24  ;;  %v5433_v26 = vadd.f32 %v1636_v33, %v1600_v25  ;;  %v1963_v50 = vmul.f32 %v4488_v15, %v1831_v34 }
 0x1a5   : > { %v1599_v63 = vmul.f32 %v4479_v10, %v1338_v16  ;;  %7430 = vst [vmem:[#allocation15_spill] sm:$0xff] %v5431_v47  ;;  %v1769_v27 = vrot.slane %v7431_v8, 7  ;;  %v1145_v24 = vrot.slane %v5431_v47, 7  ;;  %v7432_v33 = vrot.slane %v5298_v1, 7 }
 0x1a6   : > { %v5436_v54 = vadd.f32 %v5314_v45, %v2360_v35  ;;  %v2359_v16 = vmul.f32 %v4497_v55, %v2227_v13  ;;  %v5443_v39 = vadd.f32 %v1999_v61, %v1963_v50  ;;  %v2001_v45 = vmul.f32 %v4473_v32, %v7431_v8  ;;  %v7435_v50 = vld [vmem:[#allocation22_spill] sm:$0xff] }
 0x1a7   : > { %v1667_v9 = vadd.f32 %v1635_v3, %v1599_v63  ;;  %v1802_v25 = vsel %vm1164_vm0, %v1768_v41, %v1769_v27  ;;  %v7433_v35 = vrot.slane %v5292_v62, 7  ;;  %v7434_v3 = vld [vmem:[#allocation99_spill] sm:$0xff]  ;;  %v1181_v22 = vsel %vm1164_vm0, %v1144_v5, %v1145_v24 }
 0x1a8   : > { %v2427_v51 = vadd.f32 %v7434_v3, %v2359_v16  ;;  %v1833_v61 = vmul.f32 %v1802_v25, %v1259_v20  ;;  %v1340_v13 = vmul.f32 %v1259_v20, %v1181_v22  ;;  %v1637_v41 = vmul.f32 %v4481_v11, %v5431_v47 }
 0x1a9   : > { %v2198_v34 = vsel %vm1164_vm0, %v7433_v35, %v7432_v33  ;;  %v5462_v56 = vmul.f32 %v7435_v50, %v7418_v21  ;;  %v7139_v37 = vrot.slane %v4914_v49, 7  ;;  %v2465_v35 = vmul.f32 %v4866_v40, %v2325_v43 }
 0x1aa   : > { %v2229_v63 = vmul.f32 %v2198_v34, %v1259_v20  ;;  %v1965_v33 = vmul.f32 %v4488_v15, %v1833_v61  ;;  %v7436_v5 = vrot.slane %v5194_v28, 7  ;;  %v7437_v20 = vrot.slane %v5298_v1, 7 }
 0x1ab   : > { %v1601_v34 = vmul.f32 %v4479_v10, %v1340_v13  ;;  %v7148_v3 = vrot.slane %v5462_v56, 7  ;;  %v1801_v22 = vsel %vm1164_vm0, %v1769_v27, %v7139_v37  ;;  %v2002_v61 = vmul.f32 %v4473_v32, %v4914_v49 }
 0x1ac   : > { %v2361_v16 = vmul.f32 %v4497_v55, %v2229_v63  ;;  %v2197_v25 = vsel %vm1164_vm0, %v7437_v20, %v7436_v5  ;;  %v5482_v43 = vadd.f32 %v2001_v45, %v1965_v33  ;;  %v1834_v50 = vmul.f32 %v1801_v22, %v1263_v6  ;;  %v1476_v33 = vpop.permute.xlu1 %1475 }
 0x1ad   : > { %v2230_v28 = vmul.f32 %v2197_v25, %v1263_v6  ;;  %v5485_v19 = vadd.f32 %v1637_v41, %v1601_v34  ;;  %v1180_v13 = vsel %vm1164_vm0, %v1145_v24, %v7148_v3  ;;  %v1370_v5 = vrot.slane %v5369_v48, 1  ;;  %v7467_v3 = vld [vmem:[#allocation41_spill] sm:$0xff] }
 0x1ae   : > { %7438 = vst [vmem:[#allocation19_spill] sm:$0xff] %v5482_v43  ;;  %v2429_v63 = vadd.f32 %v5332_v52, %v2361_v16  ;;  %v1371_v27 = vrot.slane %v5373_v12, 1  ;;  %v1341_v37 = vmul.f32 %v1263_v6, %v1180_v13  ;;  %v1966_v45 = vmul.f32 %v4488_v15, %v1834_v50  ;;  %v7476_v43 = vld [vmem:[#allocation56_spill] sm:$0xff] }
 0x1af   : > { %7439 = vst [vmem:[#allocation12_spill] sm:$0xff] %v5485_v19  ;;  %v2362_v52 = vmul.f32 %v4497_v55, %v2230_v28  ;;  %v7441_v16 = vrot.slane %v5202_v7, 1  ;;  %v1863_v48 = vrot.slane %v7417_v60, 1  ;;  %v1864_v12 = vrot.slane %v7418_v21, 1 }
 0x1b0   : > { %v5493_v20 = vadd.f32 %v2465_v35, %v2429_v63  ;;  %v1407_v41 = vsel %vm1389_vm1, %v1370_v5, %v1371_v27  ;;  %v1602_v6 = vmul.f32 %v4479_v10, %v1341_v37  ;;  %v1638_v35 = vmul.f32 %v4481_v11, %v5462_v56 }
 0x1b1   : > { %v5503_v24 = vsel %vm1389_vm1, %v7441_v16, %v1370_v5  ;;  %v5510_v28 = vadd.f32 %v2002_v61, %v1966_v45  ;;  %v5513_v25 = vadd.f32 %v5266_v2, %v2362_v52  ;;  %v1563_v34 = vmul.f32 %v1476_v33, %v1407_v41  ;;  %v7449_v52 = vld [vmem:[#allocation23_spill] sm:$0xff] }
 0x1b2   : > { %7440 = vst [vmem:[#allocation99_spill] sm:$0xff] %v5493_v20  ;;  %v1899_v7 = vsel %vm1389_vm1, %v1863_v48, %v1864_v12  ;;  %v7444_v22 = vrot.slane %v4858_v4, 1  ;;  %v7445_v37 = vrot.slane %v5292_v62, 1  ;;  %v7446_v21 = vrot.slane %v5089_v0, 1  ;;  %v7448_v4 = vld [vmem:[#allocation24_spill] sm:$0xff]  ;;  %v7473_v20 = vld [vmem:[#allocation42_spill] sm:$0xff] }
 0x1b3   : > { %7442 = vst [vmem:[#allocation22_spill] sm:$0xff] %v5510_v28  ;;  %7443 = vst [vmem:[#allocation121_spill] sm:$0xff] %v5513_v25  ;;  %v5530_v63 = vadd.f32 %v1638_v35, %v1602_v6  ;;  %v1927_v50 = vmul.f32 %v1899_v7, %v1476_v33  ;;  %v1703_v5 = vmul.f32 %v4486_v59, %v1563_v34  ;;  %v7142_v0 = vrot.slane %v4887_v58, 7  ;;  %v7451_v6 = vld [vmem:[#allocation93_spill] sm:$0xff]  ;;  %v5547_v7 = vpop.permute.xlu0 %1274  ;;  %v7478_v25 = vld [vmem:[#allocation50_spill] sm:$0xff] }
 0x1b4   : > { %v5521_v60 = vsel %vm1389_vm1, %v7444_v22, %v1863_v48  ;;  %v2295_v61 = vsel %vm1389_vm1, %v7446_v21, %v7445_v37  ;;  %v5535_v45 = vmul.f32 %v7448_v4, %v4914_v49  ;;  %v5539_v41 = vmul.f32 %v7449_v52, %v4957_v23 }
 0x1b5   : > { %7447 = vst [vmem:[#allocation122_spill] sm:$0xff] %v5530_v63  ;;  %v2323_v13 = vmul.f32 %v2295_v61, %v1476_v33  ;;  %v2067_v16 = vmul.f32 %v4490_v31, %v1927_v50  ;;  %v7140_v35 = vrot.slane %v7451_v6, 7  ;;  %v2005_v33 = vmul.f32 %v4473_v32, %v7451_v6  ;;  %v1480_v61 = vpop.permute.xlu1 %1479 }
 0x1b6   : > { %7450 = vst [vmem:[#allocation24_spill] sm:$0xff] %v5539_v41  ;;  %v1735_v34 = vadd.f32 %v1703_v5, %v1667_v9  ;;  %v7143_v22 = vrot.slane %v5535_v45, 7  ;;  %v7141_v37 = vrot.slane %v5539_v41, 7  ;;  %v1641_v21 = vmul.f32 %v4481_v11, %v5539_v41 }
 0x1b7   : > { %v2463_v48 = vmul.f32 %v4866_v40, %v2323_v13  ;;  %v2099_v50 = vadd.f32 %v2067_v16, %v5443_v39  ;;  %v1798_v9 = vsel %vm1164_vm0, %v7142_v0, %v7140_v35  ;;  %v7147_v13 = vrot.slane %v5431_v47, 1  ;;  %v7502_v47 = vld [vmem:[#allocation38_spill] sm:$0xff] }
 0x1b8   : > { %v1177_v5 = vsel %vm1164_vm0, %v7143_v22, %v7141_v37  ;;  %v1837_v39 = vmul.f32 %v1798_v9, %v5547_v7  ;;  %v7452_v52 = vrot.slane %v5298_v1, 1  ;;  %v7453_v16 = vrot.slane %v5292_v62, 1  ;;  %v7454_v1 = vld [vmem:[#allocation26_spill] sm:$0xff] }
 0x1b9   : > { %v5554_v4 = vadd.f32 %v2463_v48, %v2427_v51  ;;  %v7144_v51 = vrot.slane %v7431_v8, 1  ;;  %v5577_v2 = vadd.f32 %v2099_v50, %v1735_v34  ;;  %v1344_v35 = vmul.f32 %v5547_v7, %v1177_v5 }
 0x1ba   : > { %v2294_v48 = vsel %vm1389_vm1, %v7453_v16, %v7452_v52  ;;  %v1406_v37 = vsel %vm1389_vm1, %v1371_v27, %v7147_v13  ;;  %v1969_v9 = vmul.f32 %v4488_v15, %v1837_v39  ;;  %v5591_v34 = vmul.f32 %v7454_v1, %v4887_v58  ;;  %v7456_v27 = vld [vmem:[#allocation25_spill] sm:$0xff] }
 0x1bb   : > { %v2324_v0 = vmul.f32 %v2294_v48, %v1480_v61  ;;  %v1564_v22 = vmul.f32 %v1480_v61, %v1406_v37  ;;  %v1898_v62 = vsel %vm1389_vm1, %v1864_v12, %v7144_v51  ;;  %v1605_v50 = vmul.f32 %v4479_v10, %v1344_v35 }
 0x1bc   : > { %7455 = vst [vmem:[#allocation23_spill] sm:$0xff] %v5591_v34  ;;  %v1928_v5 = vmul.f32 %v1898_v62, %v1480_v61  ;;  %v5597_v16 = vmul.f32 %v7456_v27, %v7451_v6  ;;  %v5599_v39 = vadd.f32 %v2005_v33, %v1969_v9  ;;  %v7146_v48 = vrot.slane %v5591_v34, 7  ;;  %v7461_v9 = vld [vmem:[#allocation98_spill] sm:$0xff] }
 0x1bd   : > { %v2464_v52 = vmul.f32 %v4866_v40, %v2324_v0  ;;  %v1704_v37 = vmul.f32 %v4486_v59, %v1564_v22  ;;  %v7152_v12 = vrot.slane %v5083_v29, 7  ;;  %v5604_v51 = vadd.f32 %v1641_v21, %v1605_v50  ;;  %v5610_v0 = vpop.permute.xlu0 %1282 }
 0x1be   : > { %7457 = vst [vmem:[#allocation93_spill] sm:$0xff] %v5597_v16  ;;  %7458 = vst [vmem:[#allocation26_spill] sm:$0xff] %v5599_v39  ;;  %v2068_v1 = vmul.f32 %v4490_v31, %v1928_v5  ;;  %v7145_v61 = vrot.slane %v5597_v16, 7  ;;  %v1643_v22 = vmul.f32 %v4481_v11, %v5597_v16  ;;  %v7151_v62 = vrot.slane %v7461_v9, 7 }
 0x1bf   : > { %7459 = vst [vmem:[#allocation25_spill] sm:$0xff] %v5604_v51  ;;  %v5608_v35 = vadd.f32 %v2464_v52, %v5436_v54  ;;  %v1736_v33 = vadd.f32 %v1704_v37, %v5433_v26  ;;  %v2007_v21 = vmul.f32 %v4473_v32, %v7461_v9  ;;  %v7462_v5 = vrot.slane %v5288_v44, 7 }
 0x1c0   : > { %v2100_v50 = vadd.f32 %v2068_v1, %v5426_v30  ;;  %v1175_v54 = vsel %vm1164_vm0, %v7146_v48, %v7145_v61  ;;  %v7463_v26 = vrot.slane %v5238_v18, 7  ;;  %v7465_v37 = vrot.slane %v5327_v17, 7  ;;  %v7466_v48 = vld [vmem:[#allocation37_spill] sm:$0xff] }
 0x1c1   : > { %7460 = vst [vmem:[#allocation123_spill] sm:$0xff] %v5608_v35  ;;  %v1346_v1 = vmul.f32 %v5610_v0, %v1175_v54  ;;  %v1796_v61 = vsel %vm1164_vm0, %v7152_v12, %v7151_v62  ;;  %v7157_v39 = vrot.slane %v5238_v18, 1  ;;  %v1622_v62 = vmul.f32 %v4481_v11, %v5238_v18 }
 0x1c2   : > { %v1195_v52 = vsel %vm1164_vm0, %v7463_v26, %v7462_v5  ;;  %v7464_v27 = vmov %v7463_v26  ;;  %v5647_v26 = vadd.f32 %v2100_v50, %v1736_v33  ;;  %v1839_v16 = vmul.f32 %v1796_v61, %v5610_v0 }
 0x1c3   : > { %v1196_v30 = vsel %vm1164_vm0, %v7465_v37, %v7464_v27  ;;  %v1326_v5 = vmul.f32 %v7467_v3, %v1195_v52  ;;  %v1358_v27 = vrot.slane %v5288_v44, 1  ;;  %v1607_v54 = vmul.f32 %v4479_v10, %v1346_v1  ;;  %v7469_v52 = vld [vmem:[#allocation52_spill] sm:$0xff] }
 0x1c4   : > { %v1325_v13 = vmul.f32 %v7466_v48, %v1196_v30  ;;  %7468 = vst [vmem:[#allocation37_spill] sm:$0xff] %v5647_v26  ;;  %v1971_v30 = vmul.f32 %v4488_v15, %v1839_v16  ;;  %v7470_v33 = vrot.slane %v7469_v52, 1  ;;  %v5674_v34 = vmul.f32 %v4499_v14, %v5384_v42 }
 0x1c5   : > { %v1587_v51 = vmul.f32 %v4479_v10, %v1326_v5  ;;  %v1420_v50 = vsel %vm1389_vm1, %v7157_v39, %v1358_v27  ;;  %v5668_v1 = vadd.f32 %v1643_v22, %v1607_v54  ;;  %v7472_v5 = vld [vmem:[#allocation45_spill] sm:$0xff]  ;;  %v7477_v28 = vrot.slane %v7476_v43, 7 }
 0x1c6   : > { %v1586_v37 = vmul.f32 %v4479_v10, %v1325_v13  ;;  %v1419_v61 = vsel %vm1389_vm1, %v1358_v27, %v7470_v33  ;;  %v1623_v13 = vmul.f32 %v4481_v11, %v5288_v44  ;;  %v1550_v12 = vmul.f32 %v7472_v5, %v1420_v50  ;;  %7474 = vst [vmem:[#allocation52_spill] sm:$0xff] %v5674_v34  ;;  %v7482_v34 = vld [vmem:[#allocation48_spill] sm:$0xff] }
 0x1c7   : > { %7471 = vst [vmem:[#allocation41_spill] sm:$0xff] %v5668_v1  ;;  %v1551_v29 = vmul.f32 %v7473_v20, %v1419_v61  ;;  %v5676_v33 = vadd.f32 %v2007_v21, %v1971_v30  ;;  %v7479_v27 = vrot.slane %v7478_v25, 7  ;;  %v7481_v54 = vrot.slane %v5273_v36, 7 }
 0x1c8   : > { %v1654_v16 = vadd.f32 %v1622_v62, %v1586_v37  ;;  %v5690_v37 = vpop.permute.xlu1 %1037  ;;  %v1655_v61 = vadd.f32 %v1623_v13, %v1587_v51  ;;  %v1690_v21 = vmul.f32 %v4486_v59, %v1550_v12  ;;  %v7483_v42 = vrot.slane %v7482_v34, 1 }
 0x1c9   : > { %7475 = vst [vmem:[#allocation45_spill] sm:$0xff] %v5676_v33  ;;  %v1816_v39 = vsel %vm1164_vm0, %v7479_v27, %v7477_v28  ;;  %v7480_v22 = vmov %v7479_v27  ;;  %v7484_v28 = vrot.slane %v7476_v43, 1  ;;  %v1986_v12 = vmul.f32 %v4473_v32, %v7478_v25 }
 0x1ca   : > { %v1817_v62 = vsel %vm1164_vm0, %v7481_v54, %v7480_v22  ;;  %v1819_v50 = vmul.f32 %v1816_v39, %v7467_v3  ;;  %v7486_v22 = vrot.slane %v7478_v25, 1  ;;  %v1987_v3 = vmul.f32 %v4473_v32, %v7476_v43  ;;  %v7491_v43 = vld [vmem:[#allocation82_spill] sm:$0xff] }
 0x1cb   : > { %v1818_v30 = vmul.f32 %v1817_v62, %v7466_v48  ;;  %v1911_v27 = vsel %vm1389_vm1, %v7484_v28, %v7483_v42  ;;  %v7485_v33 = vmov %v7484_v28  ;;  %v1691_v39 = vmul.f32 %v4486_v59, %v1551_v29  ;;  %v7487_v28 = vld [vmem:[#allocation67_spill] sm:$0xff] }
 0x1cc   : > { %v1912_v51 = vsel %vm1389_vm1, %v7486_v22, %v7485_v33  ;;  %v1722_v48 = vadd.f32 %v1690_v21, %v1654_v16  ;;  %v1915_v42 = vmul.f32 %v1911_v27, %v7473_v20  ;;  %v1951_v62 = vmul.f32 %v4488_v15, %v1819_v50  ;;  %v7489_v33 = vld [vmem:[#allocation58_spill] sm:$0xff]  ;;  %v7492_v27 = vld [vmem:[#allocation80_spill] sm:$0xff]  ;;  %v5731_v26 = vpop.permute.xlu1 %1045 }
 0x1cd   : > { %v1914_v13 = vmul.f32 %v1912_v51, %v7472_v5  ;;  %v1950_v54 = vmul.f32 %v4488_v15, %v1818_v30  ;;  %v7488_v1 = vrot.slane %v7487_v28, 1  ;;  %v7490_v22 = vrot.slane %v7489_v33, 1 }
 0x1ce   : > { %v2310_v41 = vmul.f32 %v7491_v43, %v7472_v5  ;;  %v1723_v29 = vadd.f32 %v1691_v39, %v1655_v61  ;;  %v2055_v16 = vmul.f32 %v4490_v31, %v1915_v42  ;;  %v2347_v30 = vmul.f32 %v4497_v55, %v7492_v27  ;;  %v7493_v5 = vld [vmem:[#allocation59_spill] sm:$0xff]  ;;  %v7500_v27 = vld [vmem:[#allocation81_spill] sm:$0xff] }
 0x1cf   : > { %v2307_v63 = vsel %vm1389_vm1, %v7490_v22, %v7488_v1  ;;  %v2018_v51 = vadd.f32 %v1986_v12, %v1950_v54  ;;  %v2019_v50 = vadd.f32 %v1987_v3, %v1951_v62  ;;  %v2054_v19 = vmul.f32 %v4490_v31, %v1914_v13  ;;  %v5752_v22 = vld [vmem:[#allocation5 + $0x8] ss:$0 sm:$0xff] }
 0x1d0   : > { %v2311_v21 = vmul.f32 %v2307_v63, %v7473_v20  ;;  %v2383_v35 = vmul.f32 %v4499_v14, %v7489_v33  ;;  %v2450_v1 = vmul.f32 %v4866_v40, %v2310_v41  ;;  %v7494_v61 = vrot.slane %v7493_v5, 7 }
 0x1d1   : > { %v7495_v39 = vrot.slane %v7469_v52, 7  ;;  %v7497_v12 = vrot.slane %v5288_v44, 7  ;;  %v7498_v13 = vrot.slane %v7493_v5, 1  ;;  %v7499_v42 = vrot.slane %v7469_v52, 1  ;;  %v7501_v44 = vld [vmem:[#allocation43_spill] sm:$0xff] }
 0x1d2   : > { %v2086_v41 = vadd.f32 %v2054_v19, %v2018_v51  ;;  %v2087_v54 = vadd.f32 %v2055_v16, %v2019_v50  ;;  %v2415_v62 = vadd.f32 %v2383_v35, %v2347_v30  ;;  %v2451_v43 = vmul.f32 %v5752_v22, %v2311_v21 }
 0x1d3   : > { %v1193_v20 = vsel %vm1164_vm0, %v7495_v39, %v7494_v61  ;;  %v7496_v63 = vmov %v7495_v39  ;;  %v1418_v40 = vsel %vm1389_vm1, %v7499_v42, %v7498_v13  ;;  %v2482_v61 = vadd.f32 %v2450_v1, %v7500_v27  ;;  %v7504_v1 = vld [vmem:[#allocation64_spill] sm:$0xff] }
 0x1d4   : > { %v1194_v3 = vsel %vm1164_vm0, %v7497_v12, %v7496_v63  ;;  %v1328_v63 = vmul.f32 %v7502_v47, %v1193_v20  ;;  %v7503_v12 = vld [vmem:[#allocation47_spill] sm:$0xff]  ;;  %v2118_v18 = vadd.f32 %v2086_v41, %v1722_v48  ;;  %v2119_v36 = vadd.f32 %v2087_v54, %v1723_v29 }
 0x1d5   : > { %v1327_v39 = vmul.f32 %v7501_v44, %v1194_v3  ;;  %v1552_v25 = vmul.f32 %v7503_v12, %v1418_v40  ;;  %v2483_v17 = vadd.f32 %v2451_v43, %v2415_v62  ;;  %v1624_v19 = vmul.f32 %v4481_v11, %v7469_v52  ;;  %v7505_v48 = vld [vmem:[#allocation63_spill] sm:$0xff]  ;;  %v5770_v3 = vpop.permute.xlu1 %1049  ;;  %v5775_v52 = vld [vmem:[%s7044_s5] ss:$0 sm:$0xff] }
 0x1d6   : > { %v1589_v16 = vmul.f32 %v4479_v10, %v1328_v63  ;;  %v1625_v21 = vmul.f32 %v4481_v11, %v7493_v5  ;;  %v2514_v51 = vadd.f32 %v2482_v61, %v2118_v18  ;;  %v1820_v20 = vmul.f32 %v7504_v1, %v7501_v44  ;;  %v7506_v5 = vld [vmem:[#allocation68_spill] sm:$0xff]  ;;  %v7507_v18 = vld [vmem:[#allocation55_spill] sm:$0xff]  ;;  %v7510_v61 = vld [vmem:[#allocation74_spill] sm:$0xff] }
 0x1d7   : > { %v1588_v35 = vmul.f32 %v4479_v10, %v1327_v39  ;;  %v1692_v30 = vmul.f32 %v4486_v59, %v1552_v25  ;;  %v2515_v50 = vadd.f32 %v2483_v17, %v2119_v36  ;;  %v1821_v29 = vmul.f32 %v7505_v48, %v7502_v47 }
 0x1d8   : > { %v1657_v42 = vadd.f32 %v1625_v21, %v1589_v16  ;;  %v1693_v25 = vmul.f32 %v4486_v59, %v7506_v5  ;;  %v7508_v36 = vrot.slane %v7507_v18, 1  ;;  %v7509_v17 = vrot.slane %v7482_v34, 1  ;;  %v7513_v21 = vld [vmem:[#allocation54_spill] sm:$0xff]  ;;  %v7516_v18 = vld [vmem:[#allocation57_spill] sm:$0xff] }
 0x1d9   : > { %v1656_v13 = vadd.f32 %v1624_v19, %v1588_v35  ;;  %v2553_v47 = vadd.f32 %v5775_v52, %v2514_v51  ;;  %v2554_v41 = vadd.f32 %v5775_v52, %v2515_v50  ;;  %v1952_v62 = vmul.f32 %v4488_v15, %v1820_v20 }
 0x1da   : > { %v1910_v40 = vsel %vm1389_vm1, %v7509_v17, %v7508_v36  ;;  %v1953_v27 = vmul.f32 %v4488_v15, %v1821_v29  ;;  %v2057_v39 = vmul.f32 %v4490_v31, %v7510_v61  ;;  %v7511_v63 = vrot.slane %v7487_v28, 7  ;;  %v7517_v36 = vld [vmem:[#allocation73_spill] sm:$0xff] }
 0x1db   : > { %v1916_v54 = vmul.f32 %v1910_v40, %v7503_v12  ;;  %v1724_v43 = vadd.f32 %v1692_v30, %v1656_v13  ;;  %v7512_v34 = vrot.slane %v7489_v33, 7  ;;  %v2585_v35 = vmax.f32 %v2553_v47, 0.0  ;;  %v7514_v30 = vld [vmem:[#allocation61_spill] sm:$0xff]  ;;  %v7515_v33 = vld [vmem:[#allocation86_spill] sm:$0xff]  ;;  %v5808_v40 = vpop.permute.xlu1 %1266 }
 0x1dc   : > { %v2586_v16 = vmax.f32 %v2554_v41, 0.0  ;;  %v2020_v51 = vadd.f32 %v7513_v21, %v1952_v62  ;;  %v1725_v50 = vadd.f32 %v1693_v25, %v1657_v42  ;;  %v2021_v1 = vadd.f32 %v7514_v30, %v1953_v27  ;;  %v7518_v25 = vld [vmem:[#allocation77_spill] sm:$0xff]  ;;  %v7520_v27 = vld [vmem:[#allocation78_spill] sm:$0xff]  ;;  %v7524_v30 = vld [vmem:[#allocation27_spill] sm:$0xff] }
 0x1dd   : > { %v2211_v19 = vsel %vm1164_vm0, %v7512_v34, %v7511_v63  ;;  %v2056_v12 = vmul.f32 %v4490_v31, %v1916_v54  ;;  %v2384_v48 = vmul.f32 %v4499_v14, %v7487_v28  ;;  %v2452_v5 = vmul.f32 %v5752_v22, %v7515_v33  ;;  %v7521_v63 = vld [vmem:[#allocation90_spill] sm:$0xff] }
 0x1de   : > { %v2216_v20 = vmul.f32 %v2211_v19, %v7501_v44  ;;  %v2617_v29 = vpack.c.bf16 %v2586_v16, %v2585_v35  ;;  %v1823_v17 = vmul.f32 %v7517_v36, %v7516_v18  ;;  %v2089_v47 = vadd.f32 %v2057_v39, %v2021_v1  ;;  %v7519_v44 = vld [vmem:[#allocation65_spill] sm:$0xff]  ;;  %v7522_v35 = vld [vmem:[#allocation88_spill] sm:$0xff]  ;;  %v7530_v18 = vld [vmem:[#allocation71_spill] sm:$0xff] }
 0x1df   : > { %v2088_v13 = vadd.f32 %v2056_v12, %v2020_v51  ;;  %v1695_v41 = vmul.f32 %v4486_v59, %v7518_v25  ;;  %v2386_v54 = vmul.f32 %v4499_v14, %v7519_v44  ;;  %v2059_v61 = vmul.f32 %v4490_v31, %v7520_v27  ;;  %v5843_v25 = vpop.permute.xlu1 %1270 }
 0x1e0   : > { %v2348_v42 = vmul.f32 %v4497_v55, %v2216_v20  ;;  %3522 = vmatprep.mubr.bf16.mxu1 %v2617_v29  ;;  %v1955_v62 = vmul.f32 %v4488_v15, %v1823_v17  ;;  %v2454_v34 = vmul.f32 %v5752_v22, %v7521_v63  ;;  %v2121_v19 = vadd.f32 %v2089_v47, %v1725_v50  ;;  %v7526_v20 = vld [vmem:[#allocation16_spill] sm:$0xff]  ;;  %v7527_v29 = vld [vmem:[#allocation30_spill] sm:$0xff] }
 0x1e1   : > { %v2120_v28 = vadd.f32 %v2088_v13, %v1724_v43  ;;  %v2418_v16 = vadd.f32 %v2386_v54, %v7522_v35  ;;  %v5823_v21 = vmul.f32 %v5690_v37, %v7451_v6  ;;  %v5827_v51 = vmul.f32 %v7376_v46, %v5503_v24  ;;  %v7523_v43 = vld [vmem:[#allocation69_spill] sm:$0xff] }
 0x1e2   : > { %v2416_v39 = vadd.f32 %v2384_v48, %v2348_v42  ;;  %v2023_v12 = vadd.f32 %v7523_v43, %v1955_v62  ;;  %v5832_v1 = vmul.f32 %v7524_v30, %v7461_v9  ;;  %v5836_v50 = vmul.f32 %v7527_v29, %v7526_v20  ;;  %v7529_v13 = vld [vmem:[#allocation89_spill] sm:$0xff]  ;;  %v7531_v62 = vld [vmem:[#allocation79_spill] sm:$0xff] }
 0x1e3   : > { %v2517_v33 = vadd.f32 %v7529_v13, %v2121_v19  ;;  %v1727_v37 = vadd.f32 %v1695_v41, %v7530_v18  ;;  %v2486_v36 = vadd.f32 %v2454_v34, %v2418_v16  ;;  %v7176_v24 = vrot.slane %v5823_v21, 1  ;;  %v5859_v34 = vpop.permute.xlu0 %1294 }
 0x1e4   : > { %7525 = vst [vmem:[#allocation42_spill] sm:$0xff] %v5832_v1  ;;  %7528 = vst [vmem:[#allocation56_spill] sm:$0xff] %v5836_v50  ;;  %v2484_v48 = vadd.f32 %v2452_v5, %v2416_v39  ;;  %v2091_v17 = vadd.f32 %v2059_v61, %v2023_v12  ;;  %v7172_v47 = vrot.slane %v5832_v1, 7  ;;  %v7171_v42 = vrot.slane %v5102_v38, 7  ;;  %v7535_v12 = vld [vmem:[#allocation92_spill] sm:$0xff]  ;;  %v7563_v1 = vld [vmem:[#allocation46_spill] sm:$0xff] }
 0x1e5   : > { %v5847_v44 = vmul.f32 %v5521_v60, %v7376_v46  ;;  %v2556_v5 = vadd.f32 %v5775_v52, %v2517_v33  ;;  %v2518_v27 = vadd.f32 %v2486_v36, %v7531_v62  ;;  %v7532_v61 = vrot.slane %v5254_v53, 1  ;;  %7533 = vst [vmem:[#allocation48_spill] sm:$0xff] %v5859_v34  ;;  %v7534_v46 = vld [vmem:[#allocation104_spill] sm:$0xff]  ;;  %v7538_v62 = vld [vmem:[#allocation110_spill] sm:$0xff] }
 0x1e6   : > { %v2516_v54 = vadd.f32 %v2484_v48, %v2120_v28  ;;  %v2123_v41 = vadd.f32 %v2091_v17, %v1727_v37  ;;  %v7169_v19 = vrot.slane %v5836_v50, 7  ;;  %v7170_v60 = vrot.slane %v7534_v46, 7 }
 0x1e7   : > { %v5857_v63 = vsel %vm1389_vm1, %v7176_v24, %v7532_v61  ;;  %v2557_v39 = vadd.f32 %v5775_v52, %v2518_v27  ;;  %v1646_v16 = vmul.f32 %v4481_v11, %v5836_v50  ;;  %v2588_v43 = vmax.f32 %v2556_v5, 0.0  ;;  %v7539_v27 = vld [vmem:[#allocation31_spill] sm:$0xff]  ;;  %v5898_v61 = vpop.permute.xlu1 %1487  ;;  %v7559_v50 = vld [vmem:[#allocation96_spill] sm:$0xff] }
 0x1e8   : > { %v2555_v28 = vadd.f32 %v5775_v52, %v2516_v54  ;;  %v2519_v30 = vadd.f32 %v7535_v12, %v2123_v41  ;;  %v1172_v29 = vsel %vm1164_vm0, %v7172_v47, %v7169_v19  ;;  %v1793_v48 = vsel %vm1164_vm0, %v7171_v42, %v7170_v60  ;;  %v7536_v54 = vld [vmem:[#allocation32_spill] sm:$0xff]  ;;  %v5910_v47 = vpop.permute.xlu0 %1306 }
 0x1e9   : > { %v1349_v33 = vmul.f32 %v5859_v34, %v1172_v29  ;;  %v1842_v18 = vmul.f32 %v1793_v48, %v5859_v34  ;;  %v2010_v37 = vmul.f32 %v4473_v32, %v7534_v46  ;;  %v5888_v17 = vmul.f32 %v5731_v26, %v7461_v9  ;;  %7544 = vst [vmem:[#allocation59_spill] sm:$0xff] %v5910_v47  ;;  %v7554_v34 = vld [vmem:[#allocation44_spill] sm:$0xff] }
 0x1ea   : > { %v2587_v13 = vmax.f32 %v2555_v28, 0.0  ;;  %v2558_v36 = vadd.f32 %v5775_v52, %v2519_v30  ;;  %v5892_v5 = vmul.f32 %v7536_v54, %v7534_v46  ;;  %v5896_v41 = vmul.f32 %v7539_v27, %v7538_v62  ;;  %v7541_v54 = vld [vmem:[#allocation100_spill] sm:$0xff] }
 0x1eb   : > { %v2589_v12 = vmax.f32 %v2557_v39, 0.0  ;;  %v1610_v29 = vmul.f32 %v4479_v10, %v1349_v33  ;;  %v1974_v30 = vmul.f32 %v4488_v15, %v1842_v18  ;;  %v7173_v26 = vrot.slane %v5888_v17, 7  ;;  %v5945_v35 = vpop.permute.xlu1 %1495  ;;  %v7589_v62 = vld [vmem:[#allocation60_spill] sm:$0xff] }
 0x1ec   : > { %7537 = vst [vmem:[#allocation67_spill] sm:$0xff] %v5892_v5  ;;  %7540 = vst [vmem:[#allocation58_spill] sm:$0xff] %v5896_v41  ;;  %v2618_v28 = vpack.c.bf16 %v2588_v43, %v2587_v13  ;;  %v2590_v48 = vmax.f32 %v2558_v36, 0.0  ;;  %v2401_v19 = vmul.f32 %v4499_v14, %v5888_v17  ;;  %v7182_v60 = vrot.slane %v7541_v54, 7  ;;  %v7546_v36 = vld [vmem:[#allocation18_spill] sm:$0xff] }
 0x1ed   : > { %v5906_v42 = vadd.f32 %v1646_v16, %v1610_v29  ;;  %v5908_v27 = vadd.f32 %v2010_v37, %v1974_v30  ;;  %v7175_v39 = vrot.slane %v5892_v5, 7  ;;  %v7174_v43 = vrot.slane %v5896_v41, 7  ;;  %v7547_v30 = vld [vmem:[#allocation75_spill] sm:$0xff] }
 0x1ee   : > { %3523 = vmatmul.mubr.bf16.vlgmr.msra.gmra.mxu1 %v2618_v28  ;;  %v2619_v13 = vpack.c.bf16 %v2590_v48, %v2589_v12  ;;  %v7545_v33 = vrot.slane %v5254_v53, 7  ;;  %v1649_v16 = vmul.f32 %v4481_v11, %v5896_v41  ;;  %v7181_v37 = vrot.slane %v7546_v36, 7 }
 0x1ef   : > { %7542 = vst [vmem:[#allocation82_spill] sm:$0xff] %v5906_v42  ;;  %7543 = vst [vmem:[#allocation80_spill] sm:$0xff] %v5908_v27  ;;  %v1169_v12 = vsel %vm1164_vm0, %v7175_v39, %v7174_v43  ;;  %v2013_v29 = vmul.f32 %v4473_v32, %v7546_v36  ;;  %v2388_v48 = vmul.f32 %v4499_v14, %v7547_v30  ;;  %v7549_v43 = vld [vmem:[#allocation85_spill] sm:$0xff]  ;;  %v7550_v39 = vld [vmem:[#allocation94_spill] sm:$0xff] }
 0x1f0   : > { %v2194_v18 = vsel %vm1164_vm0, %v7545_v33, %v7173_v26  ;;  %3526 = vmatprep.mubr.bf16.mxu1 %v2619_v13  ;;  %v1352_v33 = vmul.f32 %v5910_v47, %v1169_v12  ;;  %v2521_v24 = vadd.f32 %v7550_v39, %v7549_v43  ;;  %v7551_v12 = vld [vmem:[#allocation91_spill] sm:$0xff]  ;;  %v7552_v42 = vld [vmem:[#allocation101_spill] sm:$0xff]  ;;  %v2459_v39 = vmul.f32 %v5752_v22, %v7554_v34 }
 0x1f1   : > { %v2233_v28 = vmul.f32 %v2194_v18, %v5547_v7  ;;  %v1790_v7 = vsel %vm1164_vm0, %v7182_v60, %v7181_v37  ;;  %v7548_v18 = vld [vmem:[#allocation39_spill] sm:$0xff]  ;;  %v2420_v27 = vadd.f32 %v2388_v48, %v7551_v12  ;;  %v1699_v41 = vmul.f32 %v4486_v59, %v7552_v42 }
 0x1f2   : > { %v2456_v26 = vmul.f32 %v5752_v22, %v7548_v18  ;;  %v1845_v13 = vmul.f32 %v1790_v7, %v5910_v47  ;;  %v1613_v5 = vmul.f32 %v4479_v10, %v1352_v33  ;;  %v2560_v37 = vadd.f32 %v5775_v52, %v2521_v24  ;;  %v7553_v60 = vld [vmem:[#allocation103_spill] sm:$0xff]  ;;  %v7558_v24 = vld [vmem:[#allocation70_spill] sm:$0xff] }
 0x1f3   : > { %v2365_v30 = vmul.f32 %v4497_v55, %v2233_v28  ;;  %v2063_v18 = vmul.f32 %v4490_v31, %v7553_v60  ;;  %v7556_v47 = vld [vmem:[#allocation95_spill] sm:$0xff]  ;;  %v5964_v42 = vmul.f32 %v4499_v14, %v5823_v21  ;;  %v2491_v60 = vadd.f32 %v2459_v39, %v7559_v50 }
 0x1f4   : > { %v1977_v28 = vmul.f32 %v4488_v15, %v1845_v13  ;;  %v2488_v7 = vadd.f32 %v2456_v26, %v2420_v27  ;;  %v1731_v48 = vadd.f32 %v1699_v41, %v7556_v47  ;;  %v5966_v33 = vadd.f32 %v1649_v16, %v1613_v5  ;;  %v7561_v34 = vld [vmem:[#allocation83_spill] sm:$0xff]  ;;  %v7564_v5 = vld [vmem:[#allocation34_spill] sm:$0xff]  ;;  %v7566_v16 = vld [vmem:[#allocation33_spill] sm:$0xff] }
 0x1f5   : > { %v5958_v43 = vadd.f32 %v2401_v19, %v2365_v30  ;;  %v2095_v12 = vadd.f32 %v2063_v18, %v7558_v24  ;;  %v7562_v30 = vld [vmem:[#allocation102_spill] sm:$0xff]  ;;  %v5977_v47 = vmul.f32 %v5770_v3, %v7526_v20  ;;  %v2592_v41 = vmax.f32 %v2560_v37, 0.0  ;;  %v7568_v37 = vld [vmem:[#allocation53_spill] sm:$0xff]  ;;  %v7585_v20 = vld [vmem:[#allocation108_spill] sm:$0xff] }
 0x1f6   : > { %7557 = vst [vmem:[#allocation43_spill] sm:$0xff] %v5966_v33  ;;  %v5970_v38 = vadd.f32 %v2013_v29, %v1977_v28  ;;  %v2520_v19 = vadd.f32 %v2488_v7, %v7561_v34  ;;  %v2522_v13 = vadd.f32 %v7563_v1, %v7562_v30  ;;  %v5981_v27 = vmul.f32 %v7564_v5, %v7541_v54  ;;  %v5987_v29 = vpop.permute.xlu1 %1499  ;;  %v7573_v34 = vld [vmem:[#allocation114_spill] sm:$0xff]  ;;  %v7577_v54 = vld [vmem:[#allocation21_spill] sm:$0xff] }
 0x1f7   : > { %7555 = vst [vmem:[#allocation81_spill] sm:$0xff] %v5958_v43  ;;  %v2127_v26 = vadd.f32 %v2095_v12, %v1731_v48  ;;  %v5985_v50 = vmul.f32 %v7566_v16, %v7546_v36  ;;  %v7191_v39 = vrot.slane %v5977_v47, 7  ;;  %v7192_v3 = vrot.slane %v5977_v47, 1  ;;  %v5995_v48 = vpop.permute.xlu0 %1314 }
 0x1f8   : > { %7560 = vst [vmem:[#allocation38_spill] sm:$0xff] %v5970_v38  ;;  %7565 = vst [vmem:[#allocation47_spill] sm:$0xff] %v5981_v27  ;;  %v2559_v18 = vadd.f32 %v5775_v52, %v2520_v19  ;;  %v2561_v1 = vadd.f32 %v5775_v52, %v2522_v13  ;;  %v2327_v28 = vmul.f32 %v5857_v63, %v7568_v37  ;;  %v7196_v24 = vrot.slane %v5981_v27, 7  ;;  %v7570_v19 = vld [vmem:[#allocation109_spill] sm:$0xff] }
 0x1f9   : > { %7567 = vst [vmem:[#allocation64_spill] sm:$0xff] %v5985_v50  ;;  %v2523_v7 = vadd.f32 %v2491_v60, %v2127_v26  ;;  %7569 = vst [vmem:[#allocation63_spill] sm:$0xff] %v5995_v48  ;;  %v7195_v12 = vrot.slane %v5985_v50, 7  ;;  %v7571_v5 = vrot.slane %v7570_v19, 7  ;;  %v7572_v16 = vrot.slane %v7570_v19, 1 }
 0x1fa   : > { %v2591_v30 = vmax.f32 %v2559_v18, 0.0  ;;  %v2593_v26 = vmax.f32 %v2561_v1, 0.0  ;;  %v7200_v38 = vrot.slane %v7573_v34, 7  ;;  %v6031_v36 = vmul.f32 %v7577_v54, %v7431_v8 }
 0x1fb   : > { %v2192_v13 = vsel %vm1164_vm0, %v7191_v39, %v7571_v5  ;;  %v2288_v63 = vsel %vm1389_vm1, %v7192_v3, %v7572_v16  ;;  %v2562_v60 = vadd.f32 %v5775_v52, %v2523_v7  ;;  %v1167_v18 = vsel %vm1164_vm0, %v7196_v24, %v7195_v12  ;;  %v7575_v16 = vld [vmem:[#allocation118_spill] sm:$0xff]  ;;  %v6034_v24 = vpop.permute.xlu1 %1057 }
 0x1fc   : > { %v2620_v5 = vpack.c.bf16 %v2592_v41, %v2591_v30  ;;  %v6022_v39 = vmul.f32 %v4499_v14, %v5977_v47  ;;  %v1354_v33 = vmul.f32 %v5995_v48, %v1167_v18  ;;  %v7199_v3 = vrot.slane %v7575_v16, 7 }
 0x1fd   : > { %v2594_v7 = vmax.f32 %v2562_v60, 0.0  ;;  %v6027_v1 = vmul.f32 %v2192_v13, %v5610_v0  ;;  %v1771_v12 = vrot.slane %v4957_v23, 7  ;;  %v1651_v30 = vmul.f32 %v4481_v11, %v5985_v50  ;;  %v7579_v13 = vld [vmem:[#allocation105_spill] sm:$0xff] }
 0x1fe   : > { %7574 = vst [vmem:[#allocation68_spill] sm:$0xff] %v6022_v39  ;;  %3527 = vmatmul.mubr.bf16.gmra.mxu1 %v2620_v5  ;;  %v1615_v41 = vmul.f32 %v4479_v10, %v1354_v33  ;;  %v1788_v0 = vsel %vm1164_vm0, %v7200_v38, %v7199_v3  ;;  %v7578_v54 = vrot.slane %v5823_v21, 7  ;;  %v7580_v60 = vrot.slane %v7579_v13, 7 }
 0x1ff   : > { %7576 = vst [vmem:[#allocation55_spill] sm:$0xff] %v6027_v1  ;;  %v2621_v5 = vpack.c.bf16 %v2594_v7, %v2593_v26  ;;  %v1847_v33 = vmul.f32 %v1788_v0, %v5995_v48  ;;  %v2015_v1 = vmul.f32 %v4473_v32, %v7575_v16  ;;  %v1147_v19 = vrot.slane %v6031_v36, 7  ;;  %v6081_v43 = vpop.permute.xlu1 %1061 }
 0x200   : > { %v2196_v18 = vsel %vm1164_vm0, %v7580_v60, %v7578_v54  ;;  %v6055_v9 = vadd.f32 %v1651_v30, %v1615_v41  ;;  %v7582_v39 = vrot.slane %v4914_v49, 7  ;;  %v2003_v38 = vmul.f32 %v4473_v32, %v4957_v23 }
 0x201   : > { %v2231_v54 = vmul.f32 %v2196_v18, %v5808_v40  ;;  %3530 = vmatprep.mubr.bf16.mxu1 %v2621_v5  ;;  %v1979_v26 = vmul.f32 %v4488_v15, %v1847_v33  ;;  %v7583_v7 = vrot.slane %v5462_v56, 7  ;;  %v1639_v41 = vmul.f32 %v4481_v11, %v6031_v36 }
 0x202   : > { %7581 = vst [vmem:[#allocation74_spill] sm:$0xff] %v6055_v9  ;;  %v1800_v3 = vsel %vm1164_vm0, %v7582_v39, %v1771_v12  ;;  %v7210_v9 = vrot.slane %v5981_v27, 1  ;;  %v7209_v18 = vrot.slane %v5985_v50, 1  ;;  %v2467_v33 = vmul.f32 %v5752_v22, %v2327_v28 }
 0x203   : > { %v1179_v0 = vsel %vm1164_vm0, %v7583_v7, %v1147_v19  ;;  %v1835_v30 = vmul.f32 %v1800_v3, %v5808_v40  ;;  %v2363_v60 = vmul.f32 %v4497_v55, %v2231_v54  ;;  %v7584_v7 = vld [vmem:[#allocation107_spill] sm:$0xff]  ;;  %v6085_v54 = vpop.permute.xlu0 %1535 }
 0x204   : > { %v1342_v39 = vmul.f32 %v5808_v40, %v1179_v0  ;;  %v2524_v14 = vadd.f32 %v7585_v20, %v7584_v7  ;;  %7586 = vst [vmem:[#allocation54_spill] sm:$0xff] %v6085_v54  ;;  %v1392_v28 = vsel %vm1389_vm1, %v7210_v9, %v7209_v18  ;;  %v7587_v0 = vld [vmem:[#allocation115_spill] sm:$0xff]  ;;  %v6096_v20 = vmul.f32 %v2288_v63, %v7589_v62 }
 0x205   : > { %v1967_v5 = vmul.f32 %v4488_v15, %v1835_v30  ;;  %v2431_v40 = vadd.f32 %v5964_v42, %v2363_v60  ;;  %v7588_v30 = vld [vmem:[#allocation112_spill] sm:$0xff]  ;;  %v6102_v60 = vadd.f32 %v2015_v1, %v1979_v26  ;;  %v1578_v9 = vmul.f32 %v6085_v54, %v1392_v28 }
 0x206   : > { %v1603_v3 = vmul.f32 %v4479_v10, %v1342_v39  ;;  %v2525_v48 = vadd.f32 %v7588_v30, %v7587_v0  ;;  %v7211_v39 = vrot.slane %v7573_v34, 1  ;;  %v2563_v42 = vadd.f32 %v5775_v52, %v2524_v14 }
 0x207   : > { %v6098_v7 = vadd.f32 %v2003_v38, %v1967_v5  ;;  %7590 = vst [vmem:[#allocation61_spill] sm:$0xff] %v6102_v60  ;;  %v6106_v27 = vadd.f32 %v2467_v33, %v2431_v40  ;;  %v7591_v0 = vrot.slane %v7575_v16, 1  ;;  %v1702_v14 = vmul.f32 %v4486_v59, %v5827_v51  ;;  %v7593_v33 = vld [vmem:[#allocation20_spill] sm:$0xff]  ;;  %v7594_v40 = vld [vmem:[#allocation87_spill] sm:$0xff] }
 0x208   : > { %v6104_v50 = vadd.f32 %v1639_v41, %v1603_v3  ;;  %v2564_v18 = vadd.f32 %v5775_v52, %v2525_v48  ;;  %v2066_v63 = vmul.f32 %v4490_v31, %v5847_v44  ;;  %v2595_v1 = vmax.f32 %v2563_v42, 0.0  ;;  %v6131_v44 = vpop.permute.xlu1 %1278 }
 0x209   : > { %v1884_v38 = vsel %vm1389_vm1, %v7211_v39, %v7591_v0  ;;  %v2527_v48 = vadd.f32 %v5554_v4, %v5577_v2  ;;  %v7592_v41 = vrot.slane %v5535_v45, 7  ;;  %v1734_v3 = vadd.f32 %v1702_v14, %v7593_v33  ;;  %v7598_v33 = vld [vmem:[#allocation35_spill] sm:$0xff] }
 0x20a   : > { %v2596_v26 = vmax.f32 %v2564_v18, 0.0  ;;  %v2098_v28 = vadd.f32 %v2066_v63, %v7594_v40  ;;  %v1640_v51 = vmul.f32 %v4481_v11, %v5535_v45  ;;  %v7595_v2 = vrot.slane %v4887_v58, 7  ;;  %v7599_v40 = vld [vmem:[#allocation111_spill] sm:$0xff] }
 0x20b   : > { %v1178_v5 = vsel %vm1164_vm0, %v1147_v19, %v7592_v41  ;;  %v2566_v42 = vadd.f32 %v5775_v52, %v2527_v48  ;;  %v2004_v19 = vmul.f32 %v4473_v32, %v4887_v58  ;;  %v7596_v41 = vrot.slane %v5254_v53, 7  ;;  %v6150_v48 = vpop.permute.xlu0 %1547 }
 0x20c   : > { %v1343_v30 = vmul.f32 %v5843_v25, %v1178_v5  ;;  %v2622_v18 = vpack.c.bf16 %v2596_v26, %v2595_v1  ;;  %v1799_v4 = vsel %vm1164_vm0, %v1771_v12, %v7595_v2  ;;  %v2130_v0 = vadd.f32 %v2098_v28, %v1734_v3  ;;  %v7601_v2 = vld [vmem:[#allocation84_spill] sm:$0xff] }
 0x20d   : > { %v1836_v63 = vmul.f32 %v1799_v4, %v5843_v25  ;;  %v7597_v5 = vrot.slane %v5823_v21, 7  ;;  %v1942_v26 = vmul.f32 %v1884_v38, %v6085_v54  ;;  %v7213_v3 = vrot.slane %v7598_v33, 1 }
 0x20e   : > { %v1604_v14 = vmul.f32 %v4479_v10, %v1343_v30  ;;  %3531 = vmatmul.mubr.bf16.gmra.mxu1 %v2622_v18  ;;  %v6155_v30 = vmul.f32 %v4486_v59, %v1578_v9  ;;  %v2526_v4 = vadd.f32 %v7601_v2, %v2130_v0  ;;  %v7602_v18 = vld [vmem:[#allocation13_spill] sm:$0xff]  ;;  %v1373_v28 = vrot.slane %v5462_v56, 1  ;;  %v7604_v0 = vld [vmem:[#allocation62_spill] sm:$0xff] }
 0x20f   : > { %v2195_v1 = vsel %vm1164_vm0, %v7597_v5, %v7596_v41  ;;  %v1968_v41 = vmul.f32 %v4488_v15, %v1836_v63  ;;  %v2598_v5 = vmax.f32 %v2566_v42, 0.0  ;;  %v6174_v42 = vpop.permute.xlu1 %1286  ;;  %v7605_v63 = vld [vmem:[#allocation113_spill] sm:$0xff]  ;;  %v7606_v2 = vld [vmem:[#allocation50_spill] sm:$0xff]  ;;  %v7608_v33 = vrot.slane %v7599_v40, 1 }
 0x210   : > { %v2232_v12 = vmul.f32 %v2195_v1, %v5843_v25  ;;  %7600 = vst [vmem:[#allocation86_spill] sm:$0xff] %v6155_v30  ;;  %v6158_v39 = vadd.f32 %v1640_v51, %v1604_v14  ;;  %v7603_v25 = vrot.slane %v7602_v18, 1  ;;  %v2565_v9 = vadd.f32 %v5775_v52, %v2526_v4  ;;  %v7633_v30 = vld [vmem:[#allocation99_spill] sm:$0xff] }
 0x211   : > { %v6170_v60 = vadd.f32 %v2004_v19, %v1968_v41  ;;  %v7607_v18 = vrot.slane %v7606_v2, 1  ;;  %v1374_v4 = vrot.slane %v6031_v36, 1  ;;  %v7609_v19 = vld [vmem:[#allocation15_spill] sm:$0xff]  ;;  %v7614_v40 = vrot.slane %v7604_v0, 1  ;;  %v7662_v2 = vld [vmem:[#allocation40_spill] sm:$0xff] }
 0x212   : > { %v2364_v38 = vmul.f32 %v4497_v55, %v2232_v12  ;;  %v1421_v1 = vsel %vm1389_vm1, %v7213_v3, %v7603_v25  ;;  %v7610_v41 = vrot.slane %v7609_v19, 1  ;;  %v2597_v3 = vmax.f32 %v2565_v9, 0.0 }
 0x213   : > { %v1581_v51 = vmul.f32 %v6150_v48, %v1421_v1  ;;  %v1913_v56 = vsel %vm1389_vm1, %v7608_v33, %v7607_v18  ;;  %v6191_v1 = vmul.f32 %v4490_v31, %v1942_v26  ;;  %v1404_v36 = vsel %vm1389_vm1, %v1373_v28, %v1374_v4  ;;  %v7615_v18 = vld [vmem:[#allocation49_spill] sm:$0xff] }
 0x214   : > { %v6177_v12 = vadd.f32 %v7605_v63, %v2364_v38  ;;  %v1405_v25 = vsel %vm1389_vm1, %v7610_v41, %v1373_v28  ;;  %v1945_v38 = vmul.f32 %v1913_v56, %v6150_v48  ;;  %v7612_v63 = vld [vmem:[#allocation76_spill] sm:$0xff]  ;;  %v1866_v41 = vrot.slane %v4914_v49, 1 }
 0x215   : > { %7611 = vst [vmem:[#allocation57_spill] sm:$0xff] %v6191_v1  ;;  %v7613_v14 = vrot.slane %v7612_v63, 1  ;;  %v1565_v19 = vmul.f32 %v7615_v18, %v1405_v25  ;;  %v1867_v26 = vrot.slane %v4957_v23, 1  ;;  %v2623_v9 = vpack.c.bf16 %v2598_v5, %v2597_v3  ;;  %v7621_v25 = vld [vmem:[#allocation123_spill] sm:$0xff] }
 0x216   : > { %v6208_v56 = vmul.f32 %v4486_v59, %v1581_v51  ;;  %v1566_v63 = vmul.f32 %v5898_v61, %v1404_v36  ;;  %v7617_v0 = vrot.slane %v5823_v21, 1  ;;  %v7619_v49 = vrot.slane %v7431_v8, 1 }
 0x217   : > { %v6200_v33 = vsel %vm1389_vm1, %v7614_v40, %v7613_v14  ;;  %v7618_v40 = vrot.slane %v7579_v13, 1  ;;  %v1896_v28 = vsel %vm1389_vm1, %v1866_v41, %v1867_v26  ;;  %v1705_v5 = vmul.f32 %v4486_v59, %v1565_v19  ;;  %3534 = vmatprep.mubr.bf16.mxu1 %v2623_v9  ;;  %v7624_v9 = vld [vmem:[#allocation122_spill] sm:$0xff] }
 0x218   : > { %7616 = vst [vmem:[#allocation73_spill] sm:$0xff] %v6208_v56  ;;  %v1897_v23 = vsel %vm1389_vm1, %v7619_v49, %v1866_v41  ;;  %v1706_v21 = vmul.f32 %v4486_v59, %v1566_v63  ;;  %v1930_v51 = vmul.f32 %v1896_v28, %v5898_v61  ;;  %v7622_v56 = vld [vmem:[#allocation12_spill] sm:$0xff]  ;;  %v7625_v28 = vld [vmem:[#allocation121_spill] sm:$0xff] }
 0x219   : > { %v2292_v14 = vsel %vm1389_vm1, %v7618_v40, %v7617_v0  ;;  %v1929_v13 = vmul.f32 %v1897_v23, %v7615_v18  ;;  %v7620_v0 = vld [vmem:[#allocation37_spill] sm:$0xff]  ;;  %v6230_v40 = vpop.permute.xlu1 %1290  ;;  %v1737_v41 = vadd.f32 %v1705_v5, %v7622_v56  ;;  %v7623_v49 = vld [vmem:[#allocation24_spill] sm:$0xff]  ;;  %v7627_v5 = vld [vmem:[#allocation22_spill] sm:$0xff] }
 0x21a   : > { %v2326_v3 = vmul.f32 %v2292_v14, %v5898_v61  ;;  %v2528_v36 = vadd.f32 %v7621_v25, %v7620_v0  ;;  %v1375_v14 = vrot.slane %v5535_v45, 1  ;;  %v1376_v19 = vrot.slane %v7623_v49, 1 }
 0x21b   : > { %v1738_v1 = vadd.f32 %v1706_v21, %v7624_v9  ;;  %v2070_v63 = vmul.f32 %v4490_v31, %v1930_v51  ;;  %v2069_v18 = vmul.f32 %v4490_v31, %v1929_v13  ;;  %v1868_v45 = vrot.slane %v4887_v58, 1  ;;  %v7628_v51 = vld [vmem:[#allocation19_spill] sm:$0xff] }
 0x21c   : > { %v2466_v8 = vmul.f32 %v5752_v22, %v2326_v3  ;;  %v2567_v61 = vadd.f32 %v5775_v52, %v2528_v36  ;;  %v1402_v0 = vsel %vm1389_vm1, %v1375_v14, %v1376_v19  ;;  %v1403_v56 = vsel %vm1389_vm1, %v1374_v4, %v1375_v14 }
 0x21d   : > { %v6247_v3 = vmul.f32 %v4490_v31, %v1945_v38  ;;  %v2102_v21 = vadd.f32 %v2070_v63, %v7627_v5  ;;  %v2101_v25 = vadd.f32 %v2069_v18, %v7628_v51  ;;  %v1568_v36 = vmul.f32 %v5945_v35, %v1402_v0  ;;  %v7631_v5 = vld [vmem:[#allocation23_spill] sm:$0xff] }
 0x21e   : > { %v2498_v23 = vadd.f32 %v2466_v8, %v7625_v28  ;;  %v2599_v13 = vmax.f32 %v2567_v61, 0.0  ;;  %v1869_v8 = vrot.slane %v7451_v6, 1  ;;  %v1895_v9 = vsel %vm1389_vm1, %v1867_v26, %v1868_v45  ;;  %v6263_v61 = vpop.permute.xlu1 %1507 }
 0x21f   : > { %7626 = vst [vmem:[#allocation77_spill] sm:$0xff] %v6247_v3  ;;  %v7629_v28 = vrot.slane %v5888_v17, 1  ;;  %v7630_v4 = vrot.slane %v5254_v53, 1  ;;  %v2134_v38 = vadd.f32 %v2102_v21, %v1738_v1  ;;  %v2133_v14 = vadd.f32 %v2101_v25, %v1737_v41  ;;  %v7632_v3 = vld [vmem:[#allocation97_spill] sm:$0xff] }
 0x220   : > { %v1567_v63 = vmul.f32 %v7568_v37, %v1403_v56  ;;  %v1708_v0 = vmul.f32 %v4486_v59, %v1568_v36  ;;  %v1894_v26 = vsel %vm1389_vm1, %v1868_v45, %v1869_v8  ;;  %v7219_v51 = vrot.slane %v7631_v5, 1 }
 0x221   : > { %v2290_v58 = vsel %vm1389_vm1, %v7630_v4, %v7629_v28  ;;  %v7218_v53 = vrot.slane %v7632_v3, 1  ;;  %v2529_v54 = vadd.f32 %v7633_v30, %v2133_v14  ;;  %v1932_v1 = vmul.f32 %v1894_v26, %v5945_v35 }
 0x222   : > { %v2328_v18 = vmul.f32 %v2290_v58, %v5945_v35  ;;  %v7634_v56 = vrot.slane %v5977_v47, 1  ;;  %v7635_v21 = vmov %v7629_v28  ;;  %v1740_v36 = vadd.f32 %v1708_v0, %v6158_v39  ;;  %v7636_v0 = vld [vmem:[#allocation110_spill] sm:$0xff] }
 0x223   : > { %v1401_v45 = vsel %vm1389_vm1, %v1376_v19, %v7219_v51  ;;  %v1893_v35 = vsel %vm1389_vm1, %v1869_v8, %v7218_v53  ;;  %v2568_v28 = vadd.f32 %v5775_v52, %v2529_v54  ;;  %v2072_v4 = vmul.f32 %v4490_v31, %v1932_v1 }
 0x224   : > { %v2468_v41 = vmul.f32 %v5752_v22, %v2328_v18  ;;  %v2289_v25 = vsel %vm1389_vm1, %v7635_v21, %v7634_v56  ;;  %v1569_v39 = vmul.f32 %v5987_v29, %v1401_v45  ;;  %v1933_v14 = vmul.f32 %v1893_v35, %v5987_v29  ;;  %v7637_v56 = vld [vmem:[#allocation81_spill] sm:$0xff] }
 0x225   : > { %v2329_v30 = vmul.f32 %v2289_v25, %v5987_v29  ;;  %v6297_v19 = vmul.f32 %v6034_v24, %v7534_v46  ;;  %v6301_v8 = vmul.f32 %v6081_v43, %v7636_v0  ;;  %v2600_v26 = vmax.f32 %v2568_v28, 0.0  ;;  %v7638_v35 = vld [vmem:[#allocation25_spill] sm:$0xff] }
 0x226   : > { %v2500_v58 = vadd.f32 %v2468_v41, %v6177_v12  ;;  %v1931_v54 = vmul.f32 %v1895_v9, %v7568_v37  ;;  %v2104_v1 = vadd.f32 %v2072_v4, %v6170_v60  ;;  %v1709_v12 = vmul.f32 %v4486_v59, %v1569_v39  ;;  %v6306_v41 = vpop.permute.xlu1 %1511  ;;  %v7639_v9 = vld [vmem:[#allocation26_spill] sm:$0xff] }
 0x227   : > { %v2469_v18 = vmul.f32 %v5752_v22, %v2329_v30  ;;  %v6310_v29 = vmul.f32 %v6200_v33, %v6150_v48  ;;  %v2073_v24 = vmul.f32 %v4490_v31, %v1933_v14  ;;  %v1707_v43 = vmul.f32 %v4486_v59, %v1567_v63 }
 0x228   : > { %v2624_v25 = vpack.c.bf16 %v2600_v26, %v2599_v13  ;;  %v2136_v45 = vadd.f32 %v2104_v1, %v1740_v36  ;;  %v1741_v37 = vadd.f32 %v1709_v12, %v7638_v35  ;;  %v7221_v60 = vrot.slane %v6297_v19, 7  ;;  %v7642_v26 = vld [vmem:[#allocation14_spill] sm:$0xff] }
 0x229   : > { %v2501_v21 = vadd.f32 %v2469_v18, %v7637_v56  ;;  %v2105_v30 = vadd.f32 %v2073_v24, %v7639_v9  ;;  %v7220_v4 = vrot.slane %v6301_v8, 7  ;;  %v7217_v48 = vrot.slane %v6301_v8, 1  ;;  %v7646_v35 = vld [vmem:[#allocation66_spill] sm:$0xff] }
 0x22a   : > { %3535 = vmatmul.mubr.bf16.gmra.mxu1 %v2624_v25  ;;  %v1739_v33 = vadd.f32 %v1707_v43, %v6104_v50  ;;  %v2071_v39 = vmul.f32 %v4490_v31, %v1931_v54  ;;  %v2530_v63 = vadd.f32 %v2498_v23, %v2134_v38  ;;  %v7640_v13 = vrot.slane %v7631_v5, 7  ;;  %v7645_v38 = vld [vmem:[#allocation51_spill] sm:$0xff]  ;;  %v6352_v25 = vpop.permute.xlu1 %1069 }
 0x22b   : > { %v7641_v36 = vrot.slane %v7623_v49, 7  ;;  %v2137_v18 = vadd.f32 %v2105_v30, %v1741_v37  ;;  %v7643_v1 = vrot.slane %v7642_v26, 7  ;;  %v7644_v50 = vrot.slane %v7642_v26, 1 }
 0x22c   : > { %v2404_v54 = vmul.f32 %v7645_v38, %v6297_v19  ;;  %v6348_v24 = vmul.f32 %v7645_v38, %v6301_v8  ;;  %v2103_v56 = vadd.f32 %v2071_v39, %v6098_v7  ;;  %v2569_v43 = vadd.f32 %v5775_v52, %v2530_v63 }
 0x22d   : > { %v1176_v14 = vsel %vm1164_vm0, %v7641_v36, %v7640_v13  ;;  %v6335_v12 = vsel %vm1164_vm0, %v7220_v4, %v7643_v1  ;;  %v2285_v23 = vsel %vm1389_vm1, %v7217_v48, %v7644_v50  ;;  %v1642_v30 = vmul.f32 %v4481_v11, %v7631_v5 }
 0x22e   : > { %v1345_v49 = vmul.f32 %v6131_v44, %v1176_v14  ;;  %v6355_v37 = vmul.f32 %v2285_v23, %v7646_v35  ;;  %v7647_v13 = vrot.slane %v7632_v3, 7  ;;  %v7648_v36 = vrot.slane %v7451_v6, 7 }
 0x22f   : > { %v2135_v7 = vadd.f32 %v2103_v56, %v1739_v33  ;;  %v2006_v63 = vmul.f32 %v4473_v32, %v7632_v3  ;;  %v7649_v1 = vrot.slane %v5977_v47, 7  ;;  %v7650_v50 = vrot.slane %v5888_v17, 7 }
 0x230   : > { %v1606_v9 = vmul.f32 %v4479_v10, %v1345_v49  ;;  %v1797_v14 = vsel %vm1164_vm0, %v7648_v36, %v7647_v13  ;;  %v2601_v49 = vmax.f32 %v2569_v43, 0.0  ;;  %v2532_v53 = vadd.f32 %v2500_v58, %v2136_v45  ;;  %v7651_v36 = vld [vmem:[#allocation28_spill] sm:$0xff]  ;;  %v6394_v45 = vpop.permute.xlu1 %1077 }
 0x231   : > { %v1838_v39 = vmul.f32 %v1797_v14, %v6131_v44  ;;  %v2193_v23 = vsel %vm1164_vm0, %v7650_v50, %v7649_v1  ;;  %v2531_v33 = vadd.f32 %v6106_v27, %v2135_v7  ;;  %v2533_v13 = vadd.f32 %v2501_v21, %v2137_v18  ;;  %v7653_v18 = vld [vmem:[#allocation68_spill] sm:$0xff]  ;;  %v7654_v1 = vld [vmem:[#allocation98_spill] sm:$0xff] }
 0x232   : > { %v6375_v48 = vadd.f32 %v1642_v30, %v1606_v9  ;;  %v2234_v6 = vmul.f32 %v2193_v23, %v6131_v44  ;;  %v6382_v14 = vmul.f32 %v7651_v36, %v7632_v3  ;;  %v2470_v47 = vmul.f32 %v5752_v22, %v6096_v20  ;;  %v7652_v9 = vld [vmem:[#allocation16_spill] sm:$0xff] }
 0x233   : > { %v1970_v56 = vmul.f32 %v4488_v15, %v1838_v39  ;;  %v2571_v43 = vadd.f32 %v5775_v52, %v2532_v53  ;;  %v1776_v30 = vrot.slane %v7652_v9, 7  ;;  %v2570_v44 = vadd.f32 %v5775_v52, %v2531_v33 }
 0x234   : > { %v2366_v17 = vmul.f32 %v4497_v55, %v2234_v6  ;;  %v2572_v27 = vadd.f32 %v5775_v52, %v2533_v13  ;;  %v1152_v21 = vrot.slane %v6382_v14, 7  ;;  %v7655_v50 = vrot.slane %v7654_v1, 7  ;;  %v7656_v6 = vld [vmem:[#allocation93_spill] sm:$0xff] }
 0x235   : > { %v6390_v58 = vadd.f32 %v2006_v63, %v1970_v56  ;;  %v2603_v39 = vmax.f32 %v2571_v43, 0.0  ;;  %v2008_v53 = vmul.f32 %v4473_v32, %v7652_v9  ;;  %v2602_v23 = vmax.f32 %v2570_v44, 0.0  ;;  %v7658_v43 = vld [vmem:[#allocation109_spill] sm:$0xff]  ;;  %v7660_v44 = vld [vmem:[#allocation42_spill] sm:$0xff] }
 0x236   : > { %v2434_v7 = vadd.f32 %v7653_v18, %v2366_v17  ;;  %v1795_v20 = vsel %vm1164_vm0, %v7655_v50, %v1776_v30  ;;  %v2604_v63 = vmax.f32 %v2572_v27, 0.0  ;;  %v7657_v33 = vrot.slane %v7656_v6, 7 }
 0x237   : > { %v1840_v13 = vmul.f32 %v1795_v20, %v6174_v42  ;;  %v7659_v18 = vrot.slane %v7658_v43, 7  ;;  %v7661_v27 = vrot.slane %v7660_v44, 7  ;;  %v2625_v51 = vpack.c.bf16 %v2602_v23, %v2601_v49  ;;  %v1082_v23 = vpop.permute.xlu1 %1081 }
 0x238   : > { %v1174_v56 = vsel %vm1164_vm0, %v7657_v33, %v1152_v21  ;;  %v6408_v36 = vadd.f32 %v2470_v47, %v2434_v7  ;;  %v2626_v33 = vpack.c.bf16 %v2604_v63, %v2603_v39 }
 0x239   : > { %v1347_v17 = vmul.f32 %v6174_v42, %v1174_v56  ;;  %v2191_v50 = vsel %vm1164_vm0, %v7659_v18, %v7221_v60  ;;  %v1173_v28 = vsel %vm1164_vm0, %v1152_v21, %v7661_v27  ;;  %v1972_v20 = vmul.f32 %v4488_v15, %v1840_v13  ;;  %3538 = vmatprep.mubr.bf16.mxu1 %v2625_v51 }
 0x23a   : > { %v2236_v47 = vmul.f32 %v2191_v50, %v6174_v42  ;;  %v1644_v56 = vmul.f32 %v4481_v11, %v6382_v14  ;;  %v1348_v4 = vmul.f32 %v6230_v40, %v1173_v28  ;;  %v7663_v18 = vrot.slane %v7662_v2, 7  ;;  %3539 = vmatmul.mubr.bf16.gmra.mxu1 %v2626_v33 }
 0x23b   : > { %v1608_v7 = vmul.f32 %v4479_v10, %v1347_v17  ;;  %v6431_v21 = vadd.f32 %v2008_v53, %v1972_v20  ;;  %v1645_v42 = vmul.f32 %v4481_v11, %v7660_v44  ;;  %v2009_v13 = vmul.f32 %v4473_v32, %v7662_v2 }
 0x23c   : > { %v1794_v60 = vsel %vm1164_vm0, %v1776_v30, %v7663_v18  ;;  %v2368_v49 = vmul.f32 %v4497_v55, %v2236_v47  ;;  %v1609_v28 = vmul.f32 %v4479_v10, %v1348_v4  ;;  %v7664_v30 = vrot.slane %v6301_v8, 7 }
 0x23d   : > { %v1841_v39 = vmul.f32 %v1794_v60, %v6230_v40  ;;  %v1676_v63 = vadd.f32 %v1644_v56, %v1608_v7  ;;  %v7665_v51 = vrot.slane %v6297_v19, 7  ;;  %v1378_v27 = vrot.slane %v7656_v6, 1 }
 0x23e   : > { %v2436_v17 = vadd.f32 %v2404_v54, %v2368_v49  ;;  %v6449_v33 = vadd.f32 %v1645_v42, %v1609_v28  ;;  %v1379_v4 = vrot.slane %v6382_v14, 1  ;;  %v1871_v20 = vrot.slane %v7654_v1, 1 }
 0x23f   : > { %v2190_v53 = vsel %vm1164_vm0, %v7665_v51, %v7664_v30  ;;  %v1973_v50 = vmul.f32 %v4488_v15, %v1841_v39  ;;  %v1872_v47 = vrot.slane %v7652_v9, 1  ;;  %v7666_v54 = vrot.slane %v7631_v5, 1  ;;  %v7670_v51 = vld [vmem:[#allocation55_spill] sm:$0xff] }
 0x240   : > { %v2237_v60 = vmul.f32 %v2190_v53, %v6230_v40  ;;  %v7667_v40 = vrot.slane %v6297_v19, 1  ;;  %v7668_v6 = vrot.slane %v7658_v43, 1  ;;  %v6469_v1 = vmul.f32 %v5752_v22, %v6310_v29 }
 0x241   : > { %v6454_v7 = vadd.f32 %v2009_v13, %v1973_v50  ;;  %v1400_v18 = vsel %vm1389_vm1, %v7666_v54, %v1378_v27  ;;  %v1399_v9 = vsel %vm1389_vm1, %v1378_v27, %v1379_v4  ;;  %v1891_v5 = vsel %vm1389_vm1, %v1871_v20, %v1872_v47  ;;  %v6484_v13 = vpop.permute.xlu1 %1298  ;;  %v7671_v50 = vld [vmem:[#allocation56_spill] sm:$0xff] }
 0x242   : > { %v2369_v56 = vmul.f32 %v4497_v55, %v2237_v60  ;;  %v2287_v14 = vsel %vm1389_vm1, %v7668_v6, %v7667_v40  ;;  %v7669_v49 = vrot.slane %v7632_v3, 1  ;;  %v2473_v39 = vmul.f32 %v5752_v22, %v6355_v37 }
 0x243   : > { %v1571_v28 = vmul.f32 %v6263_v61, %v1399_v9  ;;  %v1935_v29 = vmul.f32 %v1891_v5, %v6263_v61  ;;  %v2331_v30 = vmul.f32 %v2287_v14, %v6263_v61  ;;  %v2367_v53 = vmul.f32 %v4497_v55, %v7670_v51  ;;  %v7673_v14 = vld [vmem:[#allocation41_spill] sm:$0xff] }
 0x244   : > { %v1892_v42 = vsel %vm1389_vm1, %v7669_v49, %v1871_v20  ;;  %v2437_v43 = vadd.f32 %v6348_v24, %v2369_v56  ;;  %v1380_v3 = vrot.slane %v7660_v44, 1  ;;  %v7226_v60 = vrot.slane %v7671_v50, 1  ;;  %v7672_v56 = vld [vmem:[#allocation117_spill] sm:$0xff] }
 0x245   : > { %v1711_v24 = vmul.f32 %v4486_v59, %v1571_v28  ;;  %v2075_v37 = vmul.f32 %v4490_v31, %v1935_v29  ;;  %v1873_v20 = vrot.slane %v7662_v2, 1  ;;  %v2435_v54 = vadd.f32 %v7672_v56, %v2367_v53  ;;  %v7674_v5 = vld [vmem:[#allocation45_spill] sm:$0xff]  ;;  %v6523_v56 = vpop.permute.xlu1 %1302 }
 0x246   : > { %v6491_v27 = vadd.f32 %v2473_v39, %v2437_v43  ;;  %v2471_v40 = vmul.f32 %v5752_v22, %v2331_v30  ;;  %v1397_v61 = vsel %vm1389_vm1, %v1380_v3, %v7226_v60  ;;  %v1398_v44 = vsel %vm1389_vm1, %v1379_v4, %v1380_v3 }
 0x247   : > { %v1570_v6 = vmul.f32 %v7589_v62, %v1400_v18  ;;  %v1743_v9 = vadd.f32 %v1711_v24, %v7673_v14  ;;  %v2107_v49 = vadd.f32 %v2075_v37, %v7674_v5  ;;  %v1572_v43 = vmul.f32 %v6306_v41, %v1398_v44 }
 0x248   : > { %v2503_v39 = vadd.f32 %v2471_v40, %v2435_v54  ;;  %v7675_v28 = vrot.slane %v7534_v46, 1  ;;  %v1890_v30 = vsel %vm1389_vm1, %v1872_v47, %v1873_v20  ;;  %v7676_v51 = vrot.slane %v6301_v8, 1  ;;  %v7678_v40 = vld [vmem:[#allocation18_spill] sm:$0xff] }
 0x249   : > { %v7677_v4 = vrot.slane %v6297_v19, 1  ;;  %v1934_v53 = vmul.f32 %v1892_v42, %v7589_v62  ;;  %v2139_v3 = vadd.f32 %v2107_v49, %v1743_v9  ;;  %v1712_v24 = vmul.f32 %v4486_v59, %v1572_v43  ;;  %v7679_v8 = vld [vmem:[#allocation106_spill] sm:$0xff]  ;;  %v7680_v62 = vld [vmem:[#allocation48_spill] sm:$0xff] }
 0x24a   : > { %v1889_v29 = vsel %vm1389_vm1, %v1873_v20, %v7675_v28  ;;  %v1936_v37 = vmul.f32 %v1890_v30, %v6306_v41  ;;  %v6528_v47 = vmul.f32 %v6352_v25, %v7678_v40  ;;  %v6532_v19 = vmul.f32 %v6394_v45, %v7575_v16 }
 0x24b   : > { %v2286_v18 = vsel %vm1389_vm1, %v7677_v4, %v7676_v51  ;;  %v6535_v20 = vmul.f32 %v1082_v23, %v7679_v8  ;;  %v6539_v42 = vmul.f32 %v6335_v12, %v7680_v62  ;;  %v1573_v44 = vmul.f32 %v7646_v35, %v1397_v61  ;;  %v6568_v4 = vpop.permute.xlu1 %1519 }
 0x24c   : > { %v2332_v54 = vmul.f32 %v2286_v18, %v6306_v41  ;;  %v1744_v14 = vadd.f32 %v1712_v24, %v1676_v63  ;;  %v2076_v41 = vmul.f32 %v4490_v31, %v1936_v37  ;;  %v1937_v9 = vmul.f32 %v1889_v29, %v7646_v35  ;;  %v7681_v63 = vld [vmem:[#allocation116_spill] sm:$0xff]  ;;  %v7685_v24 = vld [vmem:[#allocation59_spill] sm:$0xff] }
 0x24d   : > { %v7225_v5 = vrot.slane %v6528_v47, 1  ;;  %v1710_v45 = vmul.f32 %v4486_v59, %v1570_v6  ;;  %v2175_v49 = vrot.slane %v6528_v47, 7  ;;  %v7222_v12 = vrot.slane %v6532_v19, 7  ;;  %v7684_v18 = vld [vmem:[#allocation72_spill] sm:$0xff] }
 0x24e   : > { %v2472_v25 = vmul.f32 %v5752_v22, %v2332_v54  ;;  %v2108_v23 = vadd.f32 %v2076_v41, %v6431_v21  ;;  %v2074_v43 = vmul.f32 %v4490_v31, %v1934_v53  ;;  %v7682_v28 = vrot.slane %v7681_v63, 1 }
 0x24f   : > { %v7223_v35 = vrot.slane %v6535_v20, 7  ;;  %v7224_v6 = vrot.slane %v6535_v20, 1  ;;  %v2407_v21 = vmul.f32 %v7645_v38, %v6528_v47  ;;  %v7683_v30 = vrot.slane %v7681_v63, 7 }
 0x250   : > { %v2504_v61 = vadd.f32 %v2472_v25, %v2436_v17  ;;  %v2283_v22 = vsel %vm1389_vm1, %v7225_v5, %v7682_v28  ;;  %v2140_v29 = vadd.f32 %v2108_v23, %v1744_v14  ;;  %v6574_v54 = vmul.f32 %v7645_v38, %v6532_v19  ;;  %v7686_v14 = vld [vmem:[#allocation17_spill] sm:$0xff] }
 0x251   : > { %v2186_v17 = vsel %vm1164_vm0, %v7683_v30, %v7222_v12  ;;  %v2335_v53 = vmul.f32 %v2283_v22, %v7684_v18  ;;  %v1742_v62 = vadd.f32 %v1710_v45, %v6375_v48  ;;  %v7687_v41 = vrot.slane %v7686_v14, 7 }
 0x252   : > { %v2241_v37 = vmul.f32 %v2186_v17, %v7685_v24  ;;  %v6587_v23 = vmul.f32 %v7645_v38, %v6535_v20  ;;  %v2106_v28 = vadd.f32 %v2074_v43, %v6390_v58  ;;  %v2535_v22 = vadd.f32 %v2503_v39, %v2139_v3 }
 0x253   : > { %v6583_v25 = vsel %vm1164_vm0, %v7223_v35, %v7687_v41  ;;  %v7688_v30 = vrot.slane %v7686_v14, 1  ;;  %v1713_v45 = vmul.f32 %v4486_v59, %v1573_v44  ;;  %v2077_v17 = vmul.f32 %v4490_v31, %v1937_v9  ;;  %v7689_v35 = vld [vmem:[#allocation29_spill] sm:$0xff] }
 0x254   : > { %v2536_v24 = vadd.f32 %v2504_v61, %v2140_v29  ;;  %v2138_v41 = vadd.f32 %v2106_v28, %v1742_v62  ;;  %v2574_v12 = vadd.f32 %v5775_v52, %v2535_v22  ;;  %v6603_v58 = vmul.f32 %v7689_v35, %v7662_v2  ;;  %v6616_v35 = vpop.permute.xlu1 %1527 }
 0x255   : > { %v6596_v48 = vsel %vm1389_vm1, %v7224_v6, %v7688_v30  ;;  %v1779_v39 = vrot.slane %v7636_v0, 7  ;;  %v6607_v3 = vmul.f32 %v4497_v55, %v2241_v37  ;;  %v1745_v43 = vadd.f32 %v1713_v45, %v6449_v33 }
 0x256   : > { %v2109_v30 = vadd.f32 %v2077_v17, %v6454_v7  ;;  %v2575_v44 = vadd.f32 %v5775_v52, %v2536_v24  ;;  %v2534_v9 = vadd.f32 %v6408_v36, %v2138_v41  ;;  %v2606_v61 = vmax.f32 %v2574_v12, 0.0 }
 0x257   : > { %v1155_v29 = vrot.slane %v6603_v58, 7  ;;  %v1647_v2 = vmul.f32 %v4481_v11, %v6603_v58  ;;  %v7690_v37 = vrot.slane %v7534_v46, 7  ;;  %v2011_v7 = vmul.f32 %v4473_v32, %v7636_v0 }
 0x258   : > { %v2141_v62 = vadd.f32 %v2109_v30, %v1745_v43  ;;  %v2607_v28 = vmax.f32 %v2575_v44, 0.0  ;;  %v2573_v36 = vadd.f32 %v5775_v52, %v2534_v9  ;;  %v7691_v12 = vrot.slane %v7671_v50, 7  ;;  %v6639_v44 = vld [vmem:[#allocation5 + $0x8] ss:$0 sm:$0xff] }
 0x259   : > { %v1792_v33 = vsel %vm1164_vm0, %v7690_v37, %v1779_v39  ;;  %v7692_v17 = vrot.slane %v7642_v26, 7  ;;  %v2475_v9 = vmul.f32 %v6639_v44, %v2335_v53 }
 0x25a   : > { %v1171_v22 = vsel %vm1164_vm0, %v7691_v12, %v1155_v29  ;;  %v1843_v45 = vmul.f32 %v1792_v33, %v6484_v13  ;;  %v2537_v41 = vadd.f32 %v6491_v27, %v2141_v62  ;;  %v2605_v37 = vmax.f32 %v2573_v36, 0.0  ;;  %v7693_v12 = vld [vmem:[#allocation67_spill] sm:$0xff] }
 0x25b   : > { %v2188_v24 = vsel %vm1164_vm0, %v7692_v17, %v2175_v49  ;;  %v1350_v43 = vmul.f32 %v6484_v13, %v1171_v22  ;;  %v7694_v6 = vrot.slane %v7693_v12, 7  ;;  %v1648_v17 = vmul.f32 %v4481_v11, %v7693_v12 }
 0x25c   : > { %v2239_v30 = vmul.f32 %v2188_v24, %v6484_v13  ;;  %v1975_v33 = vmul.f32 %v4488_v15, %v1843_v45  ;;  %v2576_v27 = vadd.f32 %v5775_v52, %v2537_v41  ;;  %v2627_v53 = vpack.c.bf16 %v2606_v61, %v2605_v37  ;;  %v7695_v45 = vld [vmem:[#allocation100_spill] sm:$0xff] }
 0x25d   : > { %v1170_v51 = vsel %vm1164_vm0, %v1155_v29, %v7694_v6  ;;  %v1611_v62 = vmul.f32 %v4479_v10, %v1350_v43  ;;  %v7696_v24 = vrot.slane %v7695_v45, 7  ;;  %v2012_v6 = vmul.f32 %v4473_v32, %v7695_v45  ;;  %v1532_v29 = vpop.permute.xlu1 %1531 }
 0x25e   : > { %v2371_v13 = vmul.f32 %v4497_v55, %v2239_v30  ;;  %v1351_v22 = vmul.f32 %v6523_v56, %v1170_v51  ;;  %v6653_v36 = vadd.f32 %v2011_v7, %v1975_v33  ;;  %v2608_v60 = vmax.f32 %v2576_v27, 0.0  ;;  %3542 = vmatprep.mubr.bf16.mxu1 %v2627_v53 }
 0x25f   : > { %v1791_v5 = vsel %vm1164_vm0, %v1779_v39, %v7696_v24  ;;  %v6661_v52 = vadd.f32 %v1647_v2, %v1611_v62  ;;  %v7697_v61 = vrot.slane %v7681_v63, 7  ;;  %v1382_v7 = vrot.slane %v6603_v58, 1  ;;  %v7703_v24 = vld [vmem:[#allocation120_spill] sm:$0xff] }
 0x260   : > { %v2439_v41 = vadd.f32 %v2407_v21, %v2371_v13  ;;  %v1612_v43 = vmul.f32 %v4479_v10, %v1351_v22  ;;  %v1844_v51 = vmul.f32 %v1791_v5, %v6523_v56  ;;  %v1875_v30 = vrot.slane %v7636_v0, 1  ;;  %v7702_v22 = vld [vmem:[#allocation58_spill] sm:$0xff] }
 0x261   : > { %v2187_v39 = vsel %vm1164_vm0, %v2175_v49, %v7697_v61  ;;  %v2628_v37 = vpack.c.bf16 %v2608_v60, %v2607_v28  ;;  %v7698_v5 = vrot.slane %v7671_v50, 1  ;;  %v7699_v13 = vrot.slane %v7534_v46, 1  ;;  %v1090_v53 = vpop.permute.xlu1 %1089 }
 0x262   : > { %v6673_v2 = vadd.f32 %v2475_v9, %v2439_v41  ;;  %v1680_v21 = vadd.f32 %v1648_v17, %v1612_v43  ;;  %v2240_v33 = vmul.f32 %v2187_v39, %v6523_v56  ;;  %v1976_v27 = vmul.f32 %v4488_v15, %v1844_v51  ;;  %v7704_v39 = vld [vmem:[#allocation119_spill] sm:$0xff] }
 0x263   : > { %v1396_v62 = vsel %vm1389_vm1, %v7698_v5, %v1382_v7  ;;  %v1888_v49 = vsel %vm1389_vm1, %v7699_v13, %v1875_v30  ;;  %v7700_v0 = vrot.slane %v6528_v47, 1  ;;  %v7701_v60 = vrot.slane %v7642_v26, 1  ;;  %3543 = vmatmul.mubr.bf16.gmra.mxu1 %v2628_v37 }
 0x264   : > { %v2372_v56 = vmul.f32 %v4497_v55, %v2240_v33  ;;  %v1574_v50 = vmul.f32 %v6568_v4, %v1396_v62  ;;  %v1938_v28 = vmul.f32 %v1888_v49, %v6568_v4  ;;  %v2044_v46 = vadd.f32 %v2012_v6, %v1976_v27  ;;  %v7705_v6 = vld [vmem:[#allocation82_spill] sm:$0xff]  ;;  %v7706_v27 = vld [vmem:[#allocation80_spill] sm:$0xff] }
 0x265   : > { %v2284_v58 = vsel %vm1389_vm1, %v7701_v60, %v7700_v0  ;;  %v2370_v17 = vmul.f32 %v4497_v55, %v6539_v42  ;;  %v1383_v47 = vrot.slane %v7693_v12, 1  ;;  %v1384_v26 = vrot.slane %v7702_v22, 1 }
 0x266   : > { %v2334_v9 = vmul.f32 %v2284_v58, %v6568_v4  ;;  %v2440_v41 = vadd.f32 %v7703_v24, %v2372_v56  ;;  %v1714_v43 = vmul.f32 %v4486_v59, %v1574_v50  ;;  %v2078_v51 = vmul.f32 %v4490_v31, %v1938_v28 }
 0x267   : > { %v2438_v37 = vadd.f32 %v7704_v39, %v2370_v17  ;;  %v1394_v4 = vsel %vm1389_vm1, %v1383_v47, %v1384_v26  ;;  %v1395_v42 = vsel %vm1389_vm1, %v1382_v7, %v1383_v47  ;;  %v1876_v12 = vrot.slane %v7695_v45, 1  ;;  %v7709_v47 = vld [vmem:[#allocation47_spill] sm:$0xff]  ;;  %v1311_v39 = vpop.permute.xlu1 %1310 }
 0x268   : > { %v2474_v61 = vmul.f32 %v6639_v44, %v2334_v9  ;;  %v1746_v33 = vadd.f32 %v1714_v43, %v7705_v6  ;;  %v2110_v5 = vadd.f32 %v2078_v51, %v7706_v27  ;;  %v1575_v62 = vmul.f32 %v7684_v18, %v1395_v42 }
 0x269   : > { %v1576_v13 = vmul.f32 %v6616_v35, %v1394_v4  ;;  %v1877_v0 = vrot.slane %v7678_v40, 1  ;;  %v1887_v60 = vsel %vm1389_vm1, %v1875_v30, %v1876_v12  ;;  %v7707_v58 = vrot.slane %v6532_v19, 1 }
 0x26a   : > { %v2506_v49 = vadd.f32 %v2474_v61, %v2438_v37  ;;  %v7708_v7 = vrot.slane %v7681_v63, 1  ;;  %v2142_v56 = vadd.f32 %v2110_v5, %v1746_v33  ;;  %v1939_v28 = vmul.f32 %v1887_v60, %v7684_v18  ;;  %v7715_v5 = vld [vmem:[#allocation50_spill] sm:$0xff] }
 0x26b   : > { %v1716_v50 = vmul.f32 %v4486_v59, %v1576_v13  ;;  %v1886_v17 = vsel %vm1389_vm1, %v1876_v12, %v1877_v0  ;;  %v7710_v24 = vrot.slane %v7709_v47, 1  ;;  %v7711_v63 = vrot.slane %v7573_v34, 1 }
 0x26c   : > { %v2282_v45 = vsel %vm1389_vm1, %v7708_v7, %v7707_v58  ;;  %v7712_v51 = vrot.slane %v6535_v20, 1  ;;  %v7713_v61 = vmov %v7707_v58  ;;  %v1940_v4 = vmul.f32 %v1886_v17, %v6616_v35  ;;  %v7716_v7 = vld [vmem:[#allocation54_spill] sm:$0xff] }
 0x26d   : > { %v2336_v9 = vmul.f32 %v2282_v45, %v6616_v35  ;;  %v1393_v30 = vsel %vm1389_vm1, %v1384_v26, %v7710_v24  ;;  %v1885_v43 = vsel %vm1389_vm1, %v1877_v0, %v7711_v63  ;;  %v1748_v37 = vadd.f32 %v1716_v50, %v1680_v21  ;;  %v7714_v26 = vld [vmem:[#allocation63_spill] sm:$0xff]  ;;  %v7718_v24 = vld [vmem:[#allocation38_spill] sm:$0xff]  ;;  %v1319_v63 = vpop.permute.xlu1 %1318 }
 0x26e   : > { %v2281_v18 = vsel %vm1389_vm1, %v7713_v61, %v7712_v51  ;;  %v1577_v12 = vmul.f32 %v1532_v29, %v1393_v30  ;;  %v6745_v6 = vmul.f32 %v6583_v25, %v7714_v26  ;;  %v1941_v33 = vmul.f32 %v1885_v43, %v1532_v29 }
 0x26f   : > { %v2476_v42 = vmul.f32 %v6639_v44, %v2336_v9  ;;  %v2337_v27 = vmul.f32 %v2281_v18, %v1532_v29  ;;  %v6748_v13 = vmul.f32 %v1090_v53, %v7715_v5  ;;  %v2080_v0 = vmul.f32 %v4490_v31, %v1940_v4  ;;  %v7717_v53 = vld [vmem:[#allocation43_spill] sm:$0xff] }
 0x270   : > { %v1717_v58 = vmul.f32 %v4486_v59, %v1577_v12  ;;  %v1715_v21 = vmul.f32 %v4486_v59, %v1575_v62  ;;  %v2441_v35 = vadd.f32 %v6574_v54, %v6607_v3  ;;  %v2338_v45 = vmul.f32 %v6596_v48, %v7716_v7 }
 0x271   : > { %v2508_v60 = vadd.f32 %v2476_v42, %v2440_v41  ;;  %v2081_v25 = vmul.f32 %v4490_v31, %v1941_v33  ;;  %v2079_v29 = vmul.f32 %v4490_v31, %v1939_v28  ;;  %v2112_v50 = vadd.f32 %v2080_v0, %v2044_v46 }
 0x272   : > { %v1749_v9 = vadd.f32 %v1717_v58, %v7717_v53  ;;  %v2477_v17 = vmul.f32 %v6639_v44, %v2337_v27  ;;  %v1747_v41 = vadd.f32 %v1715_v21, %v6661_v52  ;;  %v2180_v62 = vrot.slane %v6748_v13, 7  ;;  %v1323_v53 = vpop.permute.xlu1 %1322 }
 0x273   : > { %v2113_v30 = vadd.f32 %v2081_v25, %v7718_v24  ;;  %v2111_v54 = vadd.f32 %v2079_v29, %v6653_v36  ;;  %v2538_v3 = vadd.f32 %v2506_v49, %v2142_v56  ;;  %v2144_v48 = vadd.f32 %v2112_v50, %v1748_v37  ;;  %v6781_v56 = vld [vmem:[%s7044_s5] ss:$0 sm:$0xff] }
 0x274   : > { %v2276_v43 = vrot.slane %v6748_v13, 1  ;;  %v7719_v28 = vrot.slane %v7709_v47, 7  ;;  %v7720_v46 = vrot.slane %v7702_v22, 7  ;;  %v7721_v52 = vrot.slane %v7573_v34, 7 }
 0x275   : > { %v7722_v61 = vrot.slane %v7678_v40, 7  ;;  %v2145_v36 = vadd.f32 %v2113_v30, %v1749_v9  ;;  %v2143_v49 = vadd.f32 %v2111_v54, %v1747_v41  ;;  %v2577_v37 = vadd.f32 %v6781_v56, %v2538_v3  ;;  %v7728_v30 = vld [vmem:[#allocation86_spill] sm:$0xff] }
 0x276   : > { %v1168_v51 = vsel %vm1164_vm0, %v7720_v46, %v7719_v28  ;;  %v2509_v4 = vadd.f32 %v2477_v17, %v2441_v35  ;;  %v6786_v42 = vmul.f32 %v7645_v38, %v6748_v13  ;;  %v7723_v40 = vrot.slane %v6535_v20, 7  ;;  %v7725_v20 = vld [vmem:[#allocation36_spill] sm:$0xff]  ;;  %v7729_v46 = vld [vmem:[#allocation57_spill] sm:$0xff] }
 0x277   : > { %v1789_v18 = vsel %vm1164_vm0, %v7722_v61, %v7721_v52  ;;  %v1353_v22 = vmul.f32 %v1311_v39, %v1168_v51  ;;  %v7724_v26 = vrot.slane %v6532_v19, 7  ;;  %v2539_v27 = vadd.f32 %v6673_v2, %v2143_v49  ;;  %v7730_v52 = vld [vmem:[#allocation64_spill] sm:$0xff] }
 0x278   : > { %v1846_v12 = vmul.f32 %v1789_v18, %v1311_v39  ;;  %v1650_v0 = vmul.f32 %v4481_v11, %v7709_v47  ;;  %v2014_v35 = vmul.f32 %v4473_v32, %v7573_v34  ;;  %v6803_v7 = vmul.f32 %v7725_v20, %v7573_v34 }
 0x279   : > { %v2185_v33 = vsel %vm1164_vm0, %v7724_v26, %v7723_v40  ;;  %v1614_v5 = vmul.f32 %v4479_v10, %v1353_v22  ;;  %v1784_v19 = vrot.slane %v7679_v8, 7  ;;  %v2578_v25 = vadd.f32 %v6781_v56, %v2539_v27 }
 0x27a   : > { %v2242_v58 = vmul.f32 %v2185_v33, %v1311_v39  ;;  %v1978_v21 = vmul.f32 %v4488_v15, %v1846_v12  ;;  %v2609_v2 = vmax.f32 %v2577_v37, 0.0  ;;  %v1160_v39 = vrot.slane %v6803_v7, 7 }
 0x27b   : > { %v1682_v29 = vadd.f32 %v1650_v0, %v1614_v5  ;;  %v7726_v9 = vrot.slane %v7575_v16, 7  ;;  %v7727_v34 = vrot.slane %v7686_v14, 7  ;;  %v2610_v24 = vmax.f32 %v2578_v25, 0.0  ;;  %v7732_v5 = vld [vmem:[#allocation35_spill] sm:$0xff] }
 0x27c   : > { %v2374_v50 = vmul.f32 %v4497_v55, %v2242_v58  ;;  %v2046_v47 = vadd.f32 %v2014_v35, %v1978_v21  ;;  %v7731_v61 = vrot.slane %v7730_v52, 7  ;;  %v2540_v37 = vadd.f32 %v2508_v60, %v2144_v48  ;;  %v1540_v21 = vpop.permute.xlu1 %1539 }
 0x27d   : > { %v1787_v17 = vsel %vm1164_vm0, %v7726_v9, %v1784_v19  ;;  %v2183_v41 = vsel %vm1164_vm0, %v7727_v34, %v2180_v62  ;;  %v6820_v54 = vadd.f32 %v7728_v30, %v1682_v29  ;;  %v2629_v22 = vpack.c.bf16 %v2610_v24, %v2609_v2  ;;  %v7736_v34 = vld [vmem:[#allocation62_spill] sm:$0xff] }
 0x27e   : > { %v2442_v3 = vadd.f32 %v6587_v23, %v2374_v50  ;;  %v1848_v28 = vmul.f32 %v1787_v17, %v1319_v63  ;;  %v6824_v51 = vadd.f32 %v7729_v46, %v2046_v47  ;;  %v1166_v18 = vsel %vm1164_vm0, %v7731_v61, %v1160_v39 }
 0x27f   : > { %v2244_v49 = vmul.f32 %v2183_v41, %v1319_v63  ;;  %v2478_v12 = vmul.f32 %v6639_v44, %v2338_v45  ;;  %v1355_v40 = vmul.f32 %v1319_v63, %v1166_v18  ;;  %v2016_v26 = vmul.f32 %v4473_v32, %v7679_v8  ;;  %3546 = vmatprep.mubr.bf16.mxu1 %v2629_v22 }
 0x280   : > { %v1652_v23 = vmul.f32 %v4481_v11, %v6803_v7  ;;  %v2541_v33 = vadd.f32 %v2509_v4, %v2145_v36  ;;  %v2579_v27 = vadd.f32 %v6781_v56, %v2540_v37  ;;  %v7733_v0 = vrot.slane %v7732_v5, 7  ;;  %v7734_v4 = vld [vmem:[#allocation111_spill] sm:$0xff] }
 0x281   : > { %v2510_v60 = vadd.f32 %v2478_v12, %v2442_v3  ;;  %v1616_v48 = vmul.f32 %v4479_v10, %v1355_v40  ;;  %v1980_v45 = vmul.f32 %v4488_v15, %v1848_v28  ;;  %v2376_v35 = vmul.f32 %v4497_v55, %v2244_v49 }
 0x282   : > { %v1165_v58 = vsel %vm1164_vm0, %v1160_v39, %v7733_v0  ;;  %v2580_v20 = vadd.f32 %v6781_v56, %v2541_v33  ;;  %v1653_v36 = vmul.f32 %v4481_v11, %v7732_v5  ;;  %v7735_v25 = vrot.slane %v7734_v4, 7 }
 0x283   : > { %v1356_v63 = vmul.f32 %v1323_v53, %v1165_v58  ;;  %v1684_v29 = vadd.f32 %v1652_v23, %v1616_v48  ;;  %v2611_v50 = vmax.f32 %v2579_v27, 0.0  ;;  %v2017_v17 = vmul.f32 %v4473_v32, %v7734_v4  ;;  %v7743_v23 = vld [vmem:[#allocation77_spill] sm:$0xff] }
 0x284   : > { %v1786_v2 = vsel %vm1164_vm0, %v1784_v19, %v7735_v25  ;;  %v2612_v9 = vmax.f32 %v2580_v20, 0.0  ;;  %v7737_v41 = vrot.slane %v7736_v34, 7  ;;  %v1387_v24 = vrot.slane %v6803_v7, 1  ;;  %v7745_v20 = vld [vmem:[#allocation74_spill] sm:$0xff] }
 0x285   : > { %v1617_v47 = vmul.f32 %v4479_v10, %v1356_v63  ;;  %v1849_v39 = vmul.f32 %v1786_v2, %v1323_v53  ;;  %v1880_v10 = vrot.slane %v7679_v8, 1  ;;  %v2413_v46 = vmul.f32 %v7645_v38, %v7736_v34  ;;  %v1544_v38 = vpop.permute.xlu1 %1543 }
 0x286   : > { %v2182_v11 = vsel %vm1164_vm0, %v2180_v62, %v7737_v41  ;;  %v2630_v28 = vpack.c.bf16 %v2612_v9, %v2611_v50  ;;  %v7738_v32 = vrot.slane %v7730_v52, 1  ;;  %v7739_v62 = vrot.slane %v7686_v14, 1  ;;  %v7740_v52 = vld [vmem:[#allocation73_spill] sm:$0xff] }
 0x287   : > { %v1685_v30 = vadd.f32 %v1653_v36, %v1617_v47  ;;  %v1981_v19 = vmul.f32 %v4488_v15, %v1849_v39  ;;  %v2245_v3 = vmul.f32 %v2182_v11, %v1323_v53  ;;  %v2375_v18 = vmul.f32 %v4497_v55, %v6745_v6  ;;  %v7748_v9 = vld [vmem:[#allocation61_spill] sm:$0xff] }
 0x288   : > { %v1391_v61 = vsel %vm1389_vm1, %v7738_v32, %v1387_v24  ;;  %v2279_v7 = vsel %vm1389_vm1, %v7739_v62, %v2276_v43  ;;  %3547 = vmatmul.mubr.bf16.gmra.mxu1 %v2630_v28  ;;  %v7741_v37 = vrot.slane %v7575_v16, 1  ;;  %v7742_v12 = vrot.slane %v7732_v5, 1  ;;  %v6917_v62 = vld [vmem:[%s7046_s7] ss:$0 sm:$0xff] }
 0x289   : > { %v2049_v15 = vadd.f32 %v2017_v17, %v1981_v19  ;;  %v2377_v53 = vmul.f32 %v4497_v55, %v2245_v3  ;;  %v1579_v8 = vmul.f32 %v1540_v21, %v1391_v61  ;;  %v1753_v49 = vadd.f32 %v7740_v52, %v1685_v30 }
 0x28a   : > { %v1883_v22 = vsel %vm1389_vm1, %v7741_v37, %v1880_v10  ;;  %v2339_v14 = vmul.f32 %v2279_v7, %v1540_v21  ;;  %v1390_v40 = vsel %vm1389_vm1, %v1387_v24, %v7742_v12  ;;  %v2048_v0 = vadd.f32 %v2016_v26, %v1980_v45  ;;  %v7747_v45 = vld [vmem:[#allocation52_spill] sm:$0xff] }
 0x28b   : > { %v2117_v33 = vadd.f32 %v7743_v23, %v2049_v15  ;;  %v2445_v27 = vadd.f32 %v2413_v46, %v2377_v53  ;;  %v1719_v55 = vmul.f32 %v4486_v59, %v1579_v8  ;;  %v1943_v6 = vmul.f32 %v1883_v22, %v1540_v21  ;;  %v3723_v53 = vld [vmem:[%s4093_s20 + $0x8] sm:$0xff]  }
 0x28c   : > { %v2479_v58 = vmul.f32 %v6639_v44, %v2339_v14  ;;  %v1580_v48 = vmul.f32 %v1544_v38, %v1390_v40  ;;  %v7744_v16 = vrot.slane %v7734_v4, 1  ;;  %v7746_v2 = vrot.slane %v7736_v34, 1 }
 0x28d   : > { %v1751_v5 = vadd.f32 %v1719_v55, %v7745_v20  ;;  %v2083_v36 = vmul.f32 %v4490_v31, %v1943_v6  ;;  %v2443_v21 = vadd.f32 %v7747_v45, %v2375_v18  ;;  %v2146_v47 = vadd.f32 %v6824_v51, %v6820_v54 }
 0x28e   : > { %v1882_v63 = vsel %vm1389_vm1, %v1880_v10, %v7744_v16  ;;  %v2278_v26 = vsel %vm1389_vm1, %v2276_v43, %v7746_v2  ;;  %v1720_v50 = vmul.f32 %v4486_v59, %v1580_v48  ;;  %v2513_v39 = vadd.f32 %v6469_v1, %v2445_v27  ;;  %v3725_v16 = vld [vmem:[%s4093_s20 + $0x18] sm:$0xff]  }
 0x28f   : > { %v1944_v25 = vmul.f32 %v1882_v63, %v1544_v38  ;;  %v2340_v4 = vmul.f32 %v2278_v26, %v1544_v38  ;;  %v2115_v17 = vadd.f32 %v2083_v36, %v7748_v9  ;;  %v2149_v34 = vadd.f32 %v2117_v33, %v1753_v49  ;;  %v3724_v38 = vld [vmem:[%s4093_s20] sm:$0xff]  }
 0x290   : > { %v2444_v13 = vadd.f32 %v6786_v42, %v2376_v35  ;;  %v1752_v11 = vadd.f32 %v1720_v50, %v1684_v29  ;;  %v2542_v43 = vadd.f32 %v2510_v60, %v2146_v47  ;;  %v2511_v30 = vadd.f32 %v2479_v58, %v2443_v21 }
 0x291   : > { %v2084_v41 = vmul.f32 %v4490_v31, %v1944_v25  ;;  %v2480_v57 = vmul.f32 %v6639_v44, %v2340_v4  ;;  %v2147_v24 = vadd.f32 %v2115_v17, %v1751_v5  ;;  %v2545_v19 = vadd.f32 %v2513_v39, %v2149_v34  ;;  %v3726_v25 = vld [vmem:[%s4093_s20 + $0x10] sm:$0xff]  }
 0x292   : > { %v2581_v1 = vadd.f32 %v6781_v56, %v2542_v43  ;;  %v2868_v8 = vunpack.c.h.bf16 %v3723_v53  ;;  %v2865_v52 = vunpack.c.l.bf16 %v3724_v38  ;;  %v2866_v49 = vunpack.c.h.bf16 %v3724_v38 }
 0x293   : > { %v2116_v59 = vadd.f32 %v2084_v41, %v2048_v0  ;;  %v2512_v10 = vadd.f32 %v2480_v57, %v2444_v13  ;;  %v2543_v54 = vadd.f32 %v2511_v30, %v2147_v24  ;;  %v2584_v42 = vadd.f32 %v6781_v56, %v2545_v19  ;;  %v3727_v57 = vld [vmem:[%s4093_s20 + $0x28] sm:$0xff]   ;;  %v3728_v19 = vld [vmem:[%s4093_s20 + $0x20] sm:$0xff]  }
 0x294   : > { %v2613_v35 = vmax.f32 %v2581_v1, 0.0  ;;  %v2871_v63 = vunpack.c.l.bf16 %v3725_v16  ;;  %v2872_v20 = vunpack.c.h.bf16 %v3725_v16  ;;  %v2869_v2 = vunpack.c.l.bf16 %v3726_v25 }
 0x295   : > { %v2148_v3 = vadd.f32 %v2116_v59, %v1752_v11  ;;  %v2582_v31 = vadd.f32 %v6781_v56, %v2543_v54  ;;  %v2616_v46 = vmax.f32 %v2584_v42, 0.0  ;;  %v2870_v45 = vunpack.c.h.bf16 %v3726_v25 }
 0x296   : > { %v2875_v43 = vunpack.c.l.bf16 %v3727_v57  ;;  %v2876_v24 = vunpack.c.h.bf16 %v3727_v57  ;;  %v2874_v54 = vunpack.c.h.bf16 %v3728_v19 }
 0x297   : > { %v2544_v51 = vadd.f32 %v2512_v10, %v2148_v3  ;;  %v2614_v29 = vmax.f32 %v2582_v31, 0.0  ;;  %v2873_v3 = vunpack.c.l.bf16 %v3728_v19 }
 0x299   : > { %v2583_v44 = vadd.f32 %v6781_v56, %v2544_v51  ;;  %v2631_v60 = vpack.c.bf16 %v2614_v29, %v2613_v35  ;;  %v2867_v56 = vunpack.c.l.bf16 %v3723_v53 }
 0x29b   : > { %v2615_v28 = vmax.f32 %v2583_v44, 0.0  ;;  %3550 = vmatprep.mubr.bf16.mxu1 %v2631_v60 }
 0x29d   : > { %v2632_v32 = vpack.c.bf16 %v2616_v46, %v2615_v28 }
 0x29f   : > { %3551 = vmatmul.mubr.bf16.gmra.mxu1 %v2632_v32 }
 0x2ae   : > { %v3524_v61 = vpop.f32.mrf.mxu1 }
 0x2af   : > { %v2747_v15 = vadd.f32 %v3524_v61, %v6917_v62  ;;  %v3729_v61 = vld [vmem:[%s4093_s20 + $0x38] sm:$0xff]  }
 0x2b0   : > { %v2738_v7 = vpop.f32.mrf.mxu1 }
 0x2b1   : > { %v2739_v37 = vadd.f32 %v6917_v62, %v2738_v7  ;;  %v2899_v12 = vadd.f32 %v2867_v56, %v2747_v15  ;;  %v2879_v7 = vunpack.c.l.bf16 %v3729_v61  ;;  %v2880_v15 = vunpack.c.h.bf16 %v3729_v61 }
 0x2b2   : > { %v3525_v18 = vpop.f32.mrf.mxu1 }
 0x2b3   : > { %v2750_v22 = vadd.f32 %v3525_v18, %v6917_v62  ;;  %v2897_v33 = vadd.f32 %v2865_v52, %v2739_v37 }
 0x2b4   : > { %v2741_v14 = vpop.f32.mrf.mxu1 }
 0x2b5   : > { %v2900_v40 = vadd.f32 %v2868_v8, %v2750_v22  ;;  %v2742_v23 = vadd.f32 %v6917_v62, %v2741_v14  ;;  %v3730_v8 = vld [vmem:[%s4093_s20 + $0x30] sm:$0xff]  }
 0x2b6   : > { %v2877_v18 = vunpack.c.l.bf16 %v3730_v8  ;;  %v2878_v52 = vunpack.c.h.bf16 %v3730_v8 }
 0x2b7   : > { %v3323_v27 = vpack.c.bf16 %v2900_v40, %v2899_v12  ;;  %v2898_v55 = vadd.f32 %v2866_v49, %v2742_v23 }
 0x2b9   : > { %3395 = vst [vmem:[%s6928_s25 + $0x8] sm:$0xff] %v3323_v27   ;;  %v3318_v6 = vpack.c.bf16 %v2898_v55, %v2897_v33 }
 0x2bb   : > { %3319 = vst [vmem:[%s6928_s25] sm:$0xff] %v3318_v6  }
 0x2be   : > { %v3528_v0 = vpop.f32.mrf.mxu1 }
 0x2bf   : > { %v2763_v48 = vadd.f32 %v3528_v0, %v6917_v62  ;;  %v3731_v0 = vld [vmem:[%s4093_s20 + $0x48] sm:$0xff]  }
 0x2c0   : > { %v2754_v58 = vpop.f32.mrf.mxu1 }
 0x2c1   : > { %v2755_v36 = vadd.f32 %v6917_v62, %v2754_v58  ;;  %v2903_v50 = vadd.f32 %v2871_v63, %v2763_v48  ;;  %v2883_v58 = vunpack.c.l.bf16 %v3731_v0  ;;  %v2884_v48 = vunpack.c.h.bf16 %v3731_v0 }
 0x2c2   : > { %v3529_v5 = vpop.f32.mrf.mxu1 }
 0x2c3   : > { %v2766_v26 = vadd.f32 %v3529_v5, %v6917_v62  ;;  %v2901_v39 = vadd.f32 %v2869_v2, %v2755_v36 }
 0x2c4   : > { %v2757_v21 = vpop.f32.mrf.mxu1 }
 0x2c5   : > { %v2904_v4 = vadd.f32 %v2872_v20, %v2766_v26  ;;  %v2758_v47 = vadd.f32 %v6917_v62, %v2757_v21  ;;  %v3732_v20 = vld [vmem:[%s4093_s20 + $0x40] sm:$0xff]  }
 0x2c6   : > { %v2881_v5 = vunpack.c.l.bf16 %v3732_v20  ;;  %v2882_v25 = vunpack.c.h.bf16 %v3732_v20 }
 0x2c7   : > { %v3333_v9 = vpack.c.bf16 %v2904_v4, %v2903_v50  ;;  %v2902_v17 = vadd.f32 %v2870_v45, %v2758_v47 }
 0x2c9   : > { %3397 = vst [vmem:[%s6928_s25 + $0x18] sm:$0xff] %v3333_v9   ;;  %v3328_v41 = vpack.c.bf16 %v2902_v17, %v2901_v39 }
 0x2cb   : > { %3396 = vst [vmem:[%s6928_s25 + $0x10] sm:$0xff] %v3328_v41  }
 0x2ce   : > { %v3532_v34 = vpop.f32.mrf.mxu1 }
 0x2cf   : > { %v2779_v11 = vadd.f32 %v3532_v34, %v6917_v62  ;;  %v3733_v34 = vld [vmem:[%s4093_s20 + $0x58] sm:$0xff]  }
 0x2d0   : > { %v2770_v13 = vpop.f32.mrf.mxu1 }
 0x2d1   : > { %v2771_v59 = vadd.f32 %v6917_v62, %v2770_v13  ;;  %v2907_v51 = vadd.f32 %v2875_v43, %v2779_v11  ;;  %v2887_v13 = vunpack.c.l.bf16 %v3733_v34  ;;  %v2888_v11 = vunpack.c.h.bf16 %v3733_v34 }
 0x2d2   : > { %v3533_v30 = vpop.f32.mrf.mxu1 }
 0x2d3   : > { %v2782_v10 = vadd.f32 %v3533_v30, %v6917_v62  ;;  %v2905_v35 = vadd.f32 %v2873_v3, %v2771_v59 }
 0x2d4   : > { %v2773_v1 = vpop.f32.mrf.mxu1 }
 0x2d5   : > { %v2908_v31 = vadd.f32 %v2876_v24, %v2782_v10  ;;  %v2774_v42 = vadd.f32 %v6917_v62, %v2773_v1  ;;  %v3734_v24 = vld [vmem:[%s4093_s20 + $0x50] sm:$0xff]  }
 0x2d6   : > { %v2885_v30 = vunpack.c.l.bf16 %v3734_v24  ;;  %v2886_v19 = vunpack.c.h.bf16 %v3734_v24 }
 0x2d7   : > { %v3343_v29 = vpack.c.bf16 %v2908_v31, %v2907_v51  ;;  %v2906_v44 = vadd.f32 %v2874_v54, %v2774_v42 }
 0x2d9   : > { %3399 = vst [vmem:[%s6928_s25 + $0x28] sm:$0xff] %v3343_v29   ;;  %v3338_v60 = vpack.c.bf16 %v2906_v44, %v2905_v35 }
 0x2db   : > { %3398 = vst [vmem:[%s6928_s25 + $0x20] sm:$0xff] %v3338_v60  }
 0x2ea   : > { %v3536_v28 = vpop.f32.mrf.mxu1 }
 0x2eb   : > { %v2795_v32 = vadd.f32 %v3536_v28, %v6917_v62  ;;  %v3735_v28 = vld [vmem:[%s4093_s20 + $0x68] sm:$0xff]  }
 0x2ec   : > { %v2786_v46 = vpop.f32.mrf.mxu1 }
 0x2ed   : > { %v2787_v56 = vadd.f32 %v6917_v62, %v2786_v46  ;;  %v2911_v37 = vadd.f32 %v2879_v7, %v2795_v32  ;;  %v2891_v46 = vunpack.c.l.bf16 %v3735_v28  ;;  %v2892_v32 = vunpack.c.h.bf16 %v3735_v28 }
 0x2ee   : > { %v3537_v53 = vpop.f32.mrf.mxu1 }
 0x2ef   : > { %v2798_v38 = vadd.f32 %v3537_v53, %v6917_v62  ;;  %v2909_v12 = vadd.f32 %v2877_v18, %v2787_v56 }
 0x2f0   : > { %v2789_v49 = vpop.f32.mrf.mxu1 }
 0x2f1   : > { %v2912_v22 = vadd.f32 %v2880_v15, %v2798_v38  ;;  %v2790_v14 = vadd.f32 %v6917_v62, %v2789_v49  ;;  %v3736_v15 = vld [vmem:[%s4093_s20 + $0x60] sm:$0xff]  }
 0x2f2   : > { %v2889_v53 = vunpack.c.l.bf16 %v3736_v15  ;;  %v2890_v8 = vunpack.c.h.bf16 %v3736_v15 }
 0x2f3   : > { %v3353_v40 = vpack.c.bf16 %v2912_v22, %v2911_v37  ;;  %v2910_v23 = vadd.f32 %v2878_v52, %v2790_v14 }
 0x2f5   : > { %3401 = vst [vmem:[%s6928_s25 + $0x38] sm:$0xff] %v3353_v40   ;;  %v3348_v33 = vpack.c.bf16 %v2910_v23, %v2909_v12 }
 0x2f7   : > { %3400 = vst [vmem:[%s6928_s25 + $0x30] sm:$0xff] %v3348_v33  }
 0x2fa   : > { %v3540_v27 = vpop.f32.mrf.mxu1 }
 0x2fb   : > { %v2811_v6 = vadd.f32 %v3540_v27, %v6917_v62  ;;  %v3737_v27 = vld [vmem:[%s4093_s20 + $0x78] sm:$0xff]  }
 0x2fc   : > { %v2802_v55 = vpop.f32.mrf.mxu1 }
 0x2fd   : > { %v2803_v63 = vadd.f32 %v6917_v62, %v2802_v55  ;;  %v2915_v26 = vadd.f32 %v2883_v58, %v2811_v6  ;;  %v2895_v55 = vunpack.c.l.bf16 %v3737_v27  ;;  %v2896_v6 = vunpack.c.h.bf16 %v3737_v27 }
 0x2fe   : > { %v3541_v16 = vpop.f32.mrf.mxu1 }
 0x2ff   : > { %v2814_v36 = vadd.f32 %v3541_v16, %v6917_v62  ;;  %v2913_v50 = vadd.f32 %v2881_v5, %v2803_v63 }
 0x300   : > { %v2805_v2 = vpop.f32.mrf.mxu1 }
 0x301   : > { %v2916_v45 = vadd.f32 %v2884_v48, %v2814_v36  ;;  %v2806_v21 = vadd.f32 %v6917_v62, %v2805_v2  ;;  %v3738_v48 = vld [vmem:[%s4093_s20 + $0x70] sm:$0xff]   ;;  %s6991_s20 = scalar_lea.hbm %s7047_s8, %s3314_s26 }
 0x302   : > { %v2893_v16 = vunpack.c.l.bf16 %v3738_v48  ;;  %v2894_v20 = vunpack.c.h.bf16 %v3738_v48 }
 0x303   : > { %v3363_v4 = vpack.c.bf16 %v2916_v45, %v2915_v26  ;;  %v2914_v47 = vadd.f32 %v2882_v25, %v2806_v21 }
 0x305   : > { %3403 = vst [vmem:[%s6928_s25 + $0x48] sm:$0xff] %v3363_v4   ;;  %v3358_v39 = vpack.c.bf16 %v2914_v47, %v2913_v50 }
 0x307   : > { %3402 = vst [vmem:[%s6928_s25 + $0x40] sm:$0xff] %v3358_v39  }
 0x323   : > { %v3544_v9 = vpop.f32.mrf.mxu1 }
 0x324   : > { %v2827_v41 = vadd.f32 %v3544_v9, %v6917_v62 }
 0x325   : > { %v2818_v17 = vpop.f32.mrf.mxu1 }
 0x326   : > { %v2819_v43 = vadd.f32 %v6917_v62, %v2818_v17  ;;  %v2919_v10 = vadd.f32 %v2887_v13, %v2827_v41 }
 0x327   : > { %v3545_v57 = vpop.f32.mrf.mxu1 }
 0x328   : > { %v2830_v59 = vadd.f32 %v3545_v57, %v6917_v62  ;;  %v2917_v51 = vadd.f32 %v2885_v30, %v2819_v43 }
 0x329   : > { %v2821_v3 = vpop.f32.mrf.mxu1 }
 0x32a   : > { %v2920_v54 = vadd.f32 %v2888_v11, %v2830_v59  ;;  %v2822_v1 = vadd.f32 %v6917_v62, %v2821_v3 }
 0x32c   : > { %v3373_v31 = vpack.c.bf16 %v2920_v54, %v2919_v10  ;;  %v2918_v42 = vadd.f32 %v2886_v19, %v2822_v1 }
 0x32e   : > { %3405 = vst [vmem:[%s6928_s25 + $0x58] sm:$0xff] %v3373_v31   ;;  %v3368_v35 = vpack.c.bf16 %v2918_v42, %v2917_v51 }
 0x330   : > { %3404 = vst [vmem:[%s6928_s25 + $0x50] sm:$0xff] %v3368_v35  }
 0x348   : > { %v3548_v29 = vpop.f32.mrf.mxu1 }
 0x349   : > { %v2843_v60 = vadd.f32 %v3548_v29, %v6917_v62 }
 0x34a   : > { %v2834_v44 = vpop.f32.mrf.mxu1 }
 0x34b   : > { %v2835_v7 = vadd.f32 %v6917_v62, %v2834_v44  ;;  %v2923_v38 = vadd.f32 %v2891_v46, %v2843_v60 }
 0x34c   : > { %v3549_v61 = vpop.f32.mrf.mxu1 }
 0x34d   : > { %v2846_v56 = vadd.f32 %v3549_v61, %v6917_v62  ;;  %v2921_v37 = vadd.f32 %v2889_v53, %v2835_v7 }
 0x34e   : > { %v2837_v18 = vpop.f32.mrf.mxu1 }
 0x34f   : > { %v2924_v52 = vadd.f32 %v2892_v32, %v2846_v56  ;;  %v2838_v49 = vadd.f32 %v6917_v62, %v2837_v18 }
 0x351   : > { %v3383_v22 = vpack.c.bf16 %v2924_v52, %v2923_v38  ;;  %v2922_v14 = vadd.f32 %v2890_v8, %v2838_v49 }
 0x353   : > { %3407 = vst [vmem:[%s6928_s25 + $0x68] sm:$0xff] %v3383_v22   ;;  %v3378_v12 = vpack.c.bf16 %v2922_v14, %v2921_v37 }
 0x355   : > { %3406 = vst [vmem:[%s6928_s25 + $0x60] sm:$0xff] %v3378_v12  }
 0x35f   : > { %v3552_v40 = vpop.f32.mrf.mxu1 }
 0x360   : > { %v2859_v33 = vadd.f32 %v3552_v40, %v6917_v62 }
 0x361   : > { %v2850_v23 = vpop.f32.mrf.mxu1 }
 0x362   : > { %v2851_v58 = vadd.f32 %v6917_v62, %v2850_v23  ;;  %v2927_v36 = vadd.f32 %v2895_v55, %v2859_v33 }
 0x363   : > { %v3553_v0 = vpop.f32.mrf.mxu1 }
 0x364   : > { %v2862_v63 = vadd.f32 %v3553_v0, %v6917_v62  ;;  %v2925_v26 = vadd.f32 %v2893_v16, %v2851_v58 }
 0x365   : > { %v2853_v5 = vpop.f32.mrf.mxu1 }
 0x366   : > { %v2928_v25 = vadd.f32 %v2896_v6, %v2862_v63  ;;  %v2854_v2 = vadd.f32 %v6917_v62, %v2853_v5 }
 0x368   : > { %v3393_v45 = vpack.c.bf16 %v2928_v25, %v2927_v36  ;;  %v2926_v21 = vadd.f32 %v2894_v20, %v2854_v2 }
 0x36a   : > { %3409 = vst [vmem:[%s6928_s25 + $0x78] sm:$0xff] %v3393_v45   ;;  %v3388_v50 = vpack.c.bf16 %v2926_v21, %v2925_v26 }
 0x36c   : > { %3408 = vst [vmem:[%s6928_s25 + $0x70] sm:$0xff] %v3388_v50  }
 0x36d   : > { %3830 = shalt.err (!%p3827_p11)
}
 0x36e   : > { %s3831_s23 = scalar_lea.hbm %s6991_s20, 2048  ;;  %s3835_s25 = scalar_lea.hbm %s7047_s8, 4096 }
 0x36f   : > { %p3832_p0 = scmp.ne.s32.totalorder %s6991_s20, %s3831_s23  ;;  %p3836_p3 = scmp.lt.s32.totalorder %s6991_s20, %s7047_s8 }
 0x370   : > { %p3837_p2 = scmp.lt.s32.totalorder %s3835_s25, %s3831_s23 }
 0x371   : > { %p3833_p1 = pnand %p3832_p0, %p3984_p5 }
 0x372   : > { %p3838_p10 = por %p3837_p2, %p3836_p3 }
 0x373   : > { %p3834_p13 = pneg %p3833_p1 }
 0x375   : > { %p3839_p12 = pnand %p3838_p10, %p3834_p13 }
 0x377   : > { %3842 = shalt.err (!%p3839_p12)
}
 0x378   : > { %s3899_s17 = smov 64   ;;  %s3900_s9 = smov 4  }
 0x379   : > { %3566 = dma.vmem_to_hbm [thread:$0]  (%p3984_p5), %s6993_s10, 2048, %s6991_s20, %s6999_s12, %s3899_s17, %s3899_s17, %s3900_s9  }
 0x37a PF: > { %p3588_p4 = scmp.ge.s32.totalorder %s3885_s30, 2  ;;  %s3118_s13 = sand.u32 1, %s3873_s27  }
 0x37b   : > { %p7749_p7 = scmp.ne.s32.totalorder %s7228_s16, 0  ;;  %s3119_s18 = scalar_lea.sflag [#allocation4], %s3118_s13 }
 0x37d   : > { %p3579_p6 = pnand %p3588_p4, %p7749_p7 }
 0x37f   : > { %p3580_p9 = pneg %p3579_p6 }
 0x381   : > { %3868 = dma.done.wait (%p3580_p9), %s3119_s18, 2048  }
 0x382   : > { %3870 = vsyncadd (%p3580_p9), %s3119_s18, 4294965248  ;;  %p20_p8 = scmp.ge.s32.totalorder %s3971_s11, 4   ;;  %s7750_s27 = smov %s3877_s28 }
 0x383   : > { %s7751_s28 = smov %s3881_s29  ;;  %s7752_s29 = smov %s3982_s14 }
 0x384   : > { %s7753_s30 = smov %s3971_s11  ;;  %22 = sbr.rel (!%p20_p8) target bundleno = 5 (0x5), region = 100 }
 0x389   :  { %3124 = vsyncpa [#allocation3], 1 }
 0x38a   :  { %3126 = vsyncpa [#allocation3 + $0x1], 1 }
 0x38b   :  { %3127 = vsyncpa [#allocation6], 1 }
 0x38c   :  { %3128 = vsyncpa [#allocation4], 1 }
 0x38d   :  { %3130 = vsyncpa [#allocation4 + $0x1], 1 }

</bundles_post_ra>
